<compile_context>
chip_gen: v5e
topology: v5e:2x2
jax: 0.10.0
libtpu: 0.0.40
codegen_flags: <defaults>
</compile_context>

<pallas_src>
import jax
import jax.numpy as jnp
from jax import lax
from jax.experimental import pallas as pl
from jax.experimental.pallas import tpu as pltpu


def _mdhp_net_kernel(
    # inputs
    x_ref, alpha_ref, beta_ref, theta_ref, dt_ref,
    w_smb_ref, w_x_ref, w_h_ref, b_g_ref, w_hp_ref, b_hp_ref,
    w_qkv_ref, b_qkv_ref, wo_ref, w1_ref, w2_ref, b2_ref, bias_h_ref,
    # outputs
    out_ref,
    # scratch
    xbuf,      # (S*B, H) seq-major : current layer's activations (row = t*B + b)
):
    f32 = jnp.float32
    SB, H = xbuf.shape
    L = w_x_ref.shape[0]
    S = w1_ref.shape[0]
    B = SB // S

    # packed H-wide biases: rows [b_smb, bo, b1]
    bias_h = bias_h_ref[...]
    b_smb = bias_h[0:1, :]
    bo = bias_h[1:2, :]
    b1 = bias_h[2:3, :]

    # ---------------- SMB: ONE batched Linear + ReLU over all timesteps ------
    xbuf[...] = jnp.maximum(
        jnp.dot(x_ref[...], w_smb_ref[...], preferred_element_type=f32) + b_smb,
        0.0)                                                      # (S*B, H)

    # ------------- Hawkes intensity (hoisted, fully vectorized) --------------
    # seq-major rows r = t*B + b; alpha/beta/theta repeated S times along rows.
    dt = dt_ref[...]                                              # (S*B, 1)
    alpha_t = jnp.concatenate([alpha_ref[...]] * S, axis=0)       # (S*B, M, M)
    beta_t = jnp.concatenate([beta_ref[...]] * S, axis=0)         # (S*B, M, M)
    theta_t = jnp.concatenate([theta_ref[...]] * S, axis=0)       # (S*B, M)
    lam = theta_t + jnp.sum(
        alpha_t * jnp.exp(-beta_t * dt[:, :, None]), axis=-1)     # (S*B, M)

    # ------- stacked MDHP-LSTM layers (states chained across layers) ---------
    h = jnp.zeros((B, H), f32)     # preprocess() zero init, built in-kernel
    c = jnp.zeros((B, H), f32)
    for layer in range(L):
        # hp gate for every timestep of this layer: ONE matmul + ONE sigmoid,
        # kept resident in vregs (no scratch round-trip).
        hp_all = jax.nn.sigmoid(
            jnp.dot(lam, w_hp_ref[layer], preferred_element_type=f32)
            + b_hp_ref[layer])                                    # (S*B, H)

        # hoisted x-contribution of all 4 gates for ALL timesteps (bias folded)
        acts = xbuf[...]                                          # (S*B, H)
        xz_all = (jnp.dot(acts, w_x_ref[layer], preferred_element_type=f32)
                  + b_g_ref[layer])                               # (S*B, 4H)
        w_h_l = w_h_ref[layer]                                    # (H, 4H)

        for t in range(S):                                        # unrolled, static slices
            z = xz_all[t * B:(t + 1) * B, :] + jnp.dot(
                h, w_h_l, preferred_element_type=f32)             # (B, 4H)
            sz = jax.nn.sigmoid(z)                                # one full-width EUP pass
            i_g = sz[:, 0:H]
            f_g = sz[:, H:2 * H]
            o_g = sz[:, 3 * H:4 * H]
            g_g = jnp.tanh(z[:, 2 * H:3 * H])
            c = f_g * c + i_g * g_g * hp_all[t * B:(t + 1) * B, :]
            h = o_g * jnp.tanh(c)
            xbuf[t * B:(t + 1) * B, :] = h                        # this layer's output

    # ---------------- RSAB: fully batched single-head attention --------------
    # Gather batch-major (B*S, H) rows via strided reads of the seq-major scratch.
    x2 = jnp.concatenate(
        [xbuf[pl.ds(b, S, stride=B), :] for b in range(B)], axis=0)  # (B*S, H)
    qkv = (jnp.dot(x2, w_qkv_ref[...], preferred_element_type=f32)
           + b_qkv_ref[...])                                      # (B*S, 3H)
    q3 = qkv[:, 0:H].reshape(B, S, H)
    k3 = qkv[:, H:2 * H].reshape(B, S, H)
    v3 = qkv[:, 2 * H:3 * H].reshape(B, S, H)
    scale = 1.0 / float(H) ** 0.5
    logits = jnp.einsum('bqd,bkd->bqk', q3, k3,
                        preferred_element_type=f32) * scale       # (B, S, S)
    logits = logits - jnp.max(logits, axis=-1, keepdims=True)
    p = jnp.exp(logits)
    attn = p * pl.reciprocal(jnp.sum(p, axis=-1, keepdims=True), approx=False)
    ctx = jnp.einsum('bqk,bkd->bqd', attn, v3,
                     preferred_element_type=f32)                  # (B, S, H)
    y = (jnp.dot(ctx.reshape(SB, H), wo_ref[...], preferred_element_type=f32)
         + bo)                                                    # (B*S, H)
    r3 = jnp.maximum(y + x2, 0.0).reshape(B, S, H)                # residual + ReLU

    # ------------- MLP: (B, S*H) @ (S*H, H) as S accumulated matmuls ---------
    w1 = w1_ref[...]                                              # (S, H, H)
    acc = jnp.zeros((B, H), f32)
    for s in range(S):
        acc = acc + jnp.dot(r3[:, s, :], w1[s], preferred_element_type=f32)
    h1 = jnp.maximum(acc + b1, 0.0)                               # (B, H)
    # single store of the whole (B, O) output slab
    out_ref[...] = (jnp.dot(h1, w2_ref[...], preferred_element_type=f32)
                    + b2_ref[...])


def make_params(key, n_seq, input_dim, hidden_dim, output_dim, mdhp_dim, n_lstm):
    """Deterministic parameter init (PyTorch-Linear-style uniform bounds)."""
    def uniform(k, shape, fan_in):
        bound = 1.0 / float(fan_in) ** 0.5
        return jax.random.uniform(k, shape, jnp.float32, -bound, bound)

    keys = iter(jax.random.split(key, 24))
    H, I, M, S, O, L = hidden_dim, input_dim, mdhp_dim, n_seq, output_dim, n_lstm
    b_smb = uniform(next(keys), (1, H), I)
    bo = uniform(next(keys), (1, H), H)
    b1 = uniform(next(keys), (1, H), S * H)
    return dict(
        # SMB
        w_smb=uniform(next(keys), (I, H), I),
        # MDHP-LSTM: split gate weights (x- and h-contributions); the 4H axis
        # is gate order (i, f, g, o).
        w_x=uniform(next(keys), (L, H, 4 * H), H),
        w_h=uniform(next(keys), (L, H, 4 * H), H),
        b_g=uniform(next(keys), (L, 1, 4 * H), H),
        w_hp=uniform(next(keys), (L, M, H), M),
        b_hp=uniform(next(keys), (L, 1, H), M),
        # RSAB: fused Q|K|V projection + separate output projection
        w_qkv=uniform(next(keys), (H, 3 * H), H),
        b_qkv=uniform(next(keys), (1, 3 * H), H),
        wo=uniform(next(keys), (H, H), H),
        # MLP (w1[s, h, o] == W1[s*H + h, o], matching x.reshape(-1, S*H))
        w1=uniform(next(keys), (S, H, H), S * H),
        w2=uniform(next(keys), (H, O), H),
        b2=uniform(next(keys), (1, O), H),
        # packed H-wide biases: rows [b_smb, bo, b1]
        bias_h=jnp.concatenate([b_smb, bo, b1], axis=0),
    )


def mdhp_net_forward(obs_window, alpha, beta, theta, tspan, params):
    B, S, I = obs_window.shape
    H = params["w_smb"].shape[1]
    O = params["w2"].shape[1]
    M = params["w_hp"].shape[1]
    L = params["w_x"].shape[0]

    # ---- preprocess (matches MDHP_NET.preprocess): NBL permute; the zero LSTM
    #      states are created inside the kernel.  Flatten the window to
    #      seq-major (S*B, I) rows and tspan to seq-major (S*B, 1) (plumbing).
    x = jnp.transpose(obs_window, (1, 0, 2)).astype(jnp.float32).reshape(S * B, I)
    dt = jnp.transpose(tspan, (1, 0)).astype(jnp.float32).reshape(S * B, 1)

    inputs = (
        x,
        alpha.astype(jnp.float32), beta.astype(jnp.float32),
        theta.astype(jnp.float32), dt,
        params["w_smb"],
        params["w_x"], params["w_h"], params["b_g"],
        params["w_hp"], params["b_hp"],
        params["w_qkv"], params["b_qkv"], params["wo"],
        params["w1"], params["w2"], params["b2"], params["bias_h"],
    )

    # Advisory cost estimate so XLA can schedule neighbors around the call.
    flops = int(
        2 * S * B * I * H                          # SMB
        + L * 2 * S * B * M * H                    # hp projections
        + L * 2 * S * B * H * (4 * H)              # hoisted x-contribution
        + L * S * 2 * B * H * (4 * H)              # in-loop h-contribution
        + 2 * B * S * H * (3 * H)                  # fused QKV projection
        + 2 * 2 * B * S * S * H                    # attention logits + context
        + 2 * B * S * H * H                        # output projection
        + 2 * B * S * H * H + 2 * B * H * O)       # MLP
    transcendentals = int(
        S * B * M * M                              # Hawkes exp
        + L * S * B * H                            # hp sigmoid
        + L * S * B * 6 * H                        # gate sigmoid + 2 tanh
        + B * S * S)                               # attention exp
    bytes_accessed = int(sum(int(a.size) * a.dtype.itemsize for a in inputs)
                         + B * O * 4)

    vmem = pl.BlockSpec(memory_space=pltpu.MemorySpace.VMEM)
    return pl.pallas_call(
        _mdhp_net_kernel,
        out_shape=jax.ShapeDtypeStruct((B, O), jnp.float32),
        in_specs=[vmem] * len(inputs),
        out_specs=vmem,
        scratch_shapes=[pltpu.VMEM((S * B, H), jnp.float32)],   # layer activations
        compiler_params=pltpu.CompilerParams(
            vmem_limit_bytes=16 * 1024 * 1024),  # real footprint << 1 MiB + padding
        cost_estimate=pl.CostEstimate(flops=flops,
                                      transcendentals=transcendentals,
                                      bytes_accessed=bytes_accessed),
        # NOTE: gridless single program -- at this toy B=2 a batch grid would
        # only add per-step overhead; for production batch sizes add a
        # ("parallel",) grid over batch tiles so v7x's two TensorCores share it
        # and re-budget scratch against its 64 MiB VMEM.
    )(*inputs)


if __name__ == "__main__":
    # small shapes consistent with MDHP_NET(n_seq, input_dim, hidden_dim,
    # output_dim, mdhp_dim, n_mdhp_lstm)
    B, S, I, H, O, M, L = 2, 8, 16, 32, 4, 4, 2

    key = jax.random.PRNGKey(0)
    k_obs, k_a, k_b, k_th, k_p = jax.random.split(key, 5)

    obs_window = jax.random.normal(k_obs, (B, S, I), jnp.float32)      # (batch, n_seq, input_dim)
    alpha = jax.random.uniform(k_a, (B, M, M), jnp.float32, 0.1, 1.0)  # Hawkes excitation
    beta = jax.random.uniform(k_b, (B, M, M), jnp.float32, 0.5, 2.0)   # Hawkes decay
    theta = jax.random.uniform(k_th, (B, M), jnp.float32, 0.1, 1.0)    # Hawkes baseline
    tspan = jnp.tile(jnp.linspace(0.1, 1.0, S, dtype=jnp.float32)[None, :], (B, 1))

    params = make_params(k_p, S, I, H, O, M, L)

    fwd = jax.jit(mdhp_net_forward)
    out = jax.block_until_ready(fwd(obs_window, alpha, beta, theta, tspan, params))

    assert out.shape == (B, O), out.shape
    assert bool(jnp.all(jnp.isfinite(out)))
    print("KERNEL_OK")
</pallas_src>

<mosaic_0001>
module attributes {stable_mosaic.version = 11 : i64} {
  func.func @_mdhp_net_kernel(%arg0: memref<16x16xf32, #tpu.memory_space<vmem>>, %arg1: memref<2x4x4xf32, #tpu.memory_space<vmem>>, %arg2: memref<2x4x4xf32, #tpu.memory_space<vmem>>, %arg3: memref<2x4xf32, #tpu.memory_space<vmem>>, %arg4: memref<16x1xf32, #tpu.memory_space<vmem>>, %arg5: memref<16x32xf32, #tpu.memory_space<vmem>>, %arg6: memref<2x32x128xf32, #tpu.memory_space<vmem>>, %arg7: memref<2x32x128xf32, #tpu.memory_space<vmem>>, %arg8: memref<2x1x128xf32, #tpu.memory_space<vmem>>, %arg9: memref<2x4x32xf32, #tpu.memory_space<vmem>>, %arg10: memref<2x1x32xf32, #tpu.memory_space<vmem>>, %arg11: memref<32x96xf32, #tpu.memory_space<vmem>>, %arg12: memref<1x96xf32, #tpu.memory_space<vmem>>, %arg13: memref<32x32xf32, #tpu.memory_space<vmem>>, %arg14: memref<8x32x32xf32, #tpu.memory_space<vmem>>, %arg15: memref<32x4xf32, #tpu.memory_space<vmem>>, %arg16: memref<1x4xf32, #tpu.memory_space<vmem>>, %arg17: memref<3x32xf32, #tpu.memory_space<vmem>>, %arg18: memref<2x4xf32, #tpu.memory_space<vmem>>, %arg19: memref<16x32xf32, #tpu.memory_space<vmem>>) attributes {dimension_semantics = [], scalar_prefetch = 0 : i64, scratch_operands = 1 : i64, tpu.core_type = #tpu.core_type<tc>} {
    %c0 = arith.constant 0 : index
    %c0_0 = arith.constant 0 : index
    %0 = vector.load %arg17[%c0, %c0_0] : memref<3x32xf32, #tpu.memory_space<vmem>>, vector<3x32xf32>
    %1 = vector.extract_strided_slice %0 {offsets = [0, 0], sizes = [1, 32], strides = [1, 1]} : vector<3x32xf32> to vector<1x32xf32>
    %2 = vector.extract_strided_slice %0 {offsets = [1, 0], sizes = [1, 32], strides = [1, 1]} : vector<3x32xf32> to vector<1x32xf32>
    %3 = vector.extract_strided_slice %0 {offsets = [2, 0], sizes = [1, 32], strides = [1, 1]} : vector<3x32xf32> to vector<1x32xf32>
    %c0_1 = arith.constant 0 : index
    %c0_2 = arith.constant 0 : index
    %4 = vector.load %arg0[%c0_1, %c0_2] : memref<16x16xf32, #tpu.memory_space<vmem>>, vector<16x16xf32>
    %c0_3 = arith.constant 0 : index
    %c0_4 = arith.constant 0 : index
    %5 = vector.load %arg5[%c0_3, %c0_4] : memref<16x32xf32, #tpu.memory_space<vmem>>, vector<16x32xf32>
    %cst = arith.constant dense<0.000000e+00> : vector<16x32xf32>
    %6 = tpu.matmul %4, %5, %cst {dimension_numbers = #tpu.dot_dimension_numbers<[1], [0], [0], [1], [0, 0, 1, 1], [], []>} : vector<16x16xf32>, vector<16x32xf32>, vector<16x32xf32> -> vector<16x32xf32>
    %7 = vector.broadcast %1 : vector<1x32xf32> to vector<16x32xf32>
    %8 = arith.addf %6, %7 : vector<16x32xf32>
    %cst_5 = arith.constant 0.000000e+00 : f32
    %9 = vector.broadcast %cst_5 : f32 to vector<16x32xf32>
    %10 = arith.maximumf %8, %9 : vector<16x32xf32>
    %c0_6 = arith.constant 0 : index
    %c0_7 = arith.constant 0 : index
    %11 = vector.load %arg19[%c0_6, %c0_7] : memref<16x32xf32, #tpu.memory_space<vmem>>, vector<16x32xf32>
    tpu.vector_store %arg19[%c0_6, %c0_7], %10 {strides = array<i32>} : memref<16x32xf32, #tpu.memory_space<vmem>>, vector<16x32xf32>,
    %c0_8 = arith.constant 0 : index
    %c0_9 = arith.constant 0 : index
    %12 = vector.load %arg4[%c0_8, %c0_9] : memref<16x1xf32, #tpu.memory_space<vmem>>, vector<16x1xf32>
    %c0_10 = arith.constant 0 : index
    %c0_11 = arith.constant 0 : index
    %c0_12 = arith.constant 0 : index
    %13 = vector.load %arg1[%c0_10, %c0_11, %c0_12] : memref<2x4x4xf32, #tpu.memory_space<vmem>>, vector<2x4x4xf32>
    %14 = tpu.concatenate %13, %13, %13, %13, %13, %13, %13, %13 in 0 : vector<2x4x4xf32>, vector<2x4x4xf32>, vector<2x4x4xf32>, vector<2x4x4xf32>, vector<2x4x4xf32>, vector<2x4x4xf32>, vector<2x4x4xf32>, vector<2x4x4xf32> -> vector<16x4x4xf32>
    %c0_13 = arith.constant 0 : index
    %c0_14 = arith.constant 0 : index
    %c0_15 = arith.constant 0 : index
    %15 = vector.load %arg2[%c0_13, %c0_14, %c0_15] : memref<2x4x4xf32, #tpu.memory_space<vmem>>, vector<2x4x4xf32>
    %16 = tpu.concatenate %15, %15, %15, %15, %15, %15, %15, %15 in 0 : vector<2x4x4xf32>, vector<2x4x4xf32>, vector<2x4x4xf32>, vector<2x4x4xf32>, vector<2x4x4xf32>, vector<2x4x4xf32>, vector<2x4x4xf32>, vector<2x4x4xf32> -> vector<16x4x4xf32>
    %c0_16 = arith.constant 0 : index
    %c0_17 = arith.constant 0 : index
    %17 = vector.load %arg3[%c0_16, %c0_17] : memref<2x4xf32, #tpu.memory_space<vmem>>, vector<2x4xf32>
    %18 = tpu.concatenate %17, %17, %17, %17, %17, %17, %17, %17 in 0 : vector<2x4xf32>, vector<2x4xf32>, vector<2x4xf32>, vector<2x4xf32>, vector<2x4xf32>, vector<2x4xf32>, vector<2x4xf32>, vector<2x4xf32> -> vector<16x4xf32>
    %cst_18 = arith.constant 0.000000e+00 : f32
    %19 = vector.broadcast %cst_18 : f32 to vector<16x4x4xf32>
    %20 = arith.subf %19, %16 : vector<16x4x4xf32>
    %21 = vector.shape_cast %12 : vector<16x1xf32> to vector<16x1x1xf32>
    %22 = vector.broadcast %21 : vector<16x1x1xf32> to vector<16x4x4xf32>
    %23 = arith.mulf %20, %22 : vector<16x4x4xf32>
    %24 = math.exp %23 : vector<16x4x4xf32>
    %25 = arith.mulf %14, %24 : vector<16x4x4xf32>
    %cst_19 = arith.constant dense<0.000000e+00> : vector<16x4xf32>
    %26 = vector.multi_reduction <add>, %25, %cst_19 [2] : vector<16x4x4xf32> to vector<16x4xf32>
    %27 = arith.addf %18, %26 : vector<16x4xf32>
    %cst_20 = arith.constant 0.000000e+00 : f32
    %28 = vector.broadcast %cst_20 : f32 to vector<2x32xf32>
    %cst_21 = arith.constant 0.000000e+00 : f32
    %29 = vector.broadcast %cst_21 : f32 to vector<2x32xf32>
    %c0_22 = arith.constant 0 : index
    %c0_23 = arith.constant 0 : index
    %c0_24 = arith.constant 0 : index
    %30 = vector.load %arg9[%c0_22, %c0_23, %c0_24] : memref<2x4x32xf32, #tpu.memory_space<vmem>>, vector<1x4x32xf32>
    %31 = vector.shape_cast %30 : vector<1x4x32xf32> to vector<4x32xf32>
    %cst_25 = arith.constant dense<0.000000e+00> : vector<16x32xf32>
    %32 = tpu.matmul %27, %31, %cst_25 {dimension_numbers = #tpu.dot_dimension_numbers<[1], [0], [0], [1], [0, 0, 1, 1], [], []>} : vector<16x4xf32>, vector<4x32xf32>, vector<16x32xf32> -> vector<16x32xf32>
    %c0_26 = arith.constant 0 : index
    %c0_27 = arith.constant 0 : index
    %c0_28 = arith.constant 0 : index
    %33 = vector.load %arg10[%c0_26, %c0_27, %c0_28] : memref<2x1x32xf32, #tpu.memory_space<vmem>>, vector<1x1x32xf32>
    %34 = vector.shape_cast %33 : vector<1x1x32xf32> to vector<1x32xf32>
    %35 = vector.broadcast %34 : vector<1x32xf32> to vector<16x32xf32>
    %36 = arith.addf %32, %35 : vector<16x32xf32>
    %37 = arith.negf %36 : vector<16x32xf32>
    %38 = math.exp %37 : vector<16x32xf32>
    %cst_29 = arith.constant 1.000000e+00 : f32
    %39 = vector.broadcast %cst_29 : f32 to vector<16x32xf32>
    %40 = arith.addf %39, %38 : vector<16x32xf32>
    %41 = arith.divf %39, %40 : vector<16x32xf32>
    %c0_30 = arith.constant 0 : index
    %c0_31 = arith.constant 0 : index
    %42 = vector.load %arg19[%c0_30, %c0_31] : memref<16x32xf32, #tpu.memory_space<vmem>>, vector<16x32xf32>
    %c0_32 = arith.constant 0 : index
    %c0_33 = arith.constant 0 : index
    %c0_34 = arith.constant 0 : index
    %43 = vector.load %arg6[%c0_32, %c0_33, %c0_34] : memref<2x32x128xf32, #tpu.memory_space<vmem>>, vector<1x32x128xf32>
    %44 = vector.shape_cast %43 : vector<1x32x128xf32> to vector<32x128xf32>
    %cst_35 = arith.constant dense<0.000000e+00> : vector<16x128xf32>
    %45 = tpu.matmul %42, %44, %cst_35 {dimension_numbers = #tpu.dot_dimension_numbers<[1], [0], [0], [1], [0, 0, 1, 1], [], []>} : vector<16x32xf32>, vector<32x128xf32>, vector<16x128xf32> -> vector<16x128xf32>
    %c0_36 = arith.constant 0 : index
    %c0_37 = arith.constant 0 : index
    %c0_38 = arith.constant 0 : index
    %46 = vector.load %arg8[%c0_36, %c0_37, %c0_38] : memref<2x1x128xf32, #tpu.memory_space<vmem>>, vector<1x1x128xf32>
    %47 = vector.shape_cast %46 : vector<1x1x128xf32> to vector<1x128xf32>
    %48 = vector.broadcast %47 : vector<1x128xf32> to vector<16x128xf32>
    %49 = arith.addf %45, %48 : vector<16x128xf32>
    %c0_39 = arith.constant 0 : index
    %c0_40 = arith.constant 0 : index
    %c0_41 = arith.constant 0 : index
    %50 = vector.load %arg7[%c0_39, %c0_40, %c0_41] : memref<2x32x128xf32, #tpu.memory_space<vmem>>, vector<1x32x128xf32>
    %51 = vector.shape_cast %50 : vector<1x32x128xf32> to vector<32x128xf32>
    %52 = vector.extract_strided_slice %49 {offsets = [0, 0], sizes = [2, 128], strides = [1, 1]} : vector<16x128xf32> to vector<2x128xf32>
    %cst_42 = arith.constant dense<0.000000e+00> : vector<2x128xf32>
    %53 = tpu.matmul %28, %51, %cst_42 {dimension_numbers = #tpu.dot_dimension_numbers<[1], [0], [0], [1], [0, 0, 1, 1], [], []>} : vector<2x32xf32>, vector<32x128xf32>, vector<2x128xf32> -> vector<2x128xf32>
    %54 = arith.addf %52, %53 : vector<2x128xf32>
    %55 = arith.negf %54 : vector<2x128xf32>
    %56 = math.exp %55 : vector<2x128xf32>
    %cst_43 = arith.constant 1.000000e+00 : f32
    %57 = vector.broadcast %cst_43 : f32 to vector<2x128xf32>
    %58 = arith.addf %57, %56 : vector<2x128xf32>
    %59 = arith.divf %57, %58 : vector<2x128xf32>
    %60 = vector.extract_strided_slice %59 {offsets = [0, 0], sizes = [2, 32], strides = [1, 1]} : vector<2x128xf32> to vector<2x32xf32>
    %61 = vector.extract_strided_slice %59 {offsets = [0, 32], sizes = [2, 32], strides = [1, 1]} : vector<2x128xf32> to vector<2x32xf32>
    %62 = vector.extract_strided_slice %59 {offsets = [0, 96], sizes = [2, 32], strides = [1, 1]} : vector<2x128xf32> to vector<2x32xf32>
    %63 = vector.extract_strided_slice %54 {offsets = [0, 64], sizes = [2, 32], strides = [1, 1]} : vector<2x128xf32> to vector<2x32xf32>
    %64 = math.tanh %63 : vector<2x32xf32>
    %65 = arith.mulf %61, %29 : vector<2x32xf32>
    %66 = arith.mulf %60, %64 : vector<2x32xf32>
    %67 = vector.extract_strided_slice %41 {offsets = [0, 0], sizes = [2, 32], strides = [1, 1]} : vector<16x32xf32> to vector<2x32xf32>
    %68 = arith.mulf %66, %67 : vector<2x32xf32>
    %69 = arith.addf %65, %68 : vector<2x32xf32>
    %70 = math.tanh %69 : vector<2x32xf32>
    %71 = arith.mulf %62, %70 : vector<2x32xf32>
    %c0_44 = arith.constant 0 : index
    %c0_45 = arith.constant 0 : index
    %72 = vector.load %arg19[%c0_44, %c0_45] : memref<16x32xf32, #tpu.memory_space<vmem>>, vector<2x32xf32>
    tpu.vector_store %arg19[%c0_44, %c0_45], %71 {strides = array<i32>} : memref<16x32xf32, #tpu.memory_space<vmem>>, vector<2x32xf32>,
    %73 = vector.extract_strided_slice %49 {offsets = [2, 0], sizes = [2, 128], strides = [1, 1]} : vector<16x128xf32> to vector<2x128xf32>
    %cst_46 = arith.constant dense<0.000000e+00> : vector<2x128xf32>
    %74 = tpu.matmul %71, %51, %cst_46 {dimension_numbers = #tpu.dot_dimension_numbers<[1], [0], [0], [1], [0, 0, 1, 1], [], []>} : vector<2x32xf32>, vector<32x128xf32>, vector<2x128xf32> -> vector<2x128xf32>
    %75 = arith.addf %73, %74 : vector<2x128xf32>
    %76 = arith.negf %75 : vector<2x128xf32>
    %77 = math.exp %76 : vector<2x128xf32>
    %cst_47 = arith.constant 1.000000e+00 : f32
    %78 = vector.broadcast %cst_47 : f32 to vector<2x128xf32>
    %79 = arith.addf %78, %77 : vector<2x128xf32>
    %80 = arith.divf %78, %79 : vector<2x128xf32>
    %81 = vector.extract_strided_slice %80 {offsets = [0, 0], sizes = [2, 32], strides = [1, 1]} : vector<2x128xf32> to vector<2x32xf32>
    %82 = vector.extract_strided_slice %80 {offsets = [0, 32], sizes = [2, 32], strides = [1, 1]} : vector<2x128xf32> to vector<2x32xf32>
    %83 = vector.extract_strided_slice %80 {offsets = [0, 96], sizes = [2, 32], strides = [1, 1]} : vector<2x128xf32> to vector<2x32xf32>
    %84 = vector.extract_strided_slice %75 {offsets = [0, 64], sizes = [2, 32], strides = [1, 1]} : vector<2x128xf32> to vector<2x32xf32>
    %85 = math.tanh %84 : vector<2x32xf32>
    %86 = arith.mulf %82, %69 : vector<2x32xf32>
    %87 = arith.mulf %81, %85 : vector<2x32xf32>
    %88 = vector.extract_strided_slice %41 {offsets = [2, 0], sizes = [2, 32], strides = [1, 1]} : vector<16x32xf32> to vector<2x32xf32>
    %89 = arith.mulf %87, %88 : vector<2x32xf32>
    %90 = arith.addf %86, %89 : vector<2x32xf32>
    %91 = math.tanh %90 : vector<2x32xf32>
    %92 = arith.mulf %83, %91 : vector<2x32xf32>
    %c2 = arith.constant 2 : index
    %c0_48 = arith.constant 0 : index
    %93 = vector.load %arg19[%c2, %c0_48] : memref<16x32xf32, #tpu.memory_space<vmem>>, vector<2x32xf32>
    tpu.vector_store %arg19[%c2, %c0_48], %92 {strides = array<i32>} : memref<16x32xf32, #tpu.memory_space<vmem>>, vector<2x32xf32>,
    %94 = vector.extract_strided_slice %49 {offsets = [4, 0], sizes = [2, 128], strides = [1, 1]} : vector<16x128xf32> to vector<2x128xf32>
    %cst_49 = arith.constant dense<0.000000e+00> : vector<2x128xf32>
    %95 = tpu.matmul %92, %51, %cst_49 {dimension_numbers = #tpu.dot_dimension_numbers<[1], [0], [0], [1], [0, 0, 1, 1], [], []>} : vector<2x32xf32>, vector<32x128xf32>, vector<2x128xf32> -> vector<2x128xf32>
    %96 = arith.addf %94, %95 : vector<2x128xf32>
    %97 = arith.negf %96 : vector<2x128xf32>
    %98 = math.exp %97 : vector<2x128xf32>
    %cst_50 = arith.constant 1.000000e+00 : f32
    %99 = vector.broadcast %cst_50 : f32 to vector<2x128xf32>
    %100 = arith.addf %99, %98 : vector<2x128xf32>
    %101 = arith.divf %99, %100 : vector<2x128xf32>
    %102 = vector.extract_strided_slice %101 {offsets = [0, 0], sizes = [2, 32], strides = [1, 1]} : vector<2x128xf32> to vector<2x32xf32>
    %103 = vector.extract_strided_slice %101 {offsets = [0, 32], sizes = [2, 32], strides = [1, 1]} : vector<2x128xf32> to vector<2x32xf32>
    %104 = vector.extract_strided_slice %101 {offsets = [0, 96], sizes = [2, 32], strides = [1, 1]} : vector<2x128xf32> to vector<2x32xf32>
    %105 = vector.extract_strided_slice %96 {offsets = [0, 64], sizes = [2, 32], strides = [1, 1]} : vector<2x128xf32> to vector<2x32xf32>
    %106 = math.tanh %105 : vector<2x32xf32>
    %107 = arith.mulf %103, %90 : vector<2x32xf32>
    %108 = arith.mulf %102, %106 : vector<2x32xf32>
    %109 = vector.extract_strided_slice %41 {offsets = [4, 0], sizes = [2, 32], strides = [1, 1]} : vector<16x32xf32> to vector<2x32xf32>
    %110 = arith.mulf %108, %109 : vector<2x32xf32>
    %111 = arith.addf %107, %110 : vector<2x32xf32>
    %112 = math.tanh %111 : vector<2x32xf32>
    %113 = arith.mulf %104, %112 : vector<2x32xf32>
    %c4 = arith.constant 4 : index
    %c0_51 = arith.constant 0 : index
    %114 = vector.load %arg19[%c4, %c0_51] : memref<16x32xf32, #tpu.memory_space<vmem>>, vector<2x32xf32>
    tpu.vector_store %arg19[%c4, %c0_51], %113 {strides = array<i32>} : memref<16x32xf32, #tpu.memory_space<vmem>>, vector<2x32xf32>,
    %115 = vector.extract_strided_slice %49 {offsets = [6, 0], sizes = [2, 128], strides = [1, 1]} : vector<16x128xf32> to vector<2x128xf32>
    %cst_52 = arith.constant dense<0.000000e+00> : vector<2x128xf32>
    %116 = tpu.matmul %113, %51, %cst_52 {dimension_numbers = #tpu.dot_dimension_numbers<[1], [0], [0], [1], [0, 0, 1, 1], [], []>} : vector<2x32xf32>, vector<32x128xf32>, vector<2x128xf32> -> vector<2x128xf32>
    %117 = arith.addf %115, %116 : vector<2x128xf32>
    %118 = arith.negf %117 : vector<2x128xf32>
    %119 = math.exp %118 : vector<2x128xf32>
    %cst_53 = arith.constant 1.000000e+00 : f32
    %120 = vector.broadcast %cst_53 : f32 to vector<2x128xf32>
    %121 = arith.addf %120, %119 : vector<2x128xf32>
    %122 = arith.divf %120, %121 : vector<2x128xf32>
    %123 = vector.extract_strided_slice %122 {offsets = [0, 0], sizes = [2, 32], strides = [1, 1]} : vector<2x128xf32> to vector<2x32xf32>
    %124 = vector.extract_strided_slice %122 {offsets = [0, 32], sizes = [2, 32], strides = [1, 1]} : vector<2x128xf32> to vector<2x32xf32>
    %125 = vector.extract_strided_slice %122 {offsets = [0, 96], sizes = [2, 32], strides = [1, 1]} : vector<2x128xf32> to vector<2x32xf32>
    %126 = vector.extract_strided_slice %117 {offsets = [0, 64], sizes = [2, 32], strides = [1, 1]} : vector<2x128xf32> to vector<2x32xf32>
    %127 = math.tanh %126 : vector<2x32xf32>
    %128 = arith.mulf %124, %111 : vector<2x32xf32>
    %129 = arith.mulf %123, %127 : vector<2x32xf32>
    %130 = vector.extract_strided_slice %41 {offsets = [6, 0], sizes = [2, 32], strides = [1, 1]} : vector<16x32xf32> to vector<2x32xf32>
    %131 = arith.mulf %129, %130 : vector<2x32xf32>
    %132 = arith.addf %128, %131 : vector<2x32xf32>
    %133 = math.tanh %132 : vector<2x32xf32>
    %134 = arith.mulf %125, %133 : vector<2x32xf32>
    %c6 = arith.constant 6 : index
    %c0_54 = arith.constant 0 : index
    %135 = vector.load %arg19[%c6, %c0_54] : memref<16x32xf32, #tpu.memory_space<vmem>>, vector<2x32xf32>
    tpu.vector_store %arg19[%c6, %c0_54], %134 {strides = array<i32>} : memref<16x32xf32, #tpu.memory_space<vmem>>, vector<2x32xf32>,
    %136 = vector.extract_strided_slice %49 {offsets = [8, 0], sizes = [2, 128], strides = [1, 1]} : vector<16x128xf32> to vector<2x128xf32>
    %cst_55 = arith.constant dense<0.000000e+00> : vector<2x128xf32>
    %137 = tpu.matmul %134, %51, %cst_55 {dimension_numbers = #tpu.dot_dimension_numbers<[1], [0], [0], [1], [0, 0, 1, 1], [], []>} : vector<2x32xf32>, vector<32x128xf32>, vector<2x128xf32> -> vector<2x128xf32>
    %138 = arith.addf %136, %137 : vector<2x128xf32>
    %139 = arith.negf %138 : vector<2x128xf32>
    %140 = math.exp %139 : vector<2x128xf32>
    %cst_56 = arith.constant 1.000000e+00 : f32
    %141 = vector.broadcast %cst_56 : f32 to vector<2x128xf32>
    %142 = arith.addf %141, %140 : vector<2x128xf32>
    %143 = arith.divf %141, %142 : vector<2x128xf32>
    %144 = vector.extract_strided_slice %143 {offsets = [0, 0], sizes = [2, 32], strides = [1, 1]} : vector<2x128xf32> to vector<2x32xf32>
    %145 = vector.extract_strided_slice %143 {offsets = [0, 32], sizes = [2, 32], strides = [1, 1]} : vector<2x128xf32> to vector<2x32xf32>
    %146 = vector.extract_strided_slice %143 {offsets = [0, 96], sizes = [2, 32], strides = [1, 1]} : vector<2x128xf32> to vector<2x32xf32>
    %147 = vector.extract_strided_slice %138 {offsets = [0, 64], sizes = [2, 32], strides = [1, 1]} : vector<2x128xf32> to vector<2x32xf32>
    %148 = math.tanh %147 : vector<2x32xf32>
    %149 = arith.mulf %145, %132 : vector<2x32xf32>
    %150 = arith.mulf %144, %148 : vector<2x32xf32>
    %151 = vector.extract_strided_slice %41 {offsets = [8, 0], sizes = [2, 32], strides = [1, 1]} : vector<16x32xf32> to vector<2x32xf32>
    %152 = arith.mulf %150, %151 : vector<2x32xf32>
    %153 = arith.addf %149, %152 : vector<2x32xf32>
    %154 = math.tanh %153 : vector<2x32xf32>
    %155 = arith.mulf %146, %154 : vector<2x32xf32>
    %c8 = arith.constant 8 : index
    %c0_57 = arith.constant 0 : index
    %156 = vector.load %arg19[%c8, %c0_57] : memref<16x32xf32, #tpu.memory_space<vmem>>, vector<2x32xf32>
    tpu.vector_store %arg19[%c8, %c0_57], %155 {strides = array<i32>} : memref<16x32xf32, #tpu.memory_space<vmem>>, vector<2x32xf32>,
    %157 = vector.extract_strided_slice %49 {offsets = [10, 0], sizes = [2, 128], strides = [1, 1]} : vector<16x128xf32> to vector<2x128xf32>
    %cst_58 = arith.constant dense<0.000000e+00> : vector<2x128xf32>
    %158 = tpu.matmul %155, %51, %cst_58 {dimension_numbers = #tpu.dot_dimension_numbers<[1], [0], [0], [1], [0, 0, 1, 1], [], []>} : vector<2x32xf32>, vector<32x128xf32>, vector<2x128xf32> -> vector<2x128xf32>
    %159 = arith.addf %157, %158 : vector<2x128xf32>
    %160 = arith.negf %159 : vector<2x128xf32>
    %161 = math.exp %160 : vector<2x128xf32>
    %cst_59 = arith.constant 1.000000e+00 : f32
    %162 = vector.broadcast %cst_59 : f32 to vector<2x128xf32>
    %163 = arith.addf %162, %161 : vector<2x128xf32>
    %164 = arith.divf %162, %163 : vector<2x128xf32>
    %165 = vector.extract_strided_slice %164 {offsets = [0, 0], sizes = [2, 32], strides = [1, 1]} : vector<2x128xf32> to vector<2x32xf32>
    %166 = vector.extract_strided_slice %164 {offsets = [0, 32], sizes = [2, 32], strides = [1, 1]} : vector<2x128xf32> to vector<2x32xf32>
    %167 = vector.extract_strided_slice %164 {offsets = [0, 96], sizes = [2, 32], strides = [1, 1]} : vector<2x128xf32> to vector<2x32xf32>
    %168 = vector.extract_strided_slice %159 {offsets = [0, 64], sizes = [2, 32], strides = [1, 1]} : vector<2x128xf32> to vector<2x32xf32>
    %169 = math.tanh %168 : vector<2x32xf32>
    %170 = arith.mulf %166, %153 : vector<2x32xf32>
    %171 = arith.mulf %165, %169 : vector<2x32xf32>
    %172 = vector.extract_strided_slice %41 {offsets = [10, 0], sizes = [2, 32], strides = [1, 1]} : vector<16x32xf32> to vector<2x32xf32>
    %173 = arith.mulf %171, %172 : vector<2x32xf32>
    %174 = arith.addf %170, %173 : vector<2x32xf32>
    %175 = math.tanh %174 : vector<2x32xf32>
    %176 = arith.mulf %167, %175 : vector<2x32xf32>
    %c10 = arith.constant 10 : index
    %c0_60 = arith.constant 0 : index
    %177 = vector.load %arg19[%c10, %c0_60] : memref<16x32xf32, #tpu.memory_space<vmem>>, vector<2x32xf32>
    tpu.vector_store %arg19[%c10, %c0_60], %176 {strides = array<i32>} : memref<16x32xf32, #tpu.memory_space<vmem>>, vector<2x32xf32>,
    %178 = vector.extract_strided_slice %49 {offsets = [12, 0], sizes = [2, 128], strides = [1, 1]} : vector<16x128xf32> to vector<2x128xf32>
    %cst_61 = arith.constant dense<0.000000e+00> : vector<2x128xf32>
    %179 = tpu.matmul %176, %51, %cst_61 {dimension_numbers = #tpu.dot_dimension_numbers<[1], [0], [0], [1], [0, 0, 1, 1], [], []>} : vector<2x32xf32>, vector<32x128xf32>, vector<2x128xf32> -> vector<2x128xf32>
    %180 = arith.addf %178, %179 : vector<2x128xf32>
    %181 = arith.negf %180 : vector<2x128xf32>
    %182 = math.exp %181 : vector<2x128xf32>
    %cst_62 = arith.constant 1.000000e+00 : f32
    %183 = vector.broadcast %cst_62 : f32 to vector<2x128xf32>
    %184 = arith.addf %183, %182 : vector<2x128xf32>
    %185 = arith.divf %183, %184 : vector<2x128xf32>
    %186 = vector.extract_strided_slice %185 {offsets = [0, 0], sizes = [2, 32], strides = [1, 1]} : vector<2x128xf32> to vector<2x32xf32>
    %187 = vector.extract_strided_slice %185 {offsets = [0, 32], sizes = [2, 32], strides = [1, 1]} : vector<2x128xf32> to vector<2x32xf32>
    %188 = vector.extract_strided_slice %185 {offsets = [0, 96], sizes = [2, 32], strides = [1, 1]} : vector<2x128xf32> to vector<2x32xf32>
    %189 = vector.extract_strided_slice %180 {offsets = [0, 64], sizes = [2, 32], strides = [1, 1]} : vector<2x128xf32> to vector<2x32xf32>
    %190 = math.tanh %189 : vector<2x32xf32>
    %191 = arith.mulf %187, %174 : vector<2x32xf32>
    %192 = arith.mulf %186, %190 : vector<2x32xf32>
    %193 = vector.extract_strided_slice %41 {offsets = [12, 0], sizes = [2, 32], strides = [1, 1]} : vector<16x32xf32> to vector<2x32xf32>
    %194 = arith.mulf %192, %193 : vector<2x32xf32>
    %195 = arith.addf %191, %194 : vector<2x32xf32>
    %196 = math.tanh %195 : vector<2x32xf32>
    %197 = arith.mulf %188, %196 : vector<2x32xf32>
    %c12 = arith.constant 12 : index
    %c0_63 = arith.constant 0 : index
    %198 = vector.load %arg19[%c12, %c0_63] : memref<16x32xf32, #tpu.memory_space<vmem>>, vector<2x32xf32>
    tpu.vector_store %arg19[%c12, %c0_63], %197 {strides = array<i32>} : memref<16x32xf32, #tpu.memory_space<vmem>>, vector<2x32xf32>,
    %199 = vector.extract_strided_slice %49 {offsets = [14, 0], sizes = [2, 128], strides = [1, 1]} : vector<16x128xf32> to vector<2x128xf32>
    %cst_64 = arith.constant dense<0.000000e+00> : vector<2x128xf32>
    %200 = tpu.matmul %197, %51, %cst_64 {dimension_numbers = #tpu.dot_dimension_numbers<[1], [0], [0], [1], [0, 0, 1, 1], [], []>} : vector<2x32xf32>, vector<32x128xf32>, vector<2x128xf32> -> vector<2x128xf32>
    %201 = arith.addf %199, %200 : vector<2x128xf32>
    %202 = arith.negf %201 : vector<2x128xf32>
    %203 = math.exp %202 : vector<2x128xf32>
    %cst_65 = arith.constant 1.000000e+00 : f32
    %204 = vector.broadcast %cst_65 : f32 to vector<2x128xf32>
    %205 = arith.addf %204, %203 : vector<2x128xf32>
    %206 = arith.divf %204, %205 : vector<2x128xf32>
    %207 = vector.extract_strided_slice %206 {offsets = [0, 0], sizes = [2, 32], strides = [1, 1]} : vector<2x128xf32> to vector<2x32xf32>
    %208 = vector.extract_strided_slice %206 {offsets = [0, 32], sizes = [2, 32], strides = [1, 1]} : vector<2x128xf32> to vector<2x32xf32>
    %209 = vector.extract_strided_slice %206 {offsets = [0, 96], sizes = [2, 32], strides = [1, 1]} : vector<2x128xf32> to vector<2x32xf32>
    %210 = vector.extract_strided_slice %201 {offsets = [0, 64], sizes = [2, 32], strides = [1, 1]} : vector<2x128xf32> to vector<2x32xf32>
    %211 = math.tanh %210 : vector<2x32xf32>
    %212 = arith.mulf %208, %195 : vector<2x32xf32>
    %213 = arith.mulf %207, %211 : vector<2x32xf32>
    %214 = vector.extract_strided_slice %41 {offsets = [14, 0], sizes = [2, 32], strides = [1, 1]} : vector<16x32xf32> to vector<2x32xf32>
    %215 = arith.mulf %213, %214 : vector<2x32xf32>
    %216 = arith.addf %212, %215 : vector<2x32xf32>
    %217 = math.tanh %216 : vector<2x32xf32>
    %218 = arith.mulf %209, %217 : vector<2x32xf32>
    %c14 = arith.constant 14 : index
    %c0_66 = arith.constant 0 : index
    %219 = vector.load %arg19[%c14, %c0_66] : memref<16x32xf32, #tpu.memory_space<vmem>>, vector<2x32xf32>
    tpu.vector_store %arg19[%c14, %c0_66], %218 {strides = array<i32>} : memref<16x32xf32, #tpu.memory_space<vmem>>, vector<2x32xf32>,
    %c1 = arith.constant 1 : index
    %c0_67 = arith.constant 0 : index
    %c0_68 = arith.constant 0 : index
    %220 = vector.load %arg9[%c1, %c0_67, %c0_68] : memref<2x4x32xf32, #tpu.memory_space<vmem>>, vector<1x4x32xf32>
    %221 = vector.shape_cast %220 : vector<1x4x32xf32> to vector<4x32xf32>
    %cst_69 = arith.constant dense<0.000000e+00> : vector<16x32xf32>
    %222 = tpu.matmul %27, %221, %cst_69 {dimension_numbers = #tpu.dot_dimension_numbers<[1], [0], [0], [1], [0, 0, 1, 1], [], []>} : vector<16x4xf32>, vector<4x32xf32>, vector<16x32xf32> -> vector<16x32xf32>
    %c1_70 = arith.constant 1 : index
    %c0_71 = arith.constant 0 : index
    %c0_72 = arith.constant 0 : index
    %223 = vector.load %arg10[%c1_70, %c0_71, %c0_72] : memref<2x1x32xf32, #tpu.memory_space<vmem>>, vector<1x1x32xf32>
    %224 = vector.shape_cast %223 : vector<1x1x32xf32> to vector<1x32xf32>
    %225 = vector.broadcast %224 : vector<1x32xf32> to vector<16x32xf32>
    %226 = arith.addf %222, %225 : vector<16x32xf32>
    %227 = arith.negf %226 : vector<16x32xf32>
    %228 = math.exp %227 : vector<16x32xf32>
    %cst_73 = arith.constant 1.000000e+00 : f32
    %229 = vector.broadcast %cst_73 : f32 to vector<16x32xf32>
    %230 = arith.addf %229, %228 : vector<16x32xf32>
    %231 = arith.divf %229, %230 : vector<16x32xf32>
    %c0_74 = arith.constant 0 : index
    %c0_75 = arith.constant 0 : index
    %232 = vector.load %arg19[%c0_74, %c0_75] : memref<16x32xf32, #tpu.memory_space<vmem>>, vector<16x32xf32>
    %c1_76 = arith.constant 1 : index
    %c0_77 = arith.constant 0 : index
    %c0_78 = arith.constant 0 : index
    %233 = vector.load %arg6[%c1_76, %c0_77, %c0_78] : memref<2x32x128xf32, #tpu.memory_space<vmem>>, vector<1x32x128xf32>
    %234 = vector.shape_cast %233 : vector<1x32x128xf32> to vector<32x128xf32>
    %cst_79 = arith.constant dense<0.000000e+00> : vector<16x128xf32>
    %235 = tpu.matmul %232, %234, %cst_79 {dimension_numbers = #tpu.dot_dimension_numbers<[1], [0], [0], [1], [0, 0, 1, 1], [], []>} : vector<16x32xf32>, vector<32x128xf32>, vector<16x128xf32> -> vector<16x128xf32>
    %c1_80 = arith.constant 1 : index
    %c0_81 = arith.constant 0 : index
    %c0_82 = arith.constant 0 : index
    %236 = vector.load %arg8[%c1_80, %c0_81, %c0_82] : memref<2x1x128xf32, #tpu.memory_space<vmem>>, vector<1x1x128xf32>
    %237 = vector.shape_cast %236 : vector<1x1x128xf32> to vector<1x128xf32>
    %238 = vector.broadcast %237 : vector<1x128xf32> to vector<16x128xf32>
    %239 = arith.addf %235, %238 : vector<16x128xf32>
    %c1_83 = arith.constant 1 : index
    %c0_84 = arith.constant 0 : index
    %c0_85 = arith.constant 0 : index
    %240 = vector.load %arg7[%c1_83, %c0_84, %c0_85] : memref<2x32x128xf32, #tpu.memory_space<vmem>>, vector<1x32x128xf32>
    %241 = vector.shape_cast %240 : vector<1x32x128xf32> to vector<32x128xf32>
    %242 = vector.extract_strided_slice %239 {offsets = [0, 0], sizes = [2, 128], strides = [1, 1]} : vector<16x128xf32> to vector<2x128xf32>
    %cst_86 = arith.constant dense<0.000000e+00> : vector<2x128xf32>
    %243 = tpu.matmul %218, %241, %cst_86 {dimension_numbers = #tpu.dot_dimension_numbers<[1], [0], [0], [1], [0, 0, 1, 1], [], []>} : vector<2x32xf32>, vector<32x128xf32>, vector<2x128xf32> -> vector<2x128xf32>
    %244 = arith.addf %242, %243 : vector<2x128xf32>
    %245 = arith.negf %244 : vector<2x128xf32>
    %246 = math.exp %245 : vector<2x128xf32>
    %cst_87 = arith.constant 1.000000e+00 : f32
    %247 = vector.broadcast %cst_87 : f32 to vector<2x128xf32>
    %248 = arith.addf %247, %246 : vector<2x128xf32>
    %249 = arith.divf %247, %248 : vector<2x128xf32>
    %250 = vector.extract_strided_slice %249 {offsets = [0, 0], sizes = [2, 32], strides = [1, 1]} : vector<2x128xf32> to vector<2x32xf32>
    %251 = vector.extract_strided_slice %249 {offsets = [0, 32], sizes = [2, 32], strides = [1, 1]} : vector<2x128xf32> to vector<2x32xf32>
    %252 = vector.extract_strided_slice %249 {offsets = [0, 96], sizes = [2, 32], strides = [1, 1]} : vector<2x128xf32> to vector<2x32xf32>
    %253 = vector.extract_strided_slice %244 {offsets = [0, 64], sizes = [2, 32], strides = [1, 1]} : vector<2x128xf32> to vector<2x32xf32>
    %254 = math.tanh %253 : vector<2x32xf32>
    %255 = arith.mulf %251, %216 : vector<2x32xf32>
    %256 = arith.mulf %250, %254 : vector<2x32xf32>
    %257 = vector.extract_strided_slice %231 {offsets = [0, 0], sizes = [2, 32], strides = [1, 1]} : vector<16x32xf32> to vector<2x32xf32>
    %258 = arith.mulf %256, %257 : vector<2x32xf32>
    %259 = arith.addf %255, %258 : vector<2x32xf32>
    %260 = math.tanh %259 : vector<2x32xf32>
    %261 = arith.mulf %252, %260 : vector<2x32xf32>
    %c0_88 = arith.constant 0 : index
    %c0_89 = arith.constant 0 : index
    %262 = vector.load %arg19[%c0_88, %c0_89] : memref<16x32xf32, #tpu.memory_space<vmem>>, vector<2x32xf32>
    tpu.vector_store %arg19[%c0_88, %c0_89], %261 {strides = array<i32>} : memref<16x32xf32, #tpu.memory_space<vmem>>, vector<2x32xf32>,
    %263 = vector.extract_strided_slice %239 {offsets = [2, 0], sizes = [2, 128], strides = [1, 1]} : vector<16x128xf32> to vector<2x128xf32>
    %cst_90 = arith.constant dense<0.000000e+00> : vector<2x128xf32>
    %264 = tpu.matmul %261, %241, %cst_90 {dimension_numbers = #tpu.dot_dimension_numbers<[1], [0], [0], [1], [0, 0, 1, 1], [], []>} : vector<2x32xf32>, vector<32x128xf32>, vector<2x128xf32> -> vector<2x128xf32>
    %265 = arith.addf %263, %264 : vector<2x128xf32>
    %266 = arith.negf %265 : vector<2x128xf32>
    %267 = math.exp %266 : vector<2x128xf32>
    %cst_91 = arith.constant 1.000000e+00 : f32
    %268 = vector.broadcast %cst_91 : f32 to vector<2x128xf32>
    %269 = arith.addf %268, %267 : vector<2x128xf32>
    %270 = arith.divf %268, %269 : vector<2x128xf32>
    %271 = vector.extract_strided_slice %270 {offsets = [0, 0], sizes = [2, 32], strides = [1, 1]} : vector<2x128xf32> to vector<2x32xf32>
    %272 = vector.extract_strided_slice %270 {offsets = [0, 32], sizes = [2, 32], strides = [1, 1]} : vector<2x128xf32> to vector<2x32xf32>
    %273 = vector.extract_strided_slice %270 {offsets = [0, 96], sizes = [2, 32], strides = [1, 1]} : vector<2x128xf32> to vector<2x32xf32>
    %274 = vector.extract_strided_slice %265 {offsets = [0, 64], sizes = [2, 32], strides = [1, 1]} : vector<2x128xf32> to vector<2x32xf32>
    %275 = math.tanh %274 : vector<2x32xf32>
    %276 = arith.mulf %272, %259 : vector<2x32xf32>
    %277 = arith.mulf %271, %275 : vector<2x32xf32>
    %278 = vector.extract_strided_slice %231 {offsets = [2, 0], sizes = [2, 32], strides = [1, 1]} : vector<16x32xf32> to vector<2x32xf32>
    %279 = arith.mulf %277, %278 : vector<2x32xf32>
    %280 = arith.addf %276, %279 : vector<2x32xf32>
    %281 = math.tanh %280 : vector<2x32xf32>
    %282 = arith.mulf %273, %281 : vector<2x32xf32>
    %c2_92 = arith.constant 2 : index
    %c0_93 = arith.constant 0 : index
    %283 = vector.load %arg19[%c2_92, %c0_93] : memref<16x32xf32, #tpu.memory_space<vmem>>, vector<2x32xf32>
    tpu.vector_store %arg19[%c2_92, %c0_93], %282 {strides = array<i32>} : memref<16x32xf32, #tpu.memory_space<vmem>>, vector<2x32xf32>,
    %284 = vector.extract_strided_slice %239 {offsets = [4, 0], sizes = [2, 128], strides = [1, 1]} : vector<16x128xf32> to vector<2x128xf32>
    %cst_94 = arith.constant dense<0.000000e+00> : vector<2x128xf32>
    %285 = tpu.matmul %282, %241, %cst_94 {dimension_numbers = #tpu.dot_dimension_numbers<[1], [0], [0], [1], [0, 0, 1, 1], [], []>} : vector<2x32xf32>, vector<32x128xf32>, vector<2x128xf32> -> vector<2x128xf32>
    %286 = arith.addf %284, %285 : vector<2x128xf32>
    %287 = arith.negf %286 : vector<2x128xf32>
    %288 = math.exp %287 : vector<2x128xf32>
    %cst_95 = arith.constant 1.000000e+00 : f32
    %289 = vector.broadcast %cst_95 : f32 to vector<2x128xf32>
    %290 = arith.addf %289, %288 : vector<2x128xf32>
    %291 = arith.divf %289, %290 : vector<2x128xf32>
    %292 = vector.extract_strided_slice %291 {offsets = [0, 0], sizes = [2, 32], strides = [1, 1]} : vector<2x128xf32> to vector<2x32xf32>
    %293 = vector.extract_strided_slice %291 {offsets = [0, 32], sizes = [2, 32], strides = [1, 1]} : vector<2x128xf32> to vector<2x32xf32>
    %294 = vector.extract_strided_slice %291 {offsets = [0, 96], sizes = [2, 32], strides = [1, 1]} : vector<2x128xf32> to vector<2x32xf32>
    %295 = vector.extract_strided_slice %286 {offsets = [0, 64], sizes = [2, 32], strides = [1, 1]} : vector<2x128xf32> to vector<2x32xf32>
    %296 = math.tanh %295 : vector<2x32xf32>
    %297 = arith.mulf %293, %280 : vector<2x32xf32>
    %298 = arith.mulf %292, %296 : vector<2x32xf32>
    %299 = vector.extract_strided_slice %231 {offsets = [4, 0], sizes = [2, 32], strides = [1, 1]} : vector<16x32xf32> to vector<2x32xf32>
    %300 = arith.mulf %298, %299 : vector<2x32xf32>
    %301 = arith.addf %297, %300 : vector<2x32xf32>
    %302 = math.tanh %301 : vector<2x32xf32>
    %303 = arith.mulf %294, %302 : vector<2x32xf32>
    %c4_96 = arith.constant 4 : index
    %c0_97 = arith.constant 0 : index
    %304 = vector.load %arg19[%c4_96, %c0_97] : memref<16x32xf32, #tpu.memory_space<vmem>>, vector<2x32xf32>
    tpu.vector_store %arg19[%c4_96, %c0_97], %303 {strides = array<i32>} : memref<16x32xf32, #tpu.memory_space<vmem>>, vector<2x32xf32>,
    %305 = vector.extract_strided_slice %239 {offsets = [6, 0], sizes = [2, 128], strides = [1, 1]} : vector<16x128xf32> to vector<2x128xf32>
    %cst_98 = arith.constant dense<0.000000e+00> : vector<2x128xf32>
    %306 = tpu.matmul %303, %241, %cst_98 {dimension_numbers = #tpu.dot_dimension_numbers<[1], [0], [0], [1], [0, 0, 1, 1], [], []>} : vector<2x32xf32>, vector<32x128xf32>, vector<2x128xf32> -> vector<2x128xf32>
    %307 = arith.addf %305, %306 : vector<2x128xf32>
    %308 = arith.negf %307 : vector<2x128xf32>
    %309 = math.exp %308 : vector<2x128xf32>
    %cst_99 = arith.constant 1.000000e+00 : f32
    %310 = vector.broadcast %cst_99 : f32 to vector<2x128xf32>
    %311 = arith.addf %310, %309 : vector<2x128xf32>
    %312 = arith.divf %310, %311 : vector<2x128xf32>
    %313 = vector.extract_strided_slice %312 {offsets = [0, 0], sizes = [2, 32], strides = [1, 1]} : vector<2x128xf32> to vector<2x32xf32>
    %314 = vector.extract_strided_slice %312 {offsets = [0, 32], sizes = [2, 32], strides = [1, 1]} : vector<2x128xf32> to vector<2x32xf32>
    %315 = vector.extract_strided_slice %312 {offsets = [0, 96], sizes = [2, 32], strides = [1, 1]} : vector<2x128xf32> to vector<2x32xf32>
    %316 = vector.extract_strided_slice %307 {offsets = [0, 64], sizes = [2, 32], strides = [1, 1]} : vector<2x128xf32> to vector<2x32xf32>
    %317 = math.tanh %316 : vector<2x32xf32>
    %318 = arith.mulf %314, %301 : vector<2x32xf32>
    %319 = arith.mulf %313, %317 : vector<2x32xf32>
    %320 = vector.extract_strided_slice %231 {offsets = [6, 0], sizes = [2, 32], strides = [1, 1]} : vector<16x32xf32> to vector<2x32xf32>
    %321 = arith.mulf %319, %320 : vector<2x32xf32>
    %322 = arith.addf %318, %321 : vector<2x32xf32>
    %323 = math.tanh %322 : vector<2x32xf32>
    %324 = arith.mulf %315, %323 : vector<2x32xf32>
    %c6_100 = arith.constant 6 : index
    %c0_101 = arith.constant 0 : index
    %325 = vector.load %arg19[%c6_100, %c0_101] : memref<16x32xf32, #tpu.memory_space<vmem>>, vector<2x32xf32>
    tpu.vector_store %arg19[%c6_100, %c0_101], %324 {strides = array<i32>} : memref<16x32xf32, #tpu.memory_space<vmem>>, vector<2x32xf32>,
    %326 = vector.extract_strided_slice %239 {offsets = [8, 0], sizes = [2, 128], strides = [1, 1]} : vector<16x128xf32> to vector<2x128xf32>
    %cst_102 = arith.constant dense<0.000000e+00> : vector<2x128xf32>
    %327 = tpu.matmul %324, %241, %cst_102 {dimension_numbers = #tpu.dot_dimension_numbers<[1], [0], [0], [1], [0, 0, 1, 1], [], []>} : vector<2x32xf32>, vector<32x128xf32>, vector<2x128xf32> -> vector<2x128xf32>
    %328 = arith.addf %326, %327 : vector<2x128xf32>
    %329 = arith.negf %328 : vector<2x128xf32>
    %330 = math.exp %329 : vector<2x128xf32>
    %cst_103 = arith.constant 1.000000e+00 : f32
    %331 = vector.broadcast %cst_103 : f32 to vector<2x128xf32>
    %332 = arith.addf %331, %330 : vector<2x128xf32>
    %333 = arith.divf %331, %332 : vector<2x128xf32>
    %334 = vector.extract_strided_slice %333 {offsets = [0, 0], sizes = [2, 32], strides = [1, 1]} : vector<2x128xf32> to vector<2x32xf32>
    %335 = vector.extract_strided_slice %333 {offsets = [0, 32], sizes = [2, 32], strides = [1, 1]} : vector<2x128xf32> to vector<2x32xf32>
    %336 = vector.extract_strided_slice %333 {offsets = [0, 96], sizes = [2, 32], strides = [1, 1]} : vector<2x128xf32> to vector<2x32xf32>
    %337 = vector.extract_strided_slice %328 {offsets = [0, 64], sizes = [2, 32], strides = [1, 1]} : vector<2x128xf32> to vector<2x32xf32>
    %338 = math.tanh %337 : vector<2x32xf32>
    %339 = arith.mulf %335, %322 : vector<2x32xf32>
    %340 = arith.mulf %334, %338 : vector<2x32xf32>
    %341 = vector.extract_strided_slice %231 {offsets = [8, 0], sizes = [2, 32], strides = [1, 1]} : vector<16x32xf32> to vector<2x32xf32>
    %342 = arith.mulf %340, %341 : vector<2x32xf32>
    %343 = arith.addf %339, %342 : vector<2x32xf32>
    %344 = math.tanh %343 : vector<2x32xf32>
    %345 = arith.mulf %336, %344 : vector<2x32xf32>
    %c8_104 = arith.constant 8 : index
    %c0_105 = arith.constant 0 : index
    %346 = vector.load %arg19[%c8_104, %c0_105] : memref<16x32xf32, #tpu.memory_space<vmem>>, vector<2x32xf32>
    tpu.vector_store %arg19[%c8_104, %c0_105], %345 {strides = array<i32>} : memref<16x32xf32, #tpu.memory_space<vmem>>, vector<2x32xf32>,
    %347 = vector.extract_strided_slice %239 {offsets = [10, 0], sizes = [2, 128], strides = [1, 1]} : vector<16x128xf32> to vector<2x128xf32>
    %cst_106 = arith.constant dense<0.000000e+00> : vector<2x128xf32>
    %348 = tpu.matmul %345, %241, %cst_106 {dimension_numbers = #tpu.dot_dimension_numbers<[1], [0], [0], [1], [0, 0, 1, 1], [], []>} : vector<2x32xf32>, vector<32x128xf32>, vector<2x128xf32> -> vector<2x128xf32>
    %349 = arith.addf %347, %348 : vector<2x128xf32>
    %350 = arith.negf %349 : vector<2x128xf32>
    %351 = math.exp %350 : vector<2x128xf32>
    %cst_107 = arith.constant 1.000000e+00 : f32
    %352 = vector.broadcast %cst_107 : f32 to vector<2x128xf32>
    %353 = arith.addf %352, %351 : vector<2x128xf32>
    %354 = arith.divf %352, %353 : vector<2x128xf32>
    %355 = vector.extract_strided_slice %354 {offsets = [0, 0], sizes = [2, 32], strides = [1, 1]} : vector<2x128xf32> to vector<2x32xf32>
    %356 = vector.extract_strided_slice %354 {offsets = [0, 32], sizes = [2, 32], strides = [1, 1]} : vector<2x128xf32> to vector<2x32xf32>
    %357 = vector.extract_strided_slice %354 {offsets = [0, 96], sizes = [2, 32], strides = [1, 1]} : vector<2x128xf32> to vector<2x32xf32>
    %358 = vector.extract_strided_slice %349 {offsets = [0, 64], sizes = [2, 32], strides = [1, 1]} : vector<2x128xf32> to vector<2x32xf32>
    %359 = math.tanh %358 : vector<2x32xf32>
    %360 = arith.mulf %356, %343 : vector<2x32xf32>
    %361 = arith.mulf %355, %359 : vector<2x32xf32>
    %362 = vector.extract_strided_slice %231 {offsets = [10, 0], sizes = [2, 32], strides = [1, 1]} : vector<16x32xf32> to vector<2x32xf32>
    %363 = arith.mulf %361, %362 : vector<2x32xf32>
    %364 = arith.addf %360, %363 : vector<2x32xf32>
    %365 = math.tanh %364 : vector<2x32xf32>
    %366 = arith.mulf %357, %365 : vector<2x32xf32>
    %c10_108 = arith.constant 10 : index
    %c0_109 = arith.constant 0 : index
    %367 = vector.load %arg19[%c10_108, %c0_109] : memref<16x32xf32, #tpu.memory_space<vmem>>, vector<2x32xf32>
    tpu.vector_store %arg19[%c10_108, %c0_109], %366 {strides = array<i32>} : memref<16x32xf32, #tpu.memory_space<vmem>>, vector<2x32xf32>,
    %368 = vector.extract_strided_slice %239 {offsets = [12, 0], sizes = [2, 128], strides = [1, 1]} : vector<16x128xf32> to vector<2x128xf32>
    %cst_110 = arith.constant dense<0.000000e+00> : vector<2x128xf32>
    %369 = tpu.matmul %366, %241, %cst_110 {dimension_numbers = #tpu.dot_dimension_numbers<[1], [0], [0], [1], [0, 0, 1, 1], [], []>} : vector<2x32xf32>, vector<32x128xf32>, vector<2x128xf32> -> vector<2x128xf32>
    %370 = arith.addf %368, %369 : vector<2x128xf32>
    %371 = arith.negf %370 : vector<2x128xf32>
    %372 = math.exp %371 : vector<2x128xf32>
    %cst_111 = arith.constant 1.000000e+00 : f32
    %373 = vector.broadcast %cst_111 : f32 to vector<2x128xf32>
    %374 = arith.addf %373, %372 : vector<2x128xf32>
    %375 = arith.divf %373, %374 : vector<2x128xf32>
    %376 = vector.extract_strided_slice %375 {offsets = [0, 0], sizes = [2, 32], strides = [1, 1]} : vector<2x128xf32> to vector<2x32xf32>
    %377 = vector.extract_strided_slice %375 {offsets = [0, 32], sizes = [2, 32], strides = [1, 1]} : vector<2x128xf32> to vector<2x32xf32>
    %378 = vector.extract_strided_slice %375 {offsets = [0, 96], sizes = [2, 32], strides = [1, 1]} : vector<2x128xf32> to vector<2x32xf32>
    %379 = vector.extract_strided_slice %370 {offsets = [0, 64], sizes = [2, 32], strides = [1, 1]} : vector<2x128xf32> to vector<2x32xf32>
    %380 = math.tanh %379 : vector<2x32xf32>
    %381 = arith.mulf %377, %364 : vector<2x32xf32>
    %382 = arith.mulf %376, %380 : vector<2x32xf32>
    %383 = vector.extract_strided_slice %231 {offsets = [12, 0], sizes = [2, 32], strides = [1, 1]} : vector<16x32xf32> to vector<2x32xf32>
    %384 = arith.mulf %382, %383 : vector<2x32xf32>
    %385 = arith.addf %381, %384 : vector<2x32xf32>
    %386 = math.tanh %385 : vector<2x32xf32>
    %387 = arith.mulf %378, %386 : vector<2x32xf32>
    %c12_112 = arith.constant 12 : index
    %c0_113 = arith.constant 0 : index
    %388 = vector.load %arg19[%c12_112, %c0_113] : memref<16x32xf32, #tpu.memory_space<vmem>>, vector<2x32xf32>
    tpu.vector_store %arg19[%c12_112, %c0_113], %387 {strides = array<i32>} : memref<16x32xf32, #tpu.memory_space<vmem>>, vector<2x32xf32>,
    %389 = vector.extract_strided_slice %239 {offsets = [14, 0], sizes = [2, 128], strides = [1, 1]} : vector<16x128xf32> to vector<2x128xf32>
    %cst_114 = arith.constant dense<0.000000e+00> : vector<2x128xf32>
    %390 = tpu.matmul %387, %241, %cst_114 {dimension_numbers = #tpu.dot_dimension_numbers<[1], [0], [0], [1], [0, 0, 1, 1], [], []>} : vector<2x32xf32>, vector<32x128xf32>, vector<2x128xf32> -> vector<2x128xf32>
    %391 = arith.addf %389, %390 : vector<2x128xf32>
    %392 = arith.negf %391 : vector<2x128xf32>
    %393 = math.exp %392 : vector<2x128xf32>
    %cst_115 = arith.constant 1.000000e+00 : f32
    %394 = vector.broadcast %cst_115 : f32 to vector<2x128xf32>
    %395 = arith.addf %394, %393 : vector<2x128xf32>
    %396 = arith.divf %394, %395 : vector<2x128xf32>
    %397 = vector.extract_strided_slice %396 {offsets = [0, 0], sizes = [2, 32], strides = [1, 1]} : vector<2x128xf32> to vector<2x32xf32>
    %398 = vector.extract_strided_slice %396 {offsets = [0, 32], sizes = [2, 32], strides = [1, 1]} : vector<2x128xf32> to vector<2x32xf32>
    %399 = vector.extract_strided_slice %396 {offsets = [0, 96], sizes = [2, 32], strides = [1, 1]} : vector<2x128xf32> to vector<2x32xf32>
    %400 = vector.extract_strided_slice %391 {offsets = [0, 64], sizes = [2, 32], strides = [1, 1]} : vector<2x128xf32> to vector<2x32xf32>
    %401 = math.tanh %400 : vector<2x32xf32>
    %402 = arith.mulf %398, %385 : vector<2x32xf32>
    %403 = arith.mulf %397, %401 : vector<2x32xf32>
    %404 = vector.extract_strided_slice %231 {offsets = [14, 0], sizes = [2, 32], strides = [1, 1]} : vector<16x32xf32> to vector<2x32xf32>
    %405 = arith.mulf %403, %404 : vector<2x32xf32>
    %406 = arith.addf %402, %405 : vector<2x32xf32>
    %407 = math.tanh %406 : vector<2x32xf32>
    %408 = arith.mulf %399, %407 : vector<2x32xf32>
    %c14_116 = arith.constant 14 : index
    %c0_117 = arith.constant 0 : index
    %409 = vector.load %arg19[%c14_116, %c0_117] : memref<16x32xf32, #tpu.memory_space<vmem>>, vector<2x32xf32>
    tpu.vector_store %arg19[%c14_116, %c0_117], %408 {strides = array<i32>} : memref<16x32xf32, #tpu.memory_space<vmem>>, vector<2x32xf32>,
    %c0_118 = arith.constant 0 : index
    %c0_119 = arith.constant 0 : index
    %410 = tpu.strided_load %arg19[%c0_118, %c0_119] {strides = array<i32: 2, 1>} : memref<16x32xf32, #tpu.memory_space<vmem>>, vector<8x32xf32>
    %c1_120 = arith.constant 1 : index
    %c0_121 = arith.constant 0 : index
    %411 = tpu.strided_load %arg19[%c1_120, %c0_121] {strides = array<i32: 2, 1>} : memref<16x32xf32, #tpu.memory_space<vmem>>, vector<8x32xf32>
    %412 = tpu.concatenate %410, %411 in 0 : vector<8x32xf32>, vector<8x32xf32> -> vector<16x32xf32>
    %c0_122 = arith.constant 0 : index
    %c0_123 = arith.constant 0 : index
    %413 = vector.load %arg11[%c0_122, %c0_123] : memref<32x96xf32, #tpu.memory_space<vmem>>, vector<32x96xf32>
    %cst_124 = arith.constant dense<0.000000e+00> : vector<16x96xf32>
    %414 = tpu.matmul %412, %413, %cst_124 {dimension_numbers = #tpu.dot_dimension_numbers<[1], [0], [0], [1], [0, 0, 1, 1], [], []>} : vector<16x32xf32>, vector<32x96xf32>, vector<16x96xf32> -> vector<16x96xf32>
    %c0_125 = arith.constant 0 : index
    %c0_126 = arith.constant 0 : index
    %415 = vector.load %arg12[%c0_125, %c0_126] : memref<1x96xf32, #tpu.memory_space<vmem>>, vector<1x96xf32>
    %416 = vector.broadcast %415 : vector<1x96xf32> to vector<16x96xf32>
    %417 = arith.addf %414, %416 : vector<16x96xf32>
    %418 = vector.extract_strided_slice %417 {offsets = [0, 0], sizes = [16, 32], strides = [1, 1]} : vector<16x96xf32> to vector<16x32xf32>
    %419 = vector.shape_cast %418 : vector<16x32xf32> to vector<2x8x32xf32>
    %420 = vector.extract_strided_slice %417 {offsets = [0, 32], sizes = [16, 32], strides = [1, 1]} : vector<16x96xf32> to vector<16x32xf32>
    %421 = vector.shape_cast %420 : vector<16x32xf32> to vector<2x8x32xf32>
    %422 = vector.extract_strided_slice %417 {offsets = [0, 64], sizes = [16, 32], strides = [1, 1]} : vector<16x96xf32> to vector<16x32xf32>
    %423 = vector.shape_cast %422 : vector<16x32xf32> to vector<2x8x32xf32>
    "tpu.trace_start"() <{level = 10 : i32, message = "bqd,bkd->bqk"}> : () -> ()
    %cst_127 = arith.constant dense<0.000000e+00> : vector<2x8x8xf32>
    %424 = tpu.matmul %419, %421, %cst_127 {dimension_numbers = #tpu.dot_dimension_numbers<[2], [2], [1], [1], [0, 0, 0, 1, 1, 1], [0], [0]>} : vector<2x8x32xf32>, vector<2x8x32xf32>, vector<2x8x8xf32> -> vector<2x8x8xf32>
    "tpu.trace_stop"() : () -> ()
    %cst_128 = arith.constant 0.176776692 : f32
    %425 = vector.broadcast %cst_128 : f32 to vector<2x8x8xf32>
    %426 = arith.mulf %424, %425 : vector<2x8x8xf32>
    %cst_129 = arith.constant dense<0xFF800000> : vector<2x8xf32>
    %427 = vector.multi_reduction <maximumf>, %426, %cst_129 [2] : vector<2x8x8xf32> to vector<2x8xf32>
    %428 = vector.shape_cast %427 : vector<2x8xf32> to vector<2x8x1xf32>
    %429 = vector.broadcast %428 : vector<2x8x1xf32> to vector<2x8x8xf32>
    %430 = arith.subf %426, %429 : vector<2x8x8xf32>
    %431 = math.exp %430 : vector<2x8x8xf32>
    %cst_130 = arith.constant dense<0.000000e+00> : vector<2x8xf32>
    %432 = vector.multi_reduction <add>, %431, %cst_130 [2] : vector<2x8x8xf32> to vector<2x8xf32>
    %433 = vector.shape_cast %432 : vector<2x8xf32> to vector<2x8x1xf32>
    %434 = tpu.reciprocal %433 : vector<2x8x1xf32> -> vector<2x8x1xf32>
    %435 = vector.broadcast %434 : vector<2x8x1xf32> to vector<2x8x8xf32>
    %436 = arith.mulf %431, %435 : vector<2x8x8xf32>
    "tpu.trace_start"() <{level = 10 : i32, message = "bqk,bkd->bqd"}> : () -> ()
    %cst_131 = arith.constant dense<0.000000e+00> : vector<2x8x32xf32>
    %437 = tpu.matmul %436, %423, %cst_131 {dimension_numbers = #tpu.dot_dimension_numbers<[2], [1], [1], [2], [0, 0, 0, 1, 1, 2], [0], [0]>} : vector<2x8x8xf32>, vector<2x8x32xf32>, vector<2x8x32xf32> -> vector<2x8x32xf32>
    "tpu.trace_stop"() : () -> ()
    %438 = vector.shape_cast %437 : vector<2x8x32xf32> to vector<16x32xf32>
    %c0_132 = arith.constant 0 : index
    %c0_133 = arith.constant 0 : index
    %439 = vector.load %arg13[%c0_132, %c0_133] : memref<32x32xf32, #tpu.memory_space<vmem>>, vector<32x32xf32>
    %cst_134 = arith.constant dense<0.000000e+00> : vector<16x32xf32>
    %440 = tpu.matmul %438, %439, %cst_134 {dimension_numbers = #tpu.dot_dimension_numbers<[1], [0], [0], [1], [0, 0, 1, 1], [], []>} : vector<16x32xf32>, vector<32x32xf32>, vector<16x32xf32> -> vector<16x32xf32>
    %441 = vector.broadcast %2 : vector<1x32xf32> to vector<16x32xf32>
    %442 = arith.addf %440, %441 : vector<16x32xf32>
    %443 = arith.addf %442, %412 : vector<16x32xf32>
    %cst_135 = arith.constant 0.000000e+00 : f32
    %444 = vector.broadcast %cst_135 : f32 to vector<16x32xf32>
    %445 = arith.maximumf %443, %444 : vector<16x32xf32>
    %446 = vector.shape_cast %445 : vector<16x32xf32> to vector<2x8x32xf32>
    %c0_136 = arith.constant 0 : index
    %c0_137 = arith.constant 0 : index
    %c0_138 = arith.constant 0 : index
    %447 = vector.load %arg14[%c0_136, %c0_137, %c0_138] : memref<8x32x32xf32, #tpu.memory_space<vmem>>, vector<8x32x32xf32>
    %cst_139 = arith.constant 0.000000e+00 : f32
    %448 = vector.broadcast %cst_139 : f32 to vector<2x32xf32>
    %449 = vector.extract_strided_slice %446 {offsets = [0, 0, 0], sizes = [2, 1, 32], strides = [1, 1, 1]} : vector<2x8x32xf32> to vector<2x1x32xf32>
    %450 = vector.shape_cast %449 : vector<2x1x32xf32> to vector<2x32xf32>
    %451 = vector.extract_strided_slice %447 {offsets = [0, 0, 0], sizes = [1, 32, 32], strides = [1, 1, 1]} : vector<8x32x32xf32> to vector<1x32x32xf32>
    %452 = vector.shape_cast %451 : vector<1x32x32xf32> to vector<32x32xf32>
    %cst_140 = arith.constant dense<0.000000e+00> : vector<2x32xf32>
    %453 = tpu.matmul %450, %452, %cst_140 {dimension_numbers = #tpu.dot_dimension_numbers<[1], [0], [0], [1], [0, 0, 1, 1], [], []>} : vector<2x32xf32>, vector<32x32xf32>, vector<2x32xf32> -> vector<2x32xf32>
    %454 = arith.addf %448, %453 : vector<2x32xf32>
    %455 = vector.extract_strided_slice %446 {offsets = [0, 1, 0], sizes = [2, 1, 32], strides = [1, 1, 1]} : vector<2x8x32xf32> to vector<2x1x32xf32>
    %456 = vector.shape_cast %455 : vector<2x1x32xf32> to vector<2x32xf32>
    %457 = vector.extract_strided_slice %447 {offsets = [1, 0, 0], sizes = [1, 32, 32], strides = [1, 1, 1]} : vector<8x32x32xf32> to vector<1x32x32xf32>
    %458 = vector.shape_cast %457 : vector<1x32x32xf32> to vector<32x32xf32>
    %cst_141 = arith.constant dense<0.000000e+00> : vector<2x32xf32>
    %459 = tpu.matmul %456, %458, %cst_141 {dimension_numbers = #tpu.dot_dimension_numbers<[1], [0], [0], [1], [0, 0, 1, 1], [], []>} : vector<2x32xf32>, vector<32x32xf32>, vector<2x32xf32> -> vector<2x32xf32>
    %460 = arith.addf %454, %459 : vector<2x32xf32>
    %461 = vector.extract_strided_slice %446 {offsets = [0, 2, 0], sizes = [2, 1, 32], strides = [1, 1, 1]} : vector<2x8x32xf32> to vector<2x1x32xf32>
    %462 = vector.shape_cast %461 : vector<2x1x32xf32> to vector<2x32xf32>
    %463 = vector.extract_strided_slice %447 {offsets = [2, 0, 0], sizes = [1, 32, 32], strides = [1, 1, 1]} : vector<8x32x32xf32> to vector<1x32x32xf32>
    %464 = vector.shape_cast %463 : vector<1x32x32xf32> to vector<32x32xf32>
    %cst_142 = arith.constant dense<0.000000e+00> : vector<2x32xf32>
    %465 = tpu.matmul %462, %464, %cst_142 {dimension_numbers = #tpu.dot_dimension_numbers<[1], [0], [0], [1], [0, 0, 1, 1], [], []>} : vector<2x32xf32>, vector<32x32xf32>, vector<2x32xf32> -> vector<2x32xf32>
    %466 = arith.addf %460, %465 : vector<2x32xf32>
    %467 = vector.extract_strided_slice %446 {offsets = [0, 3, 0], sizes = [2, 1, 32], strides = [1, 1, 1]} : vector<2x8x32xf32> to vector<2x1x32xf32>
    %468 = vector.shape_cast %467 : vector<2x1x32xf32> to vector<2x32xf32>
    %469 = vector.extract_strided_slice %447 {offsets = [3, 0, 0], sizes = [1, 32, 32], strides = [1, 1, 1]} : vector<8x32x32xf32> to vector<1x32x32xf32>
    %470 = vector.shape_cast %469 : vector<1x32x32xf32> to vector<32x32xf32>
    %cst_143 = arith.constant dense<0.000000e+00> : vector<2x32xf32>
    %471 = tpu.matmul %468, %470, %cst_143 {dimension_numbers = #tpu.dot_dimension_numbers<[1], [0], [0], [1], [0, 0, 1, 1], [], []>} : vector<2x32xf32>, vector<32x32xf32>, vector<2x32xf32> -> vector<2x32xf32>
    %472 = arith.addf %466, %471 : vector<2x32xf32>
    %473 = vector.extract_strided_slice %446 {offsets = [0, 4, 0], sizes = [2, 1, 32], strides = [1, 1, 1]} : vector<2x8x32xf32> to vector<2x1x32xf32>
    %474 = vector.shape_cast %473 : vector<2x1x32xf32> to vector<2x32xf32>
    %475 = vector.extract_strided_slice %447 {offsets = [4, 0, 0], sizes = [1, 32, 32], strides = [1, 1, 1]} : vector<8x32x32xf32> to vector<1x32x32xf32>
    %476 = vector.shape_cast %475 : vector<1x32x32xf32> to vector<32x32xf32>
    %cst_144 = arith.constant dense<0.000000e+00> : vector<2x32xf32>
    %477 = tpu.matmul %474, %476, %cst_144 {dimension_numbers = #tpu.dot_dimension_numbers<[1], [0], [0], [1], [0, 0, 1, 1], [], []>} : vector<2x32xf32>, vector<32x32xf32>, vector<2x32xf32> -> vector<2x32xf32>
    %478 = arith.addf %472, %477 : vector<2x32xf32>
    %479 = vector.extract_strided_slice %446 {offsets = [0, 5, 0], sizes = [2, 1, 32], strides = [1, 1, 1]} : vector<2x8x32xf32> to vector<2x1x32xf32>
    %480 = vector.shape_cast %479 : vector<2x1x32xf32> to vector<2x32xf32>
    %481 = vector.extract_strided_slice %447 {offsets = [5, 0, 0], sizes = [1, 32, 32], strides = [1, 1, 1]} : vector<8x32x32xf32> to vector<1x32x32xf32>
    %482 = vector.shape_cast %481 : vector<1x32x32xf32> to vector<32x32xf32>
    %cst_145 = arith.constant dense<0.000000e+00> : vector<2x32xf32>
    %483 = tpu.matmul %480, %482, %cst_145 {dimension_numbers = #tpu.dot_dimension_numbers<[1], [0], [0], [1], [0, 0, 1, 1], [], []>} : vector<2x32xf32>, vector<32x32xf32>, vector<2x32xf32> -> vector<2x32xf32>
    %484 = arith.addf %478, %483 : vector<2x32xf32>
    %485 = vector.extract_strided_slice %446 {offsets = [0, 6, 0], sizes = [2, 1, 32], strides = [1, 1, 1]} : vector<2x8x32xf32> to vector<2x1x32xf32>
    %486 = vector.shape_cast %485 : vector<2x1x32xf32> to vector<2x32xf32>
    %487 = vector.extract_strided_slice %447 {offsets = [6, 0, 0], sizes = [1, 32, 32], strides = [1, 1, 1]} : vector<8x32x32xf32> to vector<1x32x32xf32>
    %488 = vector.shape_cast %487 : vector<1x32x32xf32> to vector<32x32xf32>
    %cst_146 = arith.constant dense<0.000000e+00> : vector<2x32xf32>
    %489 = tpu.matmul %486, %488, %cst_146 {dimension_numbers = #tpu.dot_dimension_numbers<[1], [0], [0], [1], [0, 0, 1, 1], [], []>} : vector<2x32xf32>, vector<32x32xf32>, vector<2x32xf32> -> vector<2x32xf32>
    %490 = arith.addf %484, %489 : vector<2x32xf32>
    %491 = vector.extract_strided_slice %446 {offsets = [0, 7, 0], sizes = [2, 1, 32], strides = [1, 1, 1]} : vector<2x8x32xf32> to vector<2x1x32xf32>
    %492 = vector.shape_cast %491 : vector<2x1x32xf32> to vector<2x32xf32>
    %493 = vector.extract_strided_slice %447 {offsets = [7, 0, 0], sizes = [1, 32, 32], strides = [1, 1, 1]} : vector<8x32x32xf32> to vector<1x32x32xf32>
    %494 = vector.shape_cast %493 : vector<1x32x32xf32> to vector<32x32xf32>
    %cst_147 = arith.constant dense<0.000000e+00> : vector<2x32xf32>
    %495 = tpu.matmul %492, %494, %cst_147 {dimension_numbers = #tpu.dot_dimension_numbers<[1], [0], [0], [1], [0, 0, 1, 1], [], []>} : vector<2x32xf32>, vector<32x32xf32>, vector<2x32xf32> -> vector<2x32xf32>
    %496 = arith.addf %490, %495 : vector<2x32xf32>
    %497 = vector.broadcast %3 : vector<1x32xf32> to vector<2x32xf32>
    %498 = arith.addf %496, %497 : vector<2x32xf32>
    %cst_148 = arith.constant 0.000000e+00 : f32
    %499 = vector.broadcast %cst_148 : f32 to vector<2x32xf32>
    %500 = arith.maximumf %498, %499 : vector<2x32xf32>
    %c0_149 = arith.constant 0 : index
    %c0_150 = arith.constant 0 : index
    %501 = vector.load %arg15[%c0_149, %c0_150] : memref<32x4xf32, #tpu.memory_space<vmem>>, vector<32x4xf32>
    %cst_151 = arith.constant dense<0.000000e+00> : vector<2x4xf32>
    %502 = tpu.matmul %500, %501, %cst_151 {dimension_numbers = #tpu.dot_dimension_numbers<[1], [0], [0], [1], [0, 0, 1, 1], [], []>} : vector<2x32xf32>, vector<32x4xf32>, vector<2x4xf32> -> vector<2x4xf32>
    %c0_152 = arith.constant 0 : index
    %c0_153 = arith.constant 0 : index
    %503 = vector.load %arg16[%c0_152, %c0_153] : memref<1x4xf32, #tpu.memory_space<vmem>>, vector<1x4xf32>
    %504 = vector.broadcast %503 : vector<1x4xf32> to vector<2x4xf32>
    %505 = arith.addf %502, %504 : vector<2x4xf32>
    %c0_154 = arith.constant 0 : index
    %c0_155 = arith.constant 0 : index
    %506 = vector.load %arg18[%c0_154, %c0_155] : memref<2x4xf32, #tpu.memory_space<vmem>>, vector<2x4xf32>
    tpu.vector_store %arg18[%c0_154, %c0_155], %505 {strides = array<i32>} : memref<2x4xf32, #tpu.memory_space<vmem>>, vector<2x4xf32>,
    return
  }
}

</mosaic_0001>

<bundles_post_ra>
// kernel: mdhp_net_forward.1
= control target key start
LH: loop header
LB: loop body
LE: loop exit
PB: predicated region body
PF: predicated region fallthrough
CT: control target
= control target key end

     0   :  { %s3802_s0 = inlined_call_operand.vmem [shape: f32[16,16], index: 0, kind: input, shape index: {}]   ;;  %s3803_s1 = inlined_call_operand.vmem [shape: f32[2,4,4], index: 1, kind: input, shape index: {}]   ;;  %s3804_s2 = inlined_call_operand.hbm [shape: f32[2,4,4], index: 2, kind: input, shape index: {}]   ;;  %s3805_s3 = inlined_call_operand.hbm [shape: f32[2,4], index: 3, kind: input, shape index: {}]   ;;  %s3806_s4 = inlined_call_operand.vmem [shape: f32[16,1], index: 4, kind: input, shape index: {}]   ;;  %s3807_s5 = inlined_call_operand.vmem [shape: f32[16,32], index: 5, kind: input, shape index: {}]   ;;  %s3808_s6 = inlined_call_operand.vmem [shape: f32[2,32,128], index: 6, kind: input, shape index: {}]   ;;  %s3809_s7 = inlined_call_operand.hbm [shape: f32[2,32,128], index: 7, kind: input, shape index: {}]   ;;  %s3810_s8 = inlined_call_operand.hbm [shape: f32[2,1,128], index: 8, kind: input, shape index: {}]   ;;  %s3811_s9 = inlined_call_operand.hbm [shape: f32[2,4,32], index: 9, kind: input, shape index: {}]   ;;  %s3812_s10 = inlined_call_operand.hbm [shape: f32[2,1,32], index: 10, kind: input, shape index: {}]   ;;  %s3813_s11 = inlined_call_operand.vmem [shape: f32[32,96], index: 11, kind: input, shape index: {}]   ;;  %s3814_s12 = inlined_call_operand.hbm [shape: f32[1,96], index: 12, kind: input, shape index: {}]   ;;  %s3815_s13 = inlined_call_operand.hbm [shape: f32[32,32], index: 13, kind: input, shape index: {}]   ;;  %s3816_s14 = inlined_call_operand.hbm [shape: f32[8,32,32], index: 14, kind: input, shape index: {}]   ;;  %s3817_s15 = inlined_call_operand.vmem [shape: f32[32,4], index: 15, kind: input, shape index: {}]   ;;  %s3818_s16 = inlined_call_operand.hbm [shape: f32[1,4], index: 16, kind: input, shape index: {}]   ;;  %s3819_s17 = inlined_call_operand.hbm [shape: f32[3,32], index: 17, kind: input, shape index: {}]   ;;  %s3820_s18 = inlined_call_operand.hbm [shape: f32[2,4], index: 18, kind: output, shape index: {}]  }
   0x1   :  { %3827 = sst [smem:[#allocation29_spill]] %s3802_s0 }
   0x2   :  { %3828 = sst [smem:[#allocation30_spill]] %s3803_s1 }
   0x3   :  { %3829 = sst [smem:[#allocation31_spill]] %s3804_s2 }
   0x4   :  { %23 = vsyncpa [#allocation4], 0 }
   0x5   :  { %24 = vsyncpa [#allocation7], 0 }
   0x6   :  { %25 = vsyncpa [#allocation10], 0 }
   0x7   :  { %26 = vsyncpa [#allocation13], 0 }
   0x8   :  { %27 = vsyncpa [#allocation16], 0 }
   0x9   :  { %28 = vsyncpa [#allocation19], 0  ;;  %s52_s29 = sshll.u32 %s3805_s3, 4  ;;  %s53_s29 = int_to_ptr.hbm [resolvable:$true] %s52_s29 }
   0xa   :  { %29 = vsyncpa [#allocation5], 0  ;;  %s3089_s30 = smov [#allocation6]   ;;  %s81_s20 = sshll.u32 %s3810_s8, 4  ;;  %s82_s20 = int_to_ptr.hbm [resolvable:$true] %s81_s20 }
   0xb   :  { %s54_s0 = sshll.u32 %s3089_s30, 4  ;;  %s3090_s21 = smov [#allocation9]   ;;  %s55_s0 = int_to_ptr.vmem [resolvable:$true] %s54_s0 }
   0xc   :  { %57 = dma.hbm_to_vmem [thread:$0]  %s53_s29, 32, %s55_s0, [#allocation7]  }
   0xd   :  { %s83_s22 = sshll.u32 %s3090_s21, 4  ;;  %s3091_s2 = smov 16   ;;  %s84_s22 = int_to_ptr.vmem [resolvable:$true] %s83_s22 }
   0xe   :  { %s3092_s23 = smov 1   ;;  %s107_s3 = sshll.u32 %s3812_s10, 4  ;;  %s108_s3 = int_to_ptr.hbm [resolvable:$true] %s107_s3 }
   0xf   :  { %89 = dma.hbm_to_vmem [thread:$0]  %s82_s20, 32, %s84_s22, [#allocation10], %s3091_s2, %s3091_s2, %s3092_s23  }
  0x10   :  { %s3093_s26 = smov [#allocation12]   ;;  %s133_s8 = sshll.u32 %s3815_s13, 4  ;;  %s134_s8 = int_to_ptr.hbm [resolvable:$true] %s133_s8 }
  0x11   :  { %s109_s27 = sshll.u32 %s3093_s26, 4  ;;  %s3094_s29 = smov [#allocation15]   ;;  %s110_s27 = int_to_ptr.vmem [resolvable:$true] %s109_s27 }
  0x12   :  { %115 = dma.hbm_to_vmem [thread:$0]  %s108_s3, 32, %s110_s27, [#allocation13], %s3091_s2, %s3091_s2, %s3092_s23  }
  0x13   :  { %s135_s0 = sshll.u32 %s3094_s29, 4  ;;  %s162_s20 = sshll.u32 %s3818_s16, 4  ;;  %s136_s0 = int_to_ptr.vmem [resolvable:$true] %s135_s0  ;;  %s163_s20 = int_to_ptr.hbm [resolvable:$true] %s162_s20 }
  0x14   :  { %s3095_s21 = smov 128   ;;  %s3096_s10 = smov 8  }
  0x15   :  { %141 = dma.hbm_to_vmem [thread:$0]  %s134_s8, 512, %s136_s0, [#allocation16], %s3095_s21, %s3095_s21, %s3096_s10  }
  0x16   :  { %s3830_s23 = sld [smem:[#allocation31_spill]]  ;;  %s3097_s13 = smov [#allocation18]  }
  0x17   :  { %s164_s25 = sshll.u32 %s3097_s13, 4  ;;  %s3098_s3 = smov [#allocation3]   ;;  %s165_s25 = int_to_ptr.vmem [resolvable:$true] %s164_s25 }
  0x18   :  { %167 = dma.hbm_to_vmem [thread:$0]  %s163_s20, 16, %s165_s25, [#allocation19]  }
  0x19   :  { %s40_s26 = sshll.u32 %s3098_s3, 4  ;;  %s3099_s16 = smov 64   ;;  %s41_s26 = int_to_ptr.vmem [resolvable:$true] %s40_s26 }
  0x1a   :  { %s3100_s27 = smov 4   ;;  %s68_s8 = sshll.u32 %s3809_s7, 4  ;;  %s69_s8 = int_to_ptr.hbm [resolvable:$true] %s68_s8 }
  0x1b   :  { %s3101_s29 = smov [#allocation8]   ;;  %s94_s20 = sshll.u32 %s3811_s9, 4  ;;  %s95_s20 = int_to_ptr.hbm [resolvable:$true] %s94_s20 }
  0x1c   :  { %s38_s24 = sshll.u32 %s3830_s23, 4  ;;  %s70_s0 = sshll.u32 %s3101_s29, 4  ;;  %s39_s24 = int_to_ptr.hbm [resolvable:$true] %s38_s24  ;;  %s71_s0 = int_to_ptr.vmem [resolvable:$true] %s70_s0 }
  0x1d   :  { %46 = dma.hbm_to_vmem [thread:$0]  %s39_s24, 128, %s41_s26, [#allocation4], %s3099_s16, %s3099_s16, %s3100_s27  }
  0x1e   :  { %76 = dma.hbm_to_vmem [thread:$0]  %s69_s8, 1024, %s71_s0, [#allocation7], %s3095_s21, %s3095_s21, %s3096_s10  }
  0x1f   :  { %s3102_s22 = smov [#allocation11]   ;;  %s123_s13 = sshll.u32 %s3814_s12, 4  ;;  %s124_s13 = int_to_ptr.hbm [resolvable:$true] %s123_s13 }
  0x20   :  { %s96_s2 = sshll.u32 %s3102_s22, 4  ;;  %s146_s9 = sshll.u32 %s3816_s14, 4  ;;  %s97_s2 = int_to_ptr.vmem [resolvable:$true] %s96_s2  ;;  %s147_s9 = int_to_ptr.hbm [resolvable:$true] %s146_s9 }
  0x21   :  { %102 = dma.hbm_to_vmem [thread:$0]  %s95_s20, 128, %s97_s2, [#allocation10], %s3099_s16, %s3099_s16, %s3100_s27  }
  0x22   :  { %s3103_s3 = smov [#allocation14]   ;;  %s3104_s28 = smov [#allocation17]  }
  0x23   :  { %s125_s26 = sshll.u32 %s3103_s3, 4  ;;  %s148_s30 = sshll.u32 %s3104_s28, 4  ;;  %s126_s26 = int_to_ptr.vmem [resolvable:$true] %s125_s26  ;;  %s149_s30 = int_to_ptr.vmem [resolvable:$true] %s148_s30 }
  0x24   :  { %128 = dma.hbm_to_vmem [thread:$0]  %s124_s13, 16, %s126_s26, [#allocation13]  }
  0x25   :  { %s173_s12 = sshll.u32 %s3819_s17, 4  ;;  %s3105_s27 = smov [#allocation20]   ;;  %s174_s12 = int_to_ptr.hbm [resolvable:$true] %s173_s12 }
  0x26   :  { %154 = dma.hbm_to_vmem [thread:$0]  %s147_s9, 4096, %s149_s30, [#allocation16], %s3095_s21, %s3095_s21, %s3096_s10  }
  0x27   :  { %s175_s0 = sshll.u32 %s3105_s27, 4  ;;  %s176_s0 = int_to_ptr.vmem [resolvable:$true] %s175_s0 }
  0x28   :  { %178 = dma.hbm_to_vmem [thread:$0]  %s174_s12, 64, %s176_s0, [#allocation19]  }
  0x29   :  { %3075 = dma.done.wait [#allocation4], 128  }
  0x2a   :  { %3076 = vsyncadd [#allocation4], 4294967168 }
  0x2b   :  { %3077 = dma.done.wait [#allocation7], 1056  }
  0x2c   :  { %3078 = vsyncadd [#allocation7], 4294966240 }
  0x2d   :  { %3079 = dma.done.wait [#allocation10], 160  }
  0x2e   :  { %3080 = vsyncadd [#allocation10], 4294967136 }
  0x2f   :  { %3081 = dma.done.wait [#allocation13], 48  }
  0x30   :  { %3082 = vsyncadd [#allocation13], 4294967248 }
  0x31   :  { %3083 = dma.done.wait [#allocation16], 4608  }
  0x32   :  { %3084 = vsyncadd [#allocation16], 4294962688 }
  0x33   :  { %3085 = dma.done.wait [#allocation19], 80  }
  0x34   :  { %3086 = vsyncadd [#allocation19], 4294967216  ;;  %v3106_v0 = vmov 0   ;;  %v227_v1 = vld [vmem:[%s3807_s5 + $0x8] sm:$0xff]  ;;  %v264_v2 = vld [vmem:[%s3806_s4] sm:$0xff]  ;;  %s3831_s2 = sld [smem:[#allocation29_spill]] }
  0x35   :  { %2588 = vset.pattern.permute.xlu0 %v3106_v0  ;;  %2589 = vset.pattern.permute.xlu1 %v3106_v0  ;;  %v226_v3 = vld [vmem:[%s3807_s5] sm:$0xff]  ;;  %v302_v4 = vperm.slane %v264_v2, 0  ;;  %vm3824_vm0 = vcmask 130048   ;;  %v289_v6 = vrot.slane %v264_v2, 2  ;;  %v291_v7 = vrot.slane %v264_v2, 4  ;;  %v635_v20 = vld [vmem:[%s3808_s6 + $0x18] sm:$0xff] }
  0x36   :  { %2590 = vset.pattern.permute.xlu2 %v3106_v0  ;;  %250 = vmatpush.msra.mxu0 %v227_v1  ;;  %v288_v9 = vrot.slane %v264_v2, 1  ;;  %v290_v10 = vrot.slane %v264_v2, 3  ;;  %v292_v12 = vrot.slane %v264_v2, 5  ;;  %v293_v16 = vrot.slane %v264_v2, 6  ;;  %v634_v21 = vld [vmem:[%s3808_s6 + $0x10] sm:$0xff]  ;;  %v633_v23 = vld [vmem:[%s3808_s6 + $0x8] sm:$0xff] }
  0x37   :  { %319 = vperm.xlu0 %2588, %v302_v4   ;;  %v304_v8 = vperm.slane %v289_v6, 0  ;;  %v306_v11 = vperm.slane %v291_v7, 0  ;;  %v294_v17 = vrot.slane %v264_v2, 7  ;;  %658 = vmatpush.msra.mxu2 %v635_v20  ;;  %v3271_v22 = vld [vmem:[#allocation8 + $0x18] sm:$0xff]  ;;  %v3277_v24 = vld [vmem:[#allocation8 + $0x10] sm:$0xff]  ;;  %v632_v25 = vld [vmem:[%s3808_s6] sm:$0xff] }
  0x38   :  { %251 = vmatpush.msra.mxu0 %v226_v3  ;;  %v303_v13 = vperm.slane %v288_v9, 0  ;;  %v305_v14 = vperm.slane %v290_v10, 0  ;;  %v307_v15 = vperm.slane %v292_v12, 0  ;;  %v308_v18 = vperm.slane %v293_v16, 0  ;;  %688 = vmatpush.msra.mxu3 %v3271_v22  ;;  %v3284_v26 = vld [vmem:[#allocation8 + $0x8] sm:$0xff]  ;;  %v3288_v28 = vld [vmem:[#allocation8] sm:$0xff] }
  0x39   :  { %327 = vperm.xlu1 %2589, %v304_v8   ;;  %335 = vperm.xlu2 %2590, %v306_v11   ;;  %v309_v19 = vperm.slane %v294_v17, 0  ;;  %v268_v29 = vld [vmem:[#allocation3] sm:$0xf]  ;;  %v3107_v30 = vmov 0.0   ;;  %v269_v34 = vld [vmem:[#allocation3 + $0x4] sm:$0xf] }
  0x3a   :  { %v224_v5 = vld [vmem:[%s3831_s2] sm:$0xff]  ;;  %659 = vmatpush.msra.mxu2 %v634_v21  ;;  %907 = vmatpush.msrb.mxu0 %v3271_v22  ;;  %v3296_v31 = vsub.f32 0.0, %v268_v29  ;;  %v3310_v39 = vsub.f32 0.0, %v269_v34  ;;  %v3313_v41 = vld [vmem:[#allocation20] sm:$0x7]  ;;  %s3832_s30 = sld [smem:[#allocation30_spill]] }
  0x3b   :  { %2496 = vmatmul.msk.f32.vlgmr.msra.gmra.mxu0 %vm3824_vm0, %v224_v5  ;;  %689 = vmatpush.msra.mxu3 %v3277_v24  ;;  %v228_v45 = vperm.slane %v3313_v41, 0  ;;  %vm446_vm1 = vcmask 27648   ;;  %vm261_vm2 = vcmask 261120   ;;  %vm3823_vm3 = vcmask 1043456   ;;  %v554_v29 = vld [vmem:[#allocation11] sm:$0xf] }
  0x3c   :  { %660 = vmatpush.msra.mxu2 %v633_v23  ;;  %908 = vmatpush.msrb.mxu0 %v3277_v24  ;;  %vm529_vm4 = vcmask 1041409   ;;  %vm531_vm5 = vcmask 1042434   ;;  %vm533_vm6 = vcmask 1043459   ;;  %vm278_vm7 = vcmask 1041408   ;;  %s3108_s12 = smov 32   ;;  %s3109_s3 = smov 96  }
  0x3d   :  { %690 = vmatpush.msra.mxu3 %v3284_v26  ;;  %2498 = vmatpush.msk.msra.mxu1 %vm3823_vm3, %v554_v29  ;;  %vm535_vm8 = vcmask 1044484   ;;  %vm537_vm9 = vcmask 1045509   ;;  %vm282_vm10 = vcmask 1045504   ;;  %vm539_vm11 = vcmask 1046534   ;;  %s2481_s14 = sshll.u32 %s3820_s18, 4  ;;  %s2482_s14 = int_to_ptr.hbm [resolvable:$true] %s2481_s14 }
  0x3e   :  { %661 = vmatpush.msra.mxu2 %v632_v25  ;;  %909 = vmatpush.msrb.mxu0 %v3284_v26  ;;  %vm3826_vm12 = vcmask 1047559   ;;  %vm3825_vm13 = vcmask 31744  }
  0x3f   :  { %323 = vperm.xlu0 %2588, %v303_v13   ;;  %691 = vmatpush.msra.mxu3 %v3288_v28 }
  0x40   :  { %983 = vmatpush.msrb.mxu2 %v3271_v22  ;;  %692 = vmatmul.f32.vlgmr.msra.gmra.mxu3 %v3107_v30  ;;  %v3322_v46 = vld [vmem:[%s3832_s30] sm:$0xf]  ;;  %v3338_v1 = vld [vmem:[%s3832_s30 + $0x4] sm:$0xf] }
  0x41   :  { %331 = vperm.xlu1 %2589, %v305_v14   ;;  %339 = vperm.xlu2 %2590, %v307_v15  }
  0x42   :  { %910 = vmatpush.msrb.mxu0 %v3288_v28  ;;  %755 = vmatpush.msrb.mxu3 %v3271_v22 }
  0x43   :  { %984 = vmatpush.msrb.mxu2 %v3277_v24  ;;  %831 = vmatpush.msrb.mxu1 %v3271_v22 }
  0x44   :  { %1202 = vmatpush.msra.mxu0 %v3271_v22  ;;  %756 = vmatpush.msrb.mxu3 %v3277_v24 }
  0x45   :  { %985 = vmatpush.msrb.mxu2 %v3284_v26  ;;  %832 = vmatpush.msrb.mxu1 %v3277_v24 }
  0x46   :  { %1203 = vmatpush.msra.mxu0 %v3277_v24  ;;  %757 = vmatpush.msrb.mxu3 %v3284_v26 }
  0x47   :  { %343 = vperm.xlu0 %2588, %v308_v18   ;;  %986 = vmatpush.msrb.mxu2 %v3288_v28 }
  0x48   :  { %1204 = vmatpush.msra.mxu0 %v3284_v26  ;;  %758 = vmatpush.msrb.mxu3 %v3288_v28 }
  0x49   :  { %347 = vperm.xlu1 %2589, %v309_v19   ;;  %833 = vmatpush.msrb.mxu1 %v3284_v26 }
  0x4a   :  { %1052 = vmatpush.msra.mxu3 %v3271_v22  ;;  %1205 = vmatpush.msra.mxu0 %v3288_v28 }
  0x4b   :  { %834 = vmatpush.msrb.mxu1 %v3288_v28 }
  0x4c   :  { %1053 = vmatpush.msra.mxu3 %v3277_v24 }
  0x4e   :  { %1054 = vmatpush.msra.mxu3 %v3284_v26 }
  0x50   :  { %1055 = vmatpush.msra.mxu3 %v3288_v28 }
  0x93   :  { %v336_v27 = vpop.permute.xlu2 %335 }
  0x94   :  { %v386_v50 = vmul.f32 %v336_v27, %v3296_v31 }
  0x96   :  { %v406_v60 = vmul.f32 1.442695, %v386_v50 }
  0x9b   :  { %v340_v38 = vpop.permute.xlu2 %339 }
  0x9c   :  { %v387_v42 = vmul.f32 %v340_v38, %v3310_v39 }
  0x9e   :  { %v408_v48 = vmul.f32 1.442695, %v387_v42 }
  0xa9   :  { %v320_v32 = vpop.permute.xlu0 %319 }
  0xaa   :  { %v382_v33 = vmul.f32 %v320_v32, %v3296_v31  ;;  %v511_v32 = vlaneseq }
  0xab   :  { %v328_v35 = vpop.permute.xlu1 %327 }
  0xac   :  { %v398_v36 = vmul.f32 1.442695, %v382_v33  ;;  %v384_v37 = vmul.f32 %v328_v35, %v3296_v31  ;;  %v3359_v34 = vand.u32 127, %v511_v32 }
  0xae   :  { %2602 = vpow2.f32 %v398_v36  ;;  %v402_v40 = vmul.f32 1.442695, %v384_v37 }
  0xb0   :  { %2604 = vpow2.f32 %v402_v40  ;;  %v270_v40 = vld [vmem:[#allocation6] sm:$0x3] }
  0xb1   :  { %v324_v43 = vpop.permute.xlu0 %323 }
  0xb2   :  { %v383_v44 = vmul.f32 %v324_v43, %v3310_v39 }
  0xb3   :  { %v332_v47 = vpop.permute.xlu1 %331 }
  0xb4   :  { %v2603_v49 = vpop.eup %2602  ;;  %v400_v51 = vmul.f32 1.442695, %v383_v44  ;;  %v385_v52 = vmul.f32 %v332_v47, %v3310_v39  ;;  %v272_v47 = vrot.slane %v270_v40, 6 }
  0xb5   :  { %v430_v54 = vmul.f32 %v2603_v49, %v3322_v46 }
  0xb6   :  { %v2605_v55 = vpop.eup %2604  ;;  %2606 = vpow2.f32 %v400_v51  ;;  %v404_v56 = vmul.f32 1.442695, %v385_v52  ;;  %v274_v52 = vrot.slane %v270_v40, 4 }
  0xb7   :  { %2608 = vpow2.f32 %v408_v48  ;;  %v447_v58 = vsel %vm446_vm1, %v430_v54, 0.0  ;;  %v432_v59 = vmul.f32 %v2605_v55, %v3322_v46  ;;  %v279_v54 = vsel %vm278_vm7, %v270_v40, %v272_v47 }
  0xb8   :  { %v253_v53 = vpop.f32.mrf.mxu0  ;;  %2610 = vpow2.f32 %v404_v56  ;;  %448 = vadd.xlane.f32.xlu2 %v447_v58  ;;  %v3371_v58 = vld [vmem:[#allocation9] ss:$0 sm:$0xff] }
  0xb9   :  { %v254_v57 = vadd.f32 %v253_v53, %v228_v45  ;;  %v344_v62 = vpop.permute.xlu0 %343  ;;  %v453_v63 = vsel %vm446_vm1, %v432_v59, 0.0  ;;  %2612 = vpow2.f32 %v406_v60  ;;  %v276_v59 = vrot.slane %v270_v40, 2 }
  0xba   :  { %v388_v0 = vmul.f32 %v344_v62, %v3296_v31  ;;  %454 = vadd.xlane.f32.xlu1 %v453_v63  ;;  %v281_v60 = vsel %vm3823_vm3, %v279_v54, %v274_v52 }
  0xbb   :  { %v259_v61 = vmax.f32 %v254_v57, 0.0  ;;  %v348_v2 = vpop.permute.xlu1 %347 }
  0xbc   :  { %v2607_v3 = vpop.eup %2606  ;;  %v410_v4 = vmul.f32 1.442695, %v388_v0  ;;  %v389_v5 = vmul.f32 %v348_v2, %v3310_v39 }
  0xbd   :  { %262 = vst.msk [vmem:[#allocation2] sm:$0xff] %vm261_vm2, %v259_v61  ;;  %v2609_v6 = vpop.eup %2608  ;;  %v431_v7 = vmul.f32 %v2607_v3, %v3338_v1 }
  0xbe   :  { %v2611_v8 = vpop.eup %2610  ;;  %2614 = vpow2.f32 %v410_v4  ;;  %v412_v11 = vmul.f32 1.442695, %v389_v5  ;;  %v435_v14 = vmul.f32 %v2609_v6, %v3338_v1  ;;  %v3380_v5 = vsel %vm282_vm10, %v281_v60, %v276_v59 }
  0xbf   :  { %v450_v9 = vsel %vm446_vm1, %v431_v7, 0.0  ;;  %v433_v10 = vmul.f32 %v2611_v8, %v3338_v1  ;;  %v2613_v15 = vpop.eup %2612 }
  0xc0   :  { %451 = vadd.xlane.f32.xlu0 %v450_v9  ;;  %2616 = vpow2.f32 %v412_v11  ;;  %v462_v17 = vsel %vm446_vm1, %v435_v14, 0.0  ;;  %v434_v19 = vmul.f32 %v2613_v15, %v3322_v46  ;;  %v3395_v14 = vld [vmem:[#allocation12] ss:$0 sm:$0xff] }
  0xc1   :  { %v456_v12 = vsel %vm446_vm1, %v433_v10, 0.0 }
  0xc2   :  { %457 = vadd.xlane.f32.xlu2 %v456_v12  ;;  %v459_v21 = vsel %vm446_vm1, %v434_v19, 0.0 }
  0xc3   :  { %v693_v62 = vpop.f32.mrf.mxu3 }
  0xc4   :  { %v630_v13 = vld [vmem:[#allocation2] sm:$0xff]  ;;  %v2615_v16 = vpop.eup %2614 }
  0xc5   :  { %2503 = vmatmul.msk.f32.vlgmr.msra.gmra.mxu2 %vm261_vm2, %v630_v13  ;;  %v436_v18 = vmul.f32 %v2615_v16, %v3322_v46 }
  0xc6   :  { %v2617_v23 = vpop.eup %2616 }
  0xc7   :  { %v465_v20 = vsel %vm446_vm1, %v436_v18, 0.0  ;;  %v437_v25 = vmul.f32 %v2617_v23, %v3338_v1 }
  0xc8   :  { %463 = vadd.xlane.f32.xlu0 %v462_v17  ;;  %466 = vadd.xlane.f32.xlu1 %v465_v20 }
  0xc9   :  { %v468_v27 = vsel %vm446_vm1, %v437_v25, 0.0 }
  0xca   :  { %460 = vadd.xlane.f32.xlu2 %v459_v21 }
  0xd2   :  { %469 = vadd.xlane.f32.xlu2 %v468_v27 }
 0x12b   :  { %v449_v30 = vpop.xlane.xlu2 %448 }
 0x12c   :  { %v513_v37 = vperm.slane %v449_v30, %v3359_v34 }
 0x12d   :  { %v455_v38 = vpop.xlane.xlu1 %454 }
 0x12e   :  { %v515_v43 = vperm.slane %v455_v38, %v3359_v34 }
 0x133   :  { %v452_v33 = vpop.xlane.xlu0 %451 }
 0x134   :  { %v514_v36 = vperm.slane %v452_v33, %v3359_v34 }
 0x135   :  { %v458_v35 = vpop.xlane.xlu2 %457 }
 0x136   :  { %v530_v42 = vsel %vm529_vm4, %v514_v36, %v513_v37  ;;  %v516_v44 = vperm.slane %v458_v35, %v3359_v34 }
 0x137   :  { %v532_v48 = vsel %vm531_vm5, %v515_v43, %v530_v42 }
 0x138   :  { %v534_v53 = vsel %vm533_vm6, %v516_v44, %v532_v48 }
 0x13b   :  { %v464_v51 = vpop.xlane.xlu0 %463  ;;  %v467_v56 = vpop.xlane.xlu1 %466 }
 0x13c   :  { %v518_v57 = vperm.slane %v464_v51, %v3359_v34  ;;  %v519_v63 = vperm.slane %v467_v56, %v3359_v34 }
 0x13d   :  { %v461_v49 = vpop.xlane.xlu2 %460 }
 0x13e   :  { %v517_v50 = vperm.slane %v461_v49, %v3359_v34 }
 0x140   :  { %v536_v55 = vsel %vm535_vm8, %v517_v50, %v534_v53  ;;  %v265_v53 = vld [vmem:[%s3806_s4 + $0x8] sm:$0xff] }
 0x141   :  { %v538_v61 = vsel %vm537_vm9, %v518_v57, %v536_v55  ;;  %v310_v54 = vperm.slane %v265_v53, 0  ;;  %v297_v55 = vrot.slane %v265_v53, 3  ;;  %v300_v57 = vrot.slane %v265_v53, 6 }
 0x142   :  { %v540_v6 = vsel %vm539_vm11, %v519_v63, %v538_v61 }
 0x143   :  { %v313_v56 = vperm.slane %v297_v55, 0  ;;  %v316_v59 = vperm.slane %v300_v57, 0 }
 0x145   :  { %v470_v0 = vpop.xlane.xlu2 %469 }
 0x146   :  { %v520_v3 = vperm.slane %v470_v0, %v3359_v34 }
 0x148   :  { %v663_v2 = vpop.f32.mrf.mxu2  ;;  %v542_v8 = vsel %vm3826_vm12, %v520_v3, %v540_v6  ;;  %v299_v6 = vrot.slane %v265_v53, 5 }
 0x149   :  { %v3378_v4 = vadd.f32 %v3371_v58, %v663_v2  ;;  %v3386_v9 = vadd.f32 %v542_v8, %v3380_v5 }
 0x14b   :  { %v696_v7 = vadd.f32 %v693_v62, %v3378_v4  ;;  %2499 = vmatmul.msk.f32.vlgmr.msra.gmra.mxu1 %vm3825_vm13, %v3386_v9  ;;  %v296_v62 = vrot.slane %v265_v53, 2 }
 0x14c   :  { %1127 = vmatpush.msra.mxu1 %v3271_v22 }
 0x14d   :  { %2618 = vtanh.f32 %v696_v7  ;;  %v2505_v11 = vmul.f32 -1.442695, %v696_v7  ;;  %v312_v63 = vperm.slane %v296_v62, 0  ;;  %v315_v7 = vperm.slane %v299_v6, 0 }
 0x14e   :  { %1128 = vmatpush.msra.mxu1 %v3277_v24 }
 0x14f   :  { %2620 = vpow2.f32 %v2505_v11 }
 0x150   :  { %1129 = vmatpush.msra.mxu1 %v3284_v26 }
 0x152   :  { %1130 = vmatpush.msra.mxu1 %v3288_v28 }
 0x153   :  { %v2619_v10 = vpop.eup %2618 }
 0x154   :  { %719 = vrot.lane.b32.xlu0 %v2619_v10, %s3099_s16 }
 0x155   :  { %v2621_v12 = vpop.eup %2620 }
 0x156   :  { %v700_v13 = vadd.f32 1.0, %v2621_v12 }
 0x158   :  { %2622 = vrcp.f32 %v700_v13  ;;  %vm706_vm14 = vweird.f32 %v700_v13  ;;  %v710_v21 = vand.u32 2147483647, %v700_v13  ;;  %v712_v23 = vand.u32 2147483648, %v700_v13 }
 0x15a   :  { %vm711_vm10 = vcmp.eq.f32.partialorder %v710_v21, 8.507059e+37  ;;  %v713_v30 = vor.u32 1.1754944e-38, %v712_v23 }
 0x15e   :  { %v2623_v24 = vpop.eup %2622 }
 0x15f   :  { %v702_v17 = vmul.f32 %v2623_v24, %v700_v13  ;;  %vm707_vm15 = vweird.f32 %v2623_v24 }
 0x160   :  { %vm708_vm7 = vmor %vm706_vm14, %vm707_vm15  ;;  %vm3835_vm15 = vcmask 130048  }
 0x161   :  { %v703_v19 = vsub.f32 1.0, %v702_v17 }
 0x163   :  { %v704_v20 = vmul.f32 %v2623_v24, %v703_v19 }
 0x165   :  { %v705_v25 = vadd.f32 %v2623_v24, %v704_v20 }
 0x167   :  { %v709_v33 = vsel %vm708_vm7, %v2623_v24, %v705_v25 }
 0x168   :  { %v714_v40 = vsel %vm711_vm10, %v713_v30, %v709_v33  ;;  %v295_v30 = vrot.slane %v265_v53, 1  ;;  %v298_v33 = vrot.slane %v265_v53, 4 }
 0x169   :  { %v717_v49 = vmul.f32 0.0, %v714_v40 }
 0x1c6   :  { %v720_v37 = vpop.permute.xlu0 %719 }
 0x1c7   :  { %v722_v43 = vmul.f32 %v720_v37, %v714_v40 }
 0x1c8   :  { %v586_v15 = vpop.f32.mrf.mxu1 }
 0x1c9   :  { %v587_v16 = vadd.f32 %v3395_v14, %v586_v15 }
 0x1cb   :  { %v2501_v22 = vmul.f32 -1.442695, %v587_v16 }
 0x1cd   :  { %2624 = vpow2.f32 %v2501_v22 }
 0x1d3   :  { %v2625_v18 = vpop.eup %2624 }
 0x1d4   :  { %v598_v26 = vadd.f32 1.0, %v2625_v18 }
 0x1d6   :  { %2626 = vrcp.f32 %v598_v26  ;;  %v611_v32 = vand.u32 2147483648, %v598_v26  ;;  %v609_v36 = vand.u32 2147483647, %v598_v26  ;;  %vm605_vm0 = vweird.f32 %v598_v26 }
 0x1d8   :  { %v612_v42 = vor.u32 1.1754944e-38, %v611_v32  ;;  %vm610_vm12 = vcmp.eq.f32.partialorder %v609_v36, 8.507059e+37  ;;  %v311_v32 = vperm.slane %v295_v30, 0  ;;  %v301_v36 = vrot.slane %v265_v53, 7 }
 0x1da   :  { %v317_v37 = vperm.slane %v301_v36, 0 }
 0x1dc   :  { %v2627_v28 = vpop.eup %2626 }
 0x1dd   :  { %v601_v27 = vmul.f32 %v2627_v28, %v598_v26  ;;  %vm606_vm3 = vweird.f32 %v2627_v28 }
 0x1de   :  { %vm607_vm13 = vmor %vm605_vm0, %vm606_vm3  ;;  %vm739_vm0 = vcmask 254976  }
 0x1df   :  { %v602_v29 = vsub.f32 1.0, %v601_v27 }
 0x1e1   :  { %v603_v35 = vmul.f32 %v2627_v28, %v602_v29 }
 0x1e3   :  { %v604_v38 = vadd.f32 %v2627_v28, %v603_v35  ;;  %v314_v35 = vperm.slane %v298_v33, 0 }
 0x1e5   :  { %v608_v44 = vsel %vm607_vm13, %v2627_v28, %v604_v38 }
 0x1e6   :  { %v3398_v47 = vsel %vm610_vm12, %v612_v42, %v608_v44 }
 0x1e7   :  { %v723_v48 = vmul.f32 %v722_v43, %v3398_v47 }
 0x1e9   :  { %725 = vrot.lane.b32.xlu1 %v723_v48, %s3108_s12 }
 0x25b   :  { %v726_v50 = vpop.permute.xlu1 %725 }
 0x25c   :  { %v3402_v51 = vadd.f32 %v726_v50, %v717_v49 }
 0x25e   :  { %2628 = vtanh.f32 %v3402_v51 }
 0x264   :  { %v2629_v52 = vpop.eup %2628 }
 0x265   :  { %731 = vrot.lane.b32.xlu2 %v2629_v52, %s3099_s16 }
 0x26d   :  { %351 = vperm.xlu2 %2590, %v310_v54  }
 0x275   :  { %363 = vperm.xlu2 %2590, %v313_v56  }
 0x27d   :  { %375 = vperm.xlu2 %2590, %v316_v59  }
 0x2bf   :  { %v732_v60 = vpop.permute.xlu2 %731 }
 0x2c0   :  { %v734_v61 = vmul.f32 %v732_v60, %v714_v40 }
 0x2c2   :  { %736 = vrot.lane.b32.xlu0 %v734_v61, %s3108_s12 }
 0x2c7   :  { %v352_v0 = vpop.permute.xlu2 %351 }
 0x2c8   :  { %v390_v2 = vmul.f32 %v352_v0, %v3296_v31 }
 0x2ca   :  { %v414_v3 = vmul.f32 1.442695, %v390_v2  ;;  %359 = vperm.xlu0 %2588, %v312_v63  }
 0x2cc   :  { %2630 = vpow2.f32 %v414_v3 }
 0x2cf   :  { %v364_v8 = vpop.permute.xlu2 %363 }
 0x2d0   :  { %v393_v10 = vmul.f32 %v364_v8, %v3310_v39 }
 0x2d2   :  { %v2631_v11 = vpop.eup %2630  ;;  %v420_v12 = vmul.f32 1.442695, %v393_v10  ;;  %371 = vperm.xlu0 %2588, %v315_v7  }
 0x2d3   :  { %v438_v13 = vmul.f32 %v2631_v11, %v3322_v46 }
 0x2d4   :  { %2632 = vpow2.f32 %v420_v12 }
 0x2d5   :  { %v471_v15 = vsel %vm446_vm1, %v438_v13, 0.0 }
 0x2d6   :  { %472 = vadd.xlane.f32.xlu2 %v471_v15 }
 0x2d7   :  { %v376_v16 = vpop.permute.xlu2 %375 }
 0x2d8   :  { %v396_v22 = vmul.f32 %v376_v16, %v3296_v31 }
 0x2da   :  { %v2633_v24 = vpop.eup %2632  ;;  %v426_v17 = vmul.f32 1.442695, %v396_v22 }
 0x2db   :  { %v441_v18 = vmul.f32 %v2633_v24, %v3338_v1 }
 0x2dc   :  { %2634 = vpow2.f32 %v426_v17 }
 0x2dd   :  { %v480_v26 = vsel %vm446_vm1, %v441_v18, 0.0 }
 0x2de   :  { %481 = vadd.xlane.f32.xlu2 %v480_v26 }
 0x2e2   :  { %v2635_v19 = vpop.eup %2634 }
 0x2e3   :  { %v444_v20 = vmul.f32 %v2635_v19, %v3322_v46 }
 0x2e5   :  { %v489_v28 = vsel %vm446_vm1, %v444_v20, 0.0 }
 0x2e6   :  { %490 = vadd.xlane.f32.xlu2 %v489_v28 }
 0x334   :  { %v737_v21 = vpop.permute.xlu0 %736 }
 0x335   :  { %740 = vst.msk [vmem:[#allocation2] sm:$0x3] %vm739_vm0, %v737_v21  ;;  %2506 = vmatmul.msk.f32.vlgmr.msrb.gmra.mxu3 %vm261_vm2, %v737_v21 }
 0x33c   :  { %v360_v8 = vpop.permute.xlu0 %359 }
 0x33d   :  { %v392_v12 = vmul.f32 %v360_v8, %v3296_v31 }
 0x33f   :  { %v418_v24 = vmul.f32 1.442695, %v392_v12 }
 0x344   :  { %v372_v21 = vpop.permute.xlu0 %371 }
 0x3b8   :  { %v760_v23 = vpop.f32.mrf.mxu3 }
 0x3b9   :  { %v764_v25 = vrot.slane %v760_v23, 6  ;;  %v788_v23 = vrot.slane %v3402_v51, 6 }
 0x3bb   :  { %v766_v27 = vadd.f32 %v764_v25, %v3378_v4 }
 0x3bd   :  { %2636 = vtanh.f32 %v766_v27  ;;  %v2507_v38 = vmul.f32 -1.442695, %v766_v27 }
 0x3bf   :  { %2638 = vpow2.f32 %v2507_v38 }
 0x3c3   :  { %v2637_v29 = vpop.eup %2636 }
 0x3c4   :  { %792 = vrot.lane.b32.xlu1 %v2637_v29, %s3099_s16 }
 0x3c5   :  { %v2639_v40 = vpop.eup %2638 }
 0x3c6   :  { %v770_v42 = vadd.f32 1.0, %v2639_v40 }
 0x3c8   :  { %2640 = vrcp.f32 %v770_v42  ;;  %v782_v52 = vand.u32 2147483648, %v770_v42  ;;  %vm776_vm12 = vweird.f32 %v770_v42  ;;  %v780_v54 = vand.u32 2147483647, %v770_v42 }
 0x3ca   :  { %v783_v56 = vor.u32 1.1754944e-38, %v782_v52  ;;  %vm781_vm14 = vcmp.eq.f32.partialorder %v780_v54, 8.507059e+37 }
 0x3cc   :  { %355 = vperm.xlu1 %2589, %v311_v32   ;;  %v395_v32 = vmul.f32 %v372_v21, %v3310_v39 }
 0x3ce   :  { %v2641_v43 = vpop.eup %2640  ;;  %v424_v33 = vmul.f32 1.442695, %v395_v32 }
 0x3cf   :  { %v772_v44 = vmul.f32 %v2641_v43, %v770_v42  ;;  %vm777_vm3 = vweird.f32 %v2641_v43  ;;  %v473_v42 = vpop.xlane.xlu2 %472 }
 0x3d0   :  { %vm778_vm13 = vmor %vm776_vm12, %vm777_vm3 }
 0x3d1   :  { %v773_v48 = vsub.f32 1.0, %v772_v44 }
 0x3d3   :  { %v774_v49 = vmul.f32 %v2641_v43, %v773_v48 }
 0x3d4   :  { %367 = vperm.xlu1 %2589, %v314_v35  }
 0x3d5   :  { %v775_v50 = vadd.f32 %v2641_v43, %v774_v49 }
 0x3d7   :  { %v779_v55 = vsel %vm778_vm13, %v2641_v43, %v775_v50  ;;  %v482_v44 = vpop.xlane.xlu2 %481  ;;  %vm3836_vm13 = vcmask 1043456  }
 0x3d8   :  { %v784_v57 = vsel %vm781_vm14, %v783_v56, %v779_v55  ;;  %v524_v54 = vperm.slane %v482_v44, %v3359_v34 }
 0x3d9   :  { %v790_v25 = vmul.f32 %v788_v23, %v784_v57 }
 0x3dc   :  { %379 = vperm.xlu1 %2589, %v317_v37  }
 0x3df   :  { %v491_v55 = vpop.xlane.xlu2 %490 }
 0x436   :  { %v793_v53 = vpop.permute.xlu1 %792 }
 0x437   :  { %v795_v59 = vmul.f32 %v793_v53, %v784_v57 }
 0x439   :  { %v796_v60 = vmul.f32 %v795_v59, %v3398_v47 }
 0x43b   :  { %798 = vrot.lane.b32.xlu0 %v796_v60, %s3108_s12 }
 0x43e   :  { %v356_v61 = vpop.permute.xlu1 %355 }
 0x43f   :  { %v391_v62 = vmul.f32 %v356_v61, %v3310_v39  ;;  %v527_v61 = vperm.slane %v491_v55, %v3359_v34 }
 0x441   :  { %v416_v63 = vmul.f32 1.442695, %v391_v62 }
 0x443   :  { %2642 = vpow2.f32 %v416_v63 }
 0x446   :  { %v368_v0 = vpop.permute.xlu1 %367 }
 0x447   :  { %v394_v2 = vmul.f32 %v368_v0, %v3296_v31 }
 0x449   :  { %v2643_v3 = vpop.eup %2642  ;;  %v422_v6 = vmul.f32 1.442695, %v394_v2 }
 0x44a   :  { %v439_v7 = vmul.f32 %v2643_v3, %v3338_v1 }
 0x44b   :  { %2644 = vpow2.f32 %v422_v6 }
 0x44c   :  { %v474_v10 = vsel %vm446_vm1, %v439_v7, 0.0 }
 0x44d   :  { %475 = vadd.xlane.f32.xlu1 %v474_v10 }
 0x44e   :  { %v380_v11 = vpop.permute.xlu1 %379 }
 0x44f   :  { %v397_v13 = vmul.f32 %v380_v11, %v3310_v39 }
 0x451   :  { %v2645_v15 = vpop.eup %2644  ;;  %v428_v16 = vmul.f32 1.442695, %v397_v13 }
 0x452   :  { %v442_v22 = vmul.f32 %v2645_v15, %v3322_v46 }
 0x453   :  { %2646 = vpow2.f32 %v428_v16 }
 0x454   :  { %v483_v17 = vsel %vm446_vm1, %v442_v22, 0.0  ;;  %2648 = vpow2.f32 %v418_v24 }
 0x455   :  { %484 = vadd.xlane.f32.xlu1 %v483_v17 }
 0x459   :  { %v2647_v18 = vpop.eup %2646 }
 0x45a   :  { %v445_v26 = vmul.f32 %v2647_v18, %v3338_v1  ;;  %v2649_v20 = vpop.eup %2648 }
 0x45b   :  { %v440_v31 = vmul.f32 %v2649_v20, %v3322_v46 }
 0x45c   :  { %v492_v19 = vsel %vm446_vm1, %v445_v26, 0.0 }
 0x45d   :  { %493 = vadd.xlane.f32.xlu1 %v492_v19  ;;  %v477_v28 = vsel %vm446_vm1, %v440_v31, 0.0 }
 0x465   :  { %478 = vadd.xlane.f32.xlu0 %v477_v28 }
 0x4ad   :  { %v799_v27 = vpop.permute.xlu0 %798 }
 0x4ae   :  { %v3438_v29 = vadd.f32 %v799_v27, %v790_v25 }
 0x4b0   :  { %2650 = vtanh.f32 %v3438_v29  ;;  %v864_v27 = vrot.slane %v3438_v29, 6 }
 0x4b1   :  { %2652 = vpow2.f32 %v424_v33 }
 0x4b6   :  { %v2651_v30 = vpop.eup %2650 }
 0x4b7   :  { %804 = vrot.lane.b32.xlu0 %v2651_v30, %s3099_s16  ;;  %v2653_v46 = vpop.eup %2652 }
 0x4b8   :  { %v443_v35 = vmul.f32 %v2653_v46, %v3338_v1  ;;  %v521_v1 = vperm.slane %v473_v42, %v3359_v34 }
 0x4ba   :  { %v486_v36 = vsel %vm446_vm1, %v443_v35, 0.0  ;;  %vm3833_vm1 = vcmask 1047559   ;;  %v225_v35 = vld [vmem:[%s3831_s2 + $0x8] sm:$0xff] }
 0x4bb   :  { %2497 = vmatmul.msk.f32.gmra.mxu0 %vm3835_vm15, %v225_v35 }
 0x4c0   :  { %v476_v43 = vpop.xlane.xlu1 %475 }
 0x4c1   :  { %v522_v48 = vperm.slane %v476_v43, %v3359_v34 }
 0x4c3   :  { %v543_v50 = vsel %vm529_vm4, %v522_v48, %v521_v1 }
 0x4c8   :  { %v485_v39 = vpop.xlane.xlu1 %484 }
 0x4c9   :  { %v525_v53 = vperm.slane %v485_v39, %v3359_v34 }
 0x4d8   :  { %v479_v51 = vpop.xlane.xlu0 %478 }
 0x4d9   :  { %v523_v49 = vperm.slane %v479_v51, %v3359_v34 }
 0x4db   :  { %v544_v52 = vsel %vm531_vm5, %v523_v49, %v543_v50  ;;  %vm3834_vm5 = vcmask 31744  }
 0x4dc   :  { %v545_v56 = vsel %vm533_vm6, %v524_v54, %v544_v52  ;;  %vm3837_vm14 = vmmov %vm3834_vm5 }
 0x4dd   :  { %v546_v62 = vsel %vm535_vm8, %v525_v53, %v545_v56 }
 0x4e1   :  { %487 = vadd.xlane.f32.xlu0 %v486_v36 }
 0x529   :  { %v805_v37 = vpop.permute.xlu0 %804 }
 0x52a   :  { %v3445_v38 = vmul.f32 %v805_v37, %v784_v57  ;;  %v494_v57 = vpop.xlane.xlu1 %493 }
 0x52b   :  { %v528_v63 = vperm.slane %v494_v57, %v3359_v34 }
 0x52c   :  { %v814_v40 = vrot.slane %v3445_v38, 2 }
 0x52e   :  { %815 = vrot.lane.b32.xlu0 %v814_v40, %s3108_s12 }
 0x538   :  { %v256_v40 = vpop.f32.mrf.mxu0 }
 0x539   :  { %v257_v42 = vadd.f32 %v256_v40, %v228_v45 }
 0x53b   :  { %v260_v43 = vmax.f32 %v257_v42, 0.0 }
 0x53d   :  { %263 = vst.msk [vmem:[#allocation2 + $0x8] sm:$0xff] %vm261_vm2, %v260_v43 }
 0x544   :  { %v631_v44 = vld [vmem:[#allocation2 + $0x8] sm:$0xff] }
 0x545   :  { %2504 = vmatmul.msk.f32.gmra.mxu2 %vm261_vm2, %v631_v44 }
 0x554   :  { %v488_v59 = vpop.xlane.xlu0 %487 }
 0x555   :  { %v526_v60 = vperm.slane %v488_v59, %v3359_v34 }
 0x557   :  { %v547_v0 = vsel %vm537_vm9, %v526_v60, %v546_v62 }
 0x558   :  { %v548_v2 = vsel %vm539_vm11, %v527_v61, %v547_v0 }
 0x559   :  { %v549_v3 = vsel %vm3833_vm1, %v528_v63, %v548_v2  ;;  %vm3838_vm1 = vmmov %vm3834_vm5 }
 0x55a   :  { %v3465_v6 = vadd.f32 %v549_v3, %v3380_v5 }
 0x55c   :  { %2500 = vmatmul.msk.f32.gmra.mxu1 %vm3834_vm5, %v3465_v6 }
 0x5a0   :  { %v816_v7 = vpop.permute.xlu0 %815 }
 0x5a1   :  { %2508 = vmatmul.msk.f32.vlgmr.msrb.gmra.mxu1 %vm261_vm2, %v816_v7 }
 0x5d9   :  { %v3470_v8 = vpop.f32.mrf.mxu1 }
 0x61e   :  { %v836_v10 = vpop.f32.mrf.mxu1 }
 0x61f   :  { %v840_v11 = vrot.slane %v836_v10, 4 }
 0x621   :  { %v842_v34 = vadd.f32 %v840_v11, %v3378_v4 }
 0x623   :  { %2654 = vtanh.f32 %v842_v34  ;;  %v2509_v13 = vmul.f32 -1.442695, %v842_v34 }
 0x625   :  { %2656 = vpow2.f32 %v2509_v13 }
 0x629   :  { %v2655_v12 = vpop.eup %2654 }
 0x62a   :  { %868 = vrot.lane.b32.xlu2 %v2655_v12, %s3099_s16 }
 0x62b   :  { %v2657_v5 = vpop.eup %2656 }
 0x62c   :  { %v846_v15 = vadd.f32 1.0, %v2657_v5 }
 0x62e   :  { %2658 = vrcp.f32 %v846_v15  ;;  %v858_v26 = vand.u32 2147483648, %v846_v15  ;;  %vm852_vm8 = vweird.f32 %v846_v15  ;;  %v856_v19 = vand.u32 2147483647, %v846_v15 }
 0x630   :  { %v859_v31 = vor.u32 1.1754944e-38, %v858_v26  ;;  %vm857_vm11 = vcmp.eq.f32.partialorder %v856_v19, 8.507059e+37 }
 0x634   :  { %v2659_v16 = vpop.eup %2658 }
 0x635   :  { %v848_v22 = vmul.f32 %v2659_v16, %v846_v15  ;;  %vm853_vm6 = vweird.f32 %v2659_v16  ;;  %v666_v15 = vpop.f32.mrf.mxu2 }
 0x636   :  { %vm854_vm9 = vmor %vm852_vm8, %vm853_vm6 }
 0x637   :  { %v849_v24 = vsub.f32 1.0, %v848_v22 }
 0x639   :  { %v850_v17 = vmul.f32 %v2659_v16, %v849_v24 }
 0x63b   :  { %v851_v18 = vadd.f32 %v2659_v16, %v850_v17 }
 0x63d   :  { %v855_v20 = vsel %vm854_vm9, %v2659_v16, %v851_v18  ;;  %v3510_v16 = vadd.f32 %v3371_v58, %v666_v15  ;;  %v590_v18 = vadd.f32 %v3395_v14, %v3470_v8 }
 0x63e   :  { %v860_v21 = vsel %vm857_vm11, %v859_v31, %v855_v20 }
 0x63f   :  { %v866_v30 = vmul.f32 %v864_v27, %v860_v21  ;;  %v2502_v19 = vmul.f32 -1.442695, %v590_v18 }
 0x684   :  { %v869_v28 = vpop.permute.xlu2 %868 }
 0x685   :  { %v871_v23 = vmul.f32 %v869_v28, %v860_v21 }
 0x687   :  { %v872_v25 = vmul.f32 %v871_v23, %v3398_v47 }
 0x689   :  { %874 = vrot.lane.b32.xlu1 %v872_v25, %s3108_s12 }
 0x6fb   :  { %v875_v32 = vpop.permute.xlu1 %874 }
 0x6fc   :  { %v877_v33 = vadd.f32 %v875_v32, %v866_v30 }
 0x6fe   :  { %2660 = vtanh.f32 %v877_v33  ;;  %v940_v2 = vrot.slane %v877_v33, 6 }
 0x704   :  { %v2661_v46 = vpop.eup %2660 }
 0x705   :  { %880 = vrot.lane.b32.xlu0 %v2661_v46, %s3099_s16 }
 0x777   :  { %v881_v36 = vpop.permute.xlu0 %880 }
 0x778   :  { %v3482_v51 = vmul.f32 %v881_v36, %v860_v21 }
 0x77a   :  { %v890_v37 = vrot.slane %v3482_v51, 4 }
 0x77c   :  { %891 = vrot.lane.b32.xlu2 %v890_v37, %s3108_s12 }
 0x7d6   :  { %v892_v29 = vpop.permute.xlu2 %891 }
 0x7d7   :  { %2510 = vmatmul.msk.f32.vlgmr.msrb.gmra.mxu0 %vm261_vm2, %v892_v29 }
 0x854   :  { %v912_v39 = vpop.f32.mrf.mxu0 }
 0x855   :  { %v916_v48 = vrot.slane %v912_v39, 2 }
 0x857   :  { %v918_v49 = vadd.f32 %v916_v48, %v3378_v4 }
 0x859   :  { %2662 = vtanh.f32 %v918_v49  ;;  %v2511_v50 = vmul.f32 -1.442695, %v918_v49 }
 0x85b   :  { %2664 = vpow2.f32 %v2511_v50 }
 0x85f   :  { %v2663_v1 = vpop.eup %2662 }
 0x860   :  { %944 = vrot.lane.b32.xlu0 %v2663_v1, %s3099_s16 }
 0x861   :  { %v2665_v52 = vpop.eup %2664 }
 0x862   :  { %v922_v54 = vadd.f32 1.0, %v2665_v52 }
 0x864   :  { %2666 = vrcp.f32 %v922_v54  ;;  %v934_v57 = vand.u32 2147483648, %v922_v54  ;;  %vm928_vm10 = vweird.f32 %v922_v54  ;;  %v932_v59 = vand.u32 2147483647, %v922_v54 }
 0x866   :  { %v935_v60 = vor.u32 1.1754944e-38, %v934_v57  ;;  %vm933_vm12 = vcmp.eq.f32.partialorder %v932_v59, 8.507059e+37 }
 0x86a   :  { %v2667_v41 = vpop.eup %2666 }
 0x86b   :  { %v924_v45 = vmul.f32 %v2667_v41, %v922_v54  ;;  %vm929_vm7 = vweird.f32 %v2667_v41 }
 0x86c   :  { %vm930_vm3 = vmor %vm928_vm10, %vm929_vm7 }
 0x86d   :  { %v925_v55 = vsub.f32 1.0, %v924_v45 }
 0x86f   :  { %v926_v56 = vmul.f32 %v2667_v41, %v925_v55 }
 0x871   :  { %v927_v53 = vadd.f32 %v2667_v41, %v926_v56 }
 0x873   :  { %v931_v4 = vsel %vm930_vm3, %v2667_v41, %v927_v53 }
 0x874   :  { %v936_v62 = vsel %vm933_vm12, %v935_v60, %v931_v4 }
 0x875   :  { %v942_v3 = vmul.f32 %v940_v2, %v936_v62 }
 0x8d2   :  { %v945_v61 = vpop.permute.xlu0 %944 }
 0x8d3   :  { %v947_v63 = vmul.f32 %v945_v61, %v936_v62 }
 0x8d5   :  { %v948_v0 = vmul.f32 %v947_v63, %v3398_v47  ;;  %v1261_v47 = vld [vmem:[#allocation11 + $0x4] sm:$0xf] }
 0x8d6   :  { %2520 = vmatpush.msk.msra.mxu2 %vm3836_vm13, %v1261_v47 }
 0x8d7   :  { %950 = vrot.lane.b32.xlu1 %v948_v0, %s3108_s12 }
 0x949   :  { %v951_v7 = vpop.permute.xlu1 %950 }
 0x94a   :  { %v3495_v10 = vadd.f32 %v951_v7, %v942_v3 }
 0x94c   :  { %2668 = vtanh.f32 %v3495_v10  ;;  %v1013_v1 = vrot.slane %v3495_v10, 6 }
 0x952   :  { %v2669_v11 = vpop.eup %2668 }
 0x953   :  { %956 = vrot.lane.b32.xlu2 %v2669_v11, %s3099_s16 }
 0x9ad   :  { %v957_v34 = vpop.permute.xlu2 %956 }
 0x9ae   :  { %v3499_v12 = vmul.f32 %v957_v34, %v936_v62 }
 0x9b0   :  { %v966_v13 = vrot.slane %v3499_v12, 6 }
 0x9b2   :  { %967 = vrot.lane.b32.xlu0 %v966_v13, %s3108_s12 }
 0xa24   :  { %v968_v5 = vpop.permute.xlu0 %967 }
 0xa25   :  { %2512 = vmatmul.msk.f32.vlgmr.msrb.gmra.mxu2 %vm261_vm2, %v968_v5 }
 0xa2d   :  { %2521 = vmatmul.msk.f32.vlgmr.msra.gmra.mxu2 %vm3837_vm14, %v3386_v9 }
 0xa35   :  { %2522 = vmatmul.msk.f32.gmra.mxu2 %vm3838_vm1, %v3465_v6 }
 0xaa8   :  { %v988_v22 = vpop.f32.mrf.mxu2 }
 0xaa9   :  { %v991_v24 = vadd.f32 %v988_v22, %v3510_v16 }
 0xaab   :  { %2670 = vtanh.f32 %v991_v24  ;;  %v2513_v26 = vmul.f32 -1.442695, %v991_v24 }
 0xaad   :  { %2672 = vpow2.f32 %v2513_v26 }
 0xaae   :  { %2674 = vpow2.f32 %v2502_v19 }
 0xab1   :  { %v2671_v17 = vpop.eup %2670 }
 0xab2   :  { %1017 = vrot.lane.b32.xlu1 %v2671_v17, %s3099_s16 }
 0xab3   :  { %v2673_v9 = vpop.eup %2672 }
 0xab4   :  { %v2675_v6 = vpop.eup %2674  ;;  %v995_v20 = vadd.f32 1.0, %v2673_v9 }
 0xab5   :  { %v599_v31 = vadd.f32 1.0, %v2675_v6 }
 0xab6   :  { %2676 = vrcp.f32 %v995_v20  ;;  %v1007_v14 = vand.u32 2147483648, %v995_v20  ;;  %vm1001_vm8 = vweird.f32 %v995_v20  ;;  %v1005_v46 = vand.u32 2147483647, %v995_v20 }
 0xab7   :  { %2678 = vrcp.f32 %v599_v31  ;;  %v626_v35 = vand.u32 2147483648, %v599_v31  ;;  %vm620_vm11 = vweird.f32 %v599_v31  ;;  %v624_v36 = vand.u32 2147483647, %v599_v31 }
 0xab8   :  { %v1008_v29 = vor.u32 1.1754944e-38, %v1007_v14  ;;  %vm1006_vm7 = vcmp.eq.f32.partialorder %v1005_v46, 8.507059e+37 }
 0xab9   :  { %v627_v43 = vor.u32 1.1754944e-38, %v626_v35  ;;  %vm625_vm10 = vcmp.eq.f32.partialorder %v624_v36, 8.507059e+37 }
 0xabc   :  { %v2677_v58 = vpop.eup %2676 }
 0xabd   :  { %v2679_v28 = vpop.eup %2678  ;;  %v997_v21 = vmul.f32 %v2677_v58, %v995_v20  ;;  %vm1002_vm5 = vweird.f32 %v2677_v58 }
 0xabe   :  { %v616_v23 = vmul.f32 %v2679_v28, %v599_v31  ;;  %vm621_vm6 = vweird.f32 %v2679_v28  ;;  %vm1003_vm9 = vmor %vm1001_vm8, %vm1002_vm5 }
 0xabf   :  { %v998_v25 = vsub.f32 1.0, %v997_v21  ;;  %vm622_vm15 = vmor %vm620_vm11, %vm621_vm6 }
 0xac0   :  { %v617_v27 = vsub.f32 1.0, %v616_v23 }
 0xac1   :  { %v999_v30 = vmul.f32 %v2677_v58, %v998_v25 }
 0xac2   :  { %v618_v32 = vmul.f32 %v2679_v28, %v617_v27 }
 0xac3   :  { %v1000_v33 = vadd.f32 %v2677_v58, %v999_v30 }
 0xac4   :  { %v619_v8 = vadd.f32 %v2679_v28, %v618_v32 }
 0xac5   :  { %v1004_v37 = vsel %vm1003_vm9, %v2677_v58, %v1000_v33 }
 0xac6   :  { %v623_v40 = vsel %vm622_vm15, %v2679_v28, %v619_v8  ;;  %v1009_v44 = vsel %vm1006_vm7, %v1008_v29, %v1004_v37 }
 0xac7   :  { %v3516_v48 = vsel %vm625_vm10, %v627_v43, %v623_v40  ;;  %v1015_v50 = vmul.f32 %v1013_v1, %v1009_v44  ;;  %vm812_vm10 = vcmask 257026  }
 0xb24   :  { %v1018_v42 = vpop.permute.xlu1 %1017 }
 0xb25   :  { %v1020_v39 = vmul.f32 %v1018_v42, %v1009_v44 }
 0xb27   :  { %v1021_v49 = vmul.f32 %v1020_v39, %v3516_v48 }
 0xb29   :  { %1023 = vrot.lane.b32.xlu2 %v1021_v49, %s3108_s12 }
 0xb83   :  { %v1024_v52 = vpop.permute.xlu2 %1023 }
 0xb84   :  { %v1026_v54 = vadd.f32 %v1024_v52, %v1015_v50 }
 0xb86   :  { %2680 = vtanh.f32 %v1026_v54  ;;  %v1085_v24 = vrot.slane %v1026_v54, 6 }
 0xb8c   :  { %v2681_v41 = vpop.eup %2680 }
 0xb8d   :  { %1029 = vrot.lane.b32.xlu0 %v2681_v41, %s3099_s16 }
 0xbff   :  { %v1030_v45 = vpop.permute.xlu0 %1029 }
 0xc00   :  { %v1032_v55 = vmul.f32 %v1030_v45, %v1009_v44 }
 0xc02   :  { %1034 = vrot.lane.b32.xlu1 %v1032_v55, %s3108_s12 }
 0xc74   :  { %v1035_v56 = vpop.permute.xlu1 %1034 }
 0xc75   :  { %1037 = vst.msk [vmem:[#allocation2 + $0x8] sm:$0x3] %vm739_vm0, %v1035_v56  ;;  %2514 = vmatmul.msk.f32.vlgmr.msra.gmra.mxu3 %vm261_vm2, %v1035_v56 }
 0xcf8   :  { %v1057_v53 = vpop.f32.mrf.mxu3 }
 0xcf9   :  { %v1061_v57 = vrot.slane %v1057_v53, 6 }
 0xcfb   :  { %v1063_v59 = vadd.f32 %v1061_v57, %v3510_v16 }
 0xcfd   :  { %2682 = vtanh.f32 %v1063_v59  ;;  %v2515_v60 = vmul.f32 -1.442695, %v1063_v59 }
 0xcff   :  { %2684 = vpow2.f32 %v2515_v60 }
 0xd03   :  { %v2683_v4 = vpop.eup %2682 }
 0xd04   :  { %1089 = vrot.lane.b32.xlu2 %v2683_v4, %s3099_s16 }
 0xd05   :  { %v2685_v61 = vpop.eup %2684 }
 0xd06   :  { %v1067_v62 = vadd.f32 1.0, %v2685_v61 }
 0xd08   :  { %2686 = vrcp.f32 %v1067_v62  ;;  %v1079_v10 = vand.u32 2147483648, %v1067_v62  ;;  %vm1073_vm12 = vweird.f32 %v1067_v62  ;;  %v1077_v11 = vand.u32 2147483647, %v1067_v62 }
 0xd0a   :  { %v1080_v13 = vor.u32 1.1754944e-38, %v1079_v10  ;;  %vm1078_vm14 = vcmp.eq.f32.partialorder %v1077_v11, 8.507059e+37 }
 0xd0e   :  { %v2687_v63 = vpop.eup %2686 }
 0xd0f   :  { %v1069_v0 = vmul.f32 %v2687_v63, %v1067_v62  ;;  %vm1074_vm3 = vweird.f32 %v2687_v63 }
 0xd10   :  { %vm1075_vm13 = vmor %vm1073_vm12, %vm1074_vm3  ;;  %vm888_vm3 = vcmask 259076   ;;  %vm964_vm12 = vcmask 261126  }
 0xd11   :  { %v1070_v2 = vsub.f32 1.0, %v1069_v0 }
 0xd13   :  { %v1071_v3 = vmul.f32 %v2687_v63, %v1070_v2 }
 0xd15   :  { %v1072_v7 = vadd.f32 %v2687_v63, %v1071_v3 }
 0xd17   :  { %v1076_v34 = vsel %vm1075_vm13, %v2687_v63, %v1072_v7 }
 0xd18   :  { %v1081_v5 = vsel %vm1078_vm14, %v1080_v13, %v1076_v34 }
 0xd19   :  { %v1087_v17 = vmul.f32 %v1085_v24, %v1081_v5 }
 0xd5e   :  { %v1090_v47 = vpop.permute.xlu2 %1089 }
 0xd5f   :  { %v1092_v15 = vmul.f32 %v1090_v47, %v1081_v5 }
 0xd61   :  { %v1093_v22 = vmul.f32 %v1092_v15, %v3516_v48 }
 0xd63   :  { %1095 = vrot.lane.b32.xlu0 %v1093_v22, %s3108_s12 }
 0xdd5   :  { %v1096_v18 = vpop.permute.xlu0 %1095 }
 0xdd6   :  { %v1098_v26 = vadd.f32 %v1096_v18, %v1087_v17 }
 0xdd8   :  { %2688 = vtanh.f32 %v1098_v26  ;;  %v1160_v39 = vrot.slane %v1098_v26, 6 }
 0xdde   :  { %v2689_v19 = vpop.eup %2688 }
 0xddf   :  { %1101 = vrot.lane.b32.xlu1 %v2689_v19, %s3099_s16  ;;  %v2526_v19 = vld [vmem:[%s3808_s6 + $0x28] sm:$0xff] }
 0xe51   :  { %v1102_v9 = vpop.permute.xlu1 %1101 }
 0xe52   :  { %v3530_v6 = vmul.f32 %v1102_v9, %v1081_v5  ;;  %v2525_v9 = vld [vmem:[%s3808_s6 + $0x20] sm:$0xff] }
 0xe54   :  { %v1110_v20 = vrot.slane %v3530_v6, 2 }
 0xe56   :  { %1111 = vrot.lane.b32.xlu2 %v1110_v20, %s3108_s12  ;;  %v3575_v20 = vld [vmem:[#allocation8 + $0x30] sm:$0xff] }
 0xeb0   :  { %v1112_v31 = vpop.permute.xlu2 %1111 }
 0xeb1   :  { %2516 = vmatmul.msk.f32.vlgmr.msra.gmra.mxu1 %vm261_vm2, %v1112_v31  ;;  %v3579_v31 = vld [vmem:[#allocation8 + $0x28] sm:$0xff] }
 0xf2e   :  { %v1132_v58 = vpop.f32.mrf.mxu1 }
 0xf2f   :  { %v1136_v28 = vrot.slane %v1132_v58, 4  ;;  %v3585_v58 = vld [vmem:[#allocation8 + $0x20] sm:$0xff] }
 0xf31   :  { %v1138_v21 = vadd.f32 %v1136_v28, %v3510_v16 }
 0xf33   :  { %2690 = vtanh.f32 %v1138_v21  ;;  %v2517_v25 = vmul.f32 -1.442695, %v1138_v21 }
 0xf35   :  { %2692 = vpow2.f32 %v2517_v25 }
 0xf39   :  { %v2691_v23 = vpop.eup %2690 }
 0xf3a   :  { %1164 = vrot.lane.b32.xlu0 %v2691_v23, %s3099_s16 }
 0xf3b   :  { %v2693_v27 = vpop.eup %2692 }
 0xf3c   :  { %v1142_v30 = vadd.f32 1.0, %v2693_v27 }
 0xf3e   :  { %2694 = vrcp.f32 %v1142_v30  ;;  %v1154_v35 = vand.u32 2147483648, %v1142_v30  ;;  %vm1148_vm5 = vweird.f32 %v1142_v30  ;;  %v1152_v36 = vand.u32 2147483647, %v1142_v30 }
 0xf40   :  { %v1155_v29 = vor.u32 1.1754944e-38, %v1154_v35  ;;  %vm1153_vm8 = vcmp.eq.f32.partialorder %v1152_v36, 8.507059e+37  ;;  %v3623_v36 = vld [vmem:[#allocation12 + $0x1] ss:$0 sm:$0xff] }
 0xf44   :  { %v2695_v32 = vpop.eup %2694 }
 0xf45   :  { %v1144_v33 = vmul.f32 %v2695_v32, %v1142_v30  ;;  %vm1149_vm1 = vweird.f32 %v2695_v32 }
 0xf46   :  { %vm1150_vm6 = vmor %vm1148_vm5, %vm1149_vm1 }
 0xf47   :  { %v1145_v14 = vsub.f32 1.0, %v1144_v33 }
 0xf49   :  { %v1146_v8 = vmul.f32 %v2695_v32, %v1145_v14 }
 0xf4b   :  { %v1147_v46 = vadd.f32 %v2695_v32, %v1146_v8 }
 0xf4d   :  { %v1151_v37 = vsel %vm1150_vm6, %v2695_v32, %v1147_v46  ;;  %v3616_v32 = vld [vmem:[#allocation9 + $0x1] ss:$0 sm:$0xff] }
 0xf4e   :  { %v1156_v42 = vsel %vm1153_vm8, %v1155_v29, %v1151_v37  ;;  %v1287_v37 = vpop.f32.mrf.mxu2 }
 0xf4f   :  { %v1162_v49 = vmul.f32 %v1160_v39, %v1156_v42  ;;  %v1288_v29 = vadd.f32 %v3623_v36, %v1287_v37 }
 0xfac   :  { %v1165_v40 = vpop.permute.xlu0 %1164 }
 0xfad   :  { %v1167_v43 = vmul.f32 %v1165_v40, %v1156_v42 }
 0xfaf   :  { %v1168_v44 = vmul.f32 %v1167_v43, %v3516_v48 }
 0xfb1   :  { %1170 = vrot.lane.b32.xlu1 %v1168_v44, %s3108_s12 }
0x1023   :  { %v1171_v1 = vpop.permute.xlu1 %1170 }
0x1024   :  { %v1173_v50 = vadd.f32 %v1171_v1, %v1162_v49 }
0x1026   :  { %2696 = vtanh.f32 %v1173_v50  ;;  %v1235_v15 = vrot.slane %v1173_v50, 6 }
0x102c   :  { %v2697_v52 = vpop.eup %2696 }
0x102d   :  { %1176 = vrot.lane.b32.xlu2 %v2697_v52, %s3099_s16 }
0x1087   :  { %v1177_v54 = vpop.permute.xlu2 %1176 }
0x1088   :  { %v3540_v41 = vmul.f32 %v1177_v54, %v1156_v42  ;;  %v2523_v42 = vmul.f32 -1.442695, %v1288_v29 }
0x108a   :  { %v1185_v45 = vrot.slane %v3540_v41, 4 }
0x108c   :  { %1186 = vrot.lane.b32.xlu0 %v1185_v45, %s3108_s12 }
0x10fe   :  { %v1187_v55 = vpop.permute.xlu0 %1186 }
0x10ff   :  { %2518 = vmatmul.msk.f32.vlgmr.msra.gmra.mxu0 %vm261_vm2, %v1187_v55 }
0x117c   :  { %v1207_v56 = vpop.f32.mrf.mxu0 }
0x117d   :  { %v1211_v53 = vrot.slane %v1207_v56, 2 }
0x117f   :  { %v1213_v57 = vadd.f32 %v1211_v53, %v3510_v16 }
0x1181   :  { %2698 = vtanh.f32 %v1213_v57  ;;  %v2519_v4 = vmul.f32 -1.442695, %v1213_v57 }
0x1183   :  { %2700 = vpow2.f32 %v2519_v4 }
0x1187   :  { %v2699_v59 = vpop.eup %2698 }
0x1188   :  { %1239 = vrot.lane.b32.xlu1 %v2699_v59, %s3099_s16 }
0x1189   :  { %v2701_v60 = vpop.eup %2700 }
0x118a   :  { %v1217_v61 = vadd.f32 1.0, %v2701_v60 }
0x118c   :  { %2702 = vrcp.f32 %v1217_v61  ;;  %v1229_v7 = vand.u32 2147483648, %v1217_v61  ;;  %vm1223_vm11 = vweird.f32 %v1217_v61  ;;  %v1227_v16 = vand.u32 2147483647, %v1217_v61 }
0x118e   :  { %v1230_v11 = vor.u32 1.1754944e-38, %v1229_v7  ;;  %vm1228_vm7 = vcmp.eq.f32.partialorder %v1227_v16, 8.507059e+37 }
0x1190   :  { %809 = vrot.lane.b32.xlu1 %v3445_v38, %s3108_s12 }
0x1192   :  { %v2703_v62 = vpop.eup %2702 }
0x1193   :  { %v1219_v63 = vmul.f32 %v2703_v62, %v1217_v61  ;;  %vm1224_vm9 = vweird.f32 %v2703_v62 }
0x1194   :  { %vm1225_vm15 = vmor %vm1223_vm11, %vm1224_vm9 }
0x1195   :  { %v1220_v0 = vsub.f32 1.0, %v1219_v63 }
0x1197   :  { %v1221_v2 = vmul.f32 %v2703_v62, %v1220_v0 }
0x1199   :  { %v1222_v3 = vadd.f32 %v2703_v62, %v1221_v2 }
0x119b   :  { %v1226_v10 = vsel %vm1225_vm15, %v2703_v62, %v1222_v3 }
0x119c   :  { %v1231_v38 = vsel %vm1228_vm7, %v1230_v11, %v1226_v10 }
0x119d   :  { %v1237_v22 = vmul.f32 %v1235_v15, %v1231_v38 }
0x11fa   :  { %v1240_v34 = vpop.permute.xlu1 %1239 }
0x11fb   :  { %v1242_v13 = vmul.f32 %v1240_v34, %v1231_v38 }
0x11fd   :  { %v1243_v47 = vmul.f32 %v1242_v13, %v3516_v48  ;;  %v2527_v48 = vld [vmem:[%s3808_s6 + $0x30] sm:$0xff] }
0x11ff   :  { %1245 = vrot.lane.b32.xlu2 %v1243_v47, %s3108_s12 }
0x1202   :  { %v810_v5 = vpop.permute.xlu1 %809 }
0x1203   :  { %813 = vst.msk [vmem:[#allocation2] sm:$0xc] %vm812_vm10, %v810_v5 }
0x1207   :  { %885 = vrot.lane.b32.xlu2 %v3482_v51, %s3108_s12  ;;  %v2528_v51 = vld [vmem:[%s3808_s6 + $0x38] sm:$0xff] }
0x1208   :  { %1361 = vmatpush.msrb.mxu3 %v2528_v51 }
0x120a   :  { %1362 = vmatpush.msrb.mxu3 %v2527_v48 }
0x120c   :  { %1363 = vmatpush.msrb.mxu3 %v2526_v19 }
0x120e   :  { %1364 = vmatpush.msrb.mxu3 %v2525_v9 }
0x1259   :  { %v1246_v24 = vpop.permute.xlu2 %1245 }
0x125a   :  { %v3554_v17 = vadd.f32 %v1246_v24, %v1237_v22 }
0x125c   :  { %2704 = vtanh.f32 %v3554_v17 }
0x1261   :  { %v886_v18 = vpop.permute.xlu2 %885 }
0x1262   :  { %v2705_v26 = vpop.eup %2704  ;;  %889 = vst.msk [vmem:[#allocation2] sm:$0x30] %vm888_vm3, %v886_v18 }
0x1263   :  { %1251 = vrot.lane.b32.xlu0 %v2705_v26, %s3099_s16 }
0x126b   :  { %961 = vrot.lane.b32.xlu0 %v3499_v12, %s3108_s12  ;;  %v3573_v12 = vld [vmem:[#allocation8 + $0x38] sm:$0xff] }
0x126c   :  { %1394 = vmatpush.msrb.mxu1 %v3573_v12  ;;  %1463 = vmatpush.msrb.mxu0 %v3573_v12 }
0x126d   :  { %1688 = vmatpush.msrb.mxu2 %v3573_v12  ;;  %1757 = vmatpush.msra.mxu3 %v3573_v12 }
0x126e   :  { %1395 = vmatpush.msrb.mxu1 %v3575_v20  ;;  %1464 = vmatpush.msrb.mxu0 %v3575_v20 }
0x126f   :  { %1689 = vmatpush.msrb.mxu2 %v3575_v20  ;;  %1758 = vmatpush.msra.mxu3 %v3575_v20 }
0x1270   :  { %1396 = vmatpush.msrb.mxu1 %v3579_v31  ;;  %1465 = vmatpush.msrb.mxu0 %v3579_v31 }
0x1271   :  { %1690 = vmatpush.msrb.mxu2 %v3579_v31  ;;  %1759 = vmatpush.msra.mxu3 %v3579_v31 }
0x1272   :  { %1397 = vmatpush.msrb.mxu1 %v3585_v58  ;;  %1466 = vmatpush.msrb.mxu0 %v3585_v58 }
0x1273   :  { %1691 = vmatpush.msrb.mxu2 %v3585_v58  ;;  %1760 = vmatpush.msra.mxu3 %v3585_v58 }
0x1274   :  { %1538 = vmatpush.msra.mxu1 %v3573_v12  ;;  %1613 = vmatpush.msra.mxu0 %v3573_v12 }
0x1276   :  { %1539 = vmatpush.msra.mxu1 %v3575_v20  ;;  %1614 = vmatpush.msra.mxu0 %v3575_v20 }
0x1278   :  { %1540 = vmatpush.msra.mxu1 %v3579_v31  ;;  %1615 = vmatpush.msra.mxu0 %v3579_v31 }
0x127a   :  { %1541 = vmatpush.msra.mxu1 %v3585_v58  ;;  %1616 = vmatpush.msra.mxu0 %v3585_v58 }
0x12d5   :  { %v1252_v28 = vpop.permute.xlu0 %1251 }
0x12d6   :  { %v3605_v21 = vmul.f32 %v1252_v28, %v1231_v38  ;;  %v1424_v38 = vrot.slane %v3554_v17, 6 }
0x12d8   :  { %v1377_v23 = vrot.slane %v3605_v21, 6 }
0x12da   :  { %1378 = vrot.lane.b32.xlu1 %v1377_v23, %s3108_s12 }
0x12dd   :  { %v962_v25 = vpop.permute.xlu0 %961 }
0x12de   :  { %965 = vst.msk [vmem:[#allocation2] sm:$0xc0] %vm964_vm12, %v962_v25 }
0x12e5   :  { %v1331_v27 = vld [vmem:[#allocation2] sm:$0xff] }
0x12e6   :  { %2529 = vmatmul.msk.f32.vlgmr.msrb.gmra.mxu3 %vm261_vm2, %v1331_v27 }
0x134c   :  { %v1379_v30 = vpop.permute.xlu1 %1378 }
0x134d   :  { %2531 = vmatmul.msk.f32.vlgmr.msrb.gmra.mxu1 %vm261_vm2, %v1379_v30 }
0x134e   :  { %1832 = vmatpush.msrb.mxu1 %v3573_v12 }
0x1350   :  { %1833 = vmatpush.msrb.mxu1 %v3575_v20 }
0x1352   :  { %1834 = vmatpush.msrb.mxu1 %v3579_v31 }
0x1354   :  { %1835 = vmatpush.msrb.mxu1 %v3585_v58 }
0x1369   :  { %v1366_v33 = vpop.f32.mrf.mxu3 }
0x136a   :  { %v3619_v14 = vadd.f32 %v3616_v32, %v1366_v33 }
0x13ca   :  { %v1399_v8 = vpop.f32.mrf.mxu1 }
0x13cb   :  { %v1402_v46 = vadd.f32 %v1399_v8, %v3619_v14 }
0x13cd   :  { %2706 = vtanh.f32 %v1402_v46  ;;  %v2532_v40 = vmul.f32 -1.442695, %v1402_v46 }
0x13cf   :  { %2708 = vpow2.f32 %v2532_v40 }
0x13d0   :  { %2710 = vpow2.f32 %v2523_v42 }
0x13d3   :  { %v2707_v35 = vpop.eup %2706 }
0x13d4   :  { %1428 = vrot.lane.b32.xlu2 %v2707_v35, %s3099_s16 }
0x13d5   :  { %v2709_v43 = vpop.eup %2708 }
0x13d6   :  { %v2711_v44 = vpop.eup %2710  ;;  %v1406_v39 = vadd.f32 1.0, %v2709_v43 }
0x13d7   :  { %v1299_v49 = vadd.f32 1.0, %v2711_v44 }
0x13d8   :  { %2712 = vrcp.f32 %v1406_v39  ;;  %v1418_v59 = vand.u32 2147483648, %v1406_v39  ;;  %vm1412_vm1 = vweird.f32 %v1406_v39  ;;  %v1416_v60 = vand.u32 2147483647, %v1406_v39 }
0x13d9   :  { %2714 = vrcp.f32 %v1299_v49  ;;  %v1312_v61 = vand.u32 2147483648, %v1299_v49  ;;  %vm1306_vm6 = vweird.f32 %v1299_v49  ;;  %v1310_v62 = vand.u32 2147483647, %v1299_v49 }
0x13da   :  { %v1419_v0 = vor.u32 1.1754944e-38, %v1418_v59  ;;  %vm1417_vm9 = vcmp.eq.f32.partialorder %v1416_v60, 8.507059e+37 }
0x13db   :  { %v1313_v3 = vor.u32 1.1754944e-38, %v1312_v61  ;;  %vm1311_vm11 = vcmp.eq.f32.partialorder %v1310_v62, 8.507059e+37 }
0x13de   :  { %v2713_v1 = vpop.eup %2712 }
0x13df   :  { %v2715_v50 = vpop.eup %2714  ;;  %v1408_v52 = vmul.f32 %v2713_v1, %v1406_v39  ;;  %vm1413_vm13 = vweird.f32 %v2713_v1 }
0x13e0   :  { %v1302_v54 = vmul.f32 %v2715_v50, %v1299_v49  ;;  %vm1307_vm14 = vweird.f32 %v2715_v50  ;;  %vm1414_vm5 = vmor %vm1412_vm1, %vm1413_vm13 }
0x13e1   :  { %v1409_v45 = vsub.f32 1.0, %v1408_v52  ;;  %vm1308_vm8 = vmor %vm1306_vm6, %vm1307_vm14 }
0x13e2   :  { %v1303_v55 = vsub.f32 1.0, %v1302_v54 }
0x13e3   :  { %v1410_v56 = vmul.f32 %v2713_v1, %v1409_v45 }
0x13e4   :  { %v1304_v53 = vmul.f32 %v2715_v50, %v1303_v55 }
0x13e5   :  { %v1411_v57 = vadd.f32 %v2713_v1, %v1410_v56 }
0x13e6   :  { %v1305_v4 = vadd.f32 %v2715_v50, %v1304_v53 }
0x13e7   :  { %v1415_v63 = vsel %vm1414_vm5, %v2713_v1, %v1411_v57 }
0x13e8   :  { %v1309_v2 = vsel %vm1308_vm8, %v2715_v50, %v1305_v4  ;;  %v1420_v16 = vsel %vm1417_vm9, %v1419_v0, %v1415_v63 }
0x13e9   :  { %v3626_v11 = vsel %vm1311_vm11, %v1313_v3, %v1309_v2  ;;  %v1426_v13 = vmul.f32 %v1424_v38, %v1420_v16 }
0x142e   :  { %v1429_v7 = vpop.permute.xlu2 %1428 }
0x142f   :  { %v1431_v10 = vmul.f32 %v1429_v7, %v1420_v16 }
0x1431   :  { %v1432_v34 = vmul.f32 %v1431_v10, %v3626_v11 }
0x1433   :  { %1434 = vrot.lane.b32.xlu0 %v1432_v34, %s3108_s12 }
0x14a5   :  { %v1435_v47 = vpop.permute.xlu0 %1434 }
0x14a6   :  { %v1437_v5 = vadd.f32 %v1435_v47, %v1426_v13 }
0x14a8   :  { %2716 = vtanh.f32 %v1437_v5  ;;  %v1496_v29 = vrot.slane %v1437_v5, 6 }
0x14ae   :  { %v2717_v15 = vpop.eup %2716 }
0x14af   :  { %1440 = vrot.lane.b32.xlu1 %v2717_v15, %s3099_s16 }
0x1521   :  { %v1441_v22 = vpop.permute.xlu1 %1440 }
0x1522   :  { %v1443_v24 = vmul.f32 %v1441_v22, %v1420_v16 }
0x1524   :  { %1445 = vrot.lane.b32.xlu2 %v1443_v24, %s3108_s12 }
0x157e   :  { %v1446_v18 = vpop.permute.xlu2 %1445 }
0x157f   :  { %1448 = vst.msk [vmem:[#allocation2] sm:$0x3] %vm739_vm0, %v1446_v18  ;;  %2533 = vmatmul.msk.f32.vlgmr.msrb.gmra.mxu0 %vm261_vm2, %v1446_v18 }
0x1580   :  { %1907 = vmatpush.msrb.mxu0 %v3573_v12 }
0x1582   :  { %1908 = vmatpush.msrb.mxu0 %v3575_v20 }
0x1584   :  { %1909 = vmatpush.msrb.mxu0 %v3579_v31 }
0x1586   :  { %1910 = vmatpush.msrb.mxu0 %v3585_v58 }
0x15fc   :  { %v1468_v17 = vpop.f32.mrf.mxu0 }
0x15fd   :  { %v1472_v26 = vrot.slane %v1468_v17, 6 }
0x15ff   :  { %v1474_v51 = vadd.f32 %v1472_v26, %v3619_v14 }
0x1601   :  { %2718 = vtanh.f32 %v1474_v51  ;;  %v2534_v19 = vmul.f32 -1.442695, %v1474_v51 }
0x1603   :  { %2720 = vpow2.f32 %v2534_v19 }
0x1607   :  { %v2719_v48 = vpop.eup %2718 }
0x1608   :  { %1500 = vrot.lane.b32.xlu0 %v2719_v48, %s3099_s16 }
0x1609   :  { %v2721_v9 = vpop.eup %2720 }
0x160a   :  { %v1478_v28 = vadd.f32 1.0, %v2721_v9 }
0x160c   :  { %2722 = vrcp.f32 %v1478_v28  ;;  %v1490_v58 = vand.u32 2147483648, %v1478_v28  ;;  %vm1484_vm7 = vweird.f32 %v1478_v28  ;;  %v1488_v27 = vand.u32 2147483647, %v1478_v28 }
0x160e   :  { %v1491_v33 = vor.u32 1.1754944e-38, %v1490_v58  ;;  %vm1489_vm14 = vcmp.eq.f32.partialorder %v1488_v27, 8.507059e+37 }
0x1612   :  { %v2723_v12 = vpop.eup %2722 }
0x1613   :  { %v1480_v23 = vmul.f32 %v2723_v12, %v1478_v28  ;;  %vm1485_vm15 = vweird.f32 %v2723_v12 }
0x1614   :  { %vm1486_vm13 = vmor %vm1484_vm7, %vm1485_vm15 }
0x1615   :  { %v1481_v20 = vsub.f32 1.0, %v1480_v23 }
0x1617   :  { %v1482_v25 = vmul.f32 %v2723_v12, %v1481_v20 }
0x1619   :  { %v1483_v31 = vadd.f32 %v2723_v12, %v1482_v25 }
0x161b   :  { %v1487_v30 = vsel %vm1486_vm13, %v2723_v12, %v1483_v31 }
0x161c   :  { %v1492_v46 = vsel %vm1489_vm14, %v1491_v33, %v1487_v30 }
0x161d   :  { %v1498_v40 = vmul.f32 %v1496_v29, %v1492_v46 }
0x167a   :  { %v1501_v8 = vpop.permute.xlu0 %1500 }
0x167b   :  { %v1503_v35 = vmul.f32 %v1501_v8, %v1492_v46 }
0x167d   :  { %v1504_v37 = vmul.f32 %v1503_v35, %v3626_v11 }
0x167f   :  { %1506 = vrot.lane.b32.xlu1 %v1504_v37, %s3108_s12 }
0x16f1   :  { %v1507_v42 = vpop.permute.xlu1 %1506 }
0x16f2   :  { %v1509_v43 = vadd.f32 %v1507_v42, %v1498_v40 }
0x16f4   :  { %2724 = vtanh.f32 %v1509_v43  ;;  %v1571_v38 = vrot.slane %v1509_v43, 6 }
0x16fa   :  { %v2725_v44 = vpop.eup %2724 }
0x16fb   :  { %1512 = vrot.lane.b32.xlu2 %v2725_v44, %s3099_s16 }
0x1755   :  { %v1513_v39 = vpop.permute.xlu2 %1512 }
0x1756   :  { %v3644_v49 = vmul.f32 %v1513_v39, %v1492_v46 }
0x1758   :  { %v1521_v1 = vrot.slane %v3644_v49, 2 }
0x175a   :  { %1522 = vrot.lane.b32.xlu0 %v1521_v1, %s3108_s12 }
0x17cc   :  { %v1523_v50 = vpop.permute.xlu0 %1522 }
0x17cd   :  { %2535 = vmatmul.msk.f32.vlgmr.msra.gmra.mxu1 %vm261_vm2, %v1523_v50 }
0x184a   :  { %v1543_v52 = vpop.f32.mrf.mxu1 }
0x184b   :  { %v1547_v54 = vrot.slane %v1543_v52, 4 }
0x184d   :  { %v1549_v45 = vadd.f32 %v1547_v54, %v3619_v14 }
0x184f   :  { %2726 = vtanh.f32 %v1549_v45  ;;  %v2536_v56 = vmul.f32 -1.442695, %v1549_v45  ;;  %v1290_v45 = vpop.f32.mrf.mxu2 }
0x1851   :  { %2728 = vpow2.f32 %v2536_v56 }
0x1855   :  { %v2727_v55 = vpop.eup %2726 }
0x1856   :  { %1575 = vrot.lane.b32.xlu1 %v2727_v55, %s3099_s16 }
0x1857   :  { %v2729_v53 = vpop.eup %2728 }
0x1858   :  { %v1553_v57 = vadd.f32 1.0, %v2729_v53 }
0x185a   :  { %2730 = vrcp.f32 %v1553_v57  ;;  %v1565_v63 = vand.u32 2147483648, %v1553_v57  ;;  %vm1559_vm5 = vweird.f32 %v1553_v57  ;;  %v1563_v0 = vand.u32 2147483647, %v1553_v57 }
0x185c   :  { %v1566_v3 = vor.u32 1.1754944e-38, %v1565_v63  ;;  %vm1564_vm8 = vcmp.eq.f32.partialorder %v1563_v0, 8.507059e+37 }
0x1860   :  { %v2731_v59 = vpop.eup %2730 }
0x1861   :  { %v1555_v4 = vmul.f32 %v2731_v59, %v1553_v57  ;;  %vm1560_vm1 = vweird.f32 %v2731_v59 }
0x1862   :  { %vm1561_vm6 = vmor %vm1559_vm5, %vm1560_vm1 }
0x1863   :  { %v1556_v60 = vsub.f32 1.0, %v1555_v4 }
0x1865   :  { %v1557_v61 = vmul.f32 %v2731_v59, %v1556_v60 }
0x1867   :  { %v1558_v62 = vadd.f32 %v2731_v59, %v1557_v61 }
0x1869   :  { %v1562_v2 = vsel %vm1561_vm6, %v2731_v59, %v1558_v62  ;;  %v1291_v59 = vadd.f32 %v3623_v36, %v1290_v45 }
0x186a   :  { %v1567_v16 = vsel %vm1564_vm8, %v1566_v3, %v1562_v2 }
0x186b   :  { %v1573_v13 = vmul.f32 %v1571_v38, %v1567_v16  ;;  %v2524_v60 = vmul.f32 -1.442695, %v1291_v59 }
0x18c8   :  { %v1576_v7 = vpop.permute.xlu1 %1575 }
0x18c9   :  { %v1578_v10 = vmul.f32 %v1576_v7, %v1567_v16 }
0x18cb   :  { %v1579_v34 = vmul.f32 %v1578_v10, %v3626_v11 }
0x18cd   :  { %1581 = vrot.lane.b32.xlu2 %v1579_v34, %s3108_s12 }
0x1927   :  { %v1582_v47 = vpop.permute.xlu2 %1581 }
0x1928   :  { %v1584_v5 = vadd.f32 %v1582_v47, %v1573_v13 }
0x192a   :  { %2732 = vtanh.f32 %v1584_v5  ;;  %v1646_v29 = vrot.slane %v1584_v5, 6 }
0x1930   :  { %v2733_v15 = vpop.eup %2732 }
0x1931   :  { %1587 = vrot.lane.b32.xlu0 %v2733_v15, %s3099_s16 }
0x19a3   :  { %v1588_v22 = vpop.permute.xlu0 %1587 }
0x19a4   :  { %v3654_v24 = vmul.f32 %v1588_v22, %v1567_v16 }
0x19a6   :  { %v1596_v18 = vrot.slane %v3654_v24, 4 }
0x19a8   :  { %1597 = vrot.lane.b32.xlu1 %v1596_v18, %s3108_s12 }
0x1a1a   :  { %v1598_v17 = vpop.permute.xlu1 %1597 }
0x1a1b   :  { %2537 = vmatmul.msk.f32.vlgmr.msra.gmra.mxu0 %vm261_vm2, %v1598_v17 }
0x1a98   :  { %v1618_v26 = vpop.f32.mrf.mxu0 }
0x1a99   :  { %v1622_v51 = vrot.slane %v1618_v26, 2 }
0x1a9b   :  { %v1624_v48 = vadd.f32 %v1622_v51, %v3619_v14 }
0x1a9d   :  { %2734 = vtanh.f32 %v1624_v48  ;;  %v2538_v9 = vmul.f32 -1.442695, %v1624_v48 }
0x1a9f   :  { %2736 = vpow2.f32 %v2538_v9 }
0x1aa3   :  { %v2735_v19 = vpop.eup %2734 }
0x1aa4   :  { %1650 = vrot.lane.b32.xlu2 %v2735_v19, %s3099_s16 }
0x1aa5   :  { %v2737_v28 = vpop.eup %2736 }
0x1aa6   :  { %v1628_v12 = vadd.f32 1.0, %v2737_v28 }
0x1aa8   :  { %2738 = vrcp.f32 %v1628_v12  ;;  %v1640_v27 = vand.u32 2147483648, %v1628_v12  ;;  %vm1634_vm11 = vweird.f32 %v1628_v12  ;;  %v1638_v14 = vand.u32 2147483647, %v1628_v12 }
0x1aaa   :  { %v1641_v33 = vor.u32 1.1754944e-38, %v1640_v27  ;;  %vm1639_vm7 = vcmp.eq.f32.partialorder %v1638_v14, 8.507059e+37 }
0x1aac   :  { %1106 = vrot.lane.b32.xlu2 %v3530_v6, %s3108_s12 }
0x1aae   :  { %v2739_v23 = vpop.eup %2738 }
0x1aaf   :  { %v1630_v20 = vmul.f32 %v2739_v23, %v1628_v12  ;;  %vm1635_vm9 = vweird.f32 %v2739_v23 }
0x1ab0   :  { %vm1636_vm15 = vmor %vm1634_vm11, %vm1635_vm9 }
0x1ab1   :  { %v1631_v25 = vsub.f32 1.0, %v1630_v20 }
0x1ab3   :  { %v1632_v31 = vmul.f32 %v2739_v23, %v1631_v25 }
0x1ab5   :  { %v1633_v58 = vadd.f32 %v2739_v23, %v1632_v31 }
0x1ab7   :  { %v1637_v30 = vsel %vm1636_vm15, %v2739_v23, %v1633_v58 }
0x1ab8   :  { %v1642_v6 = vsel %vm1639_vm7, %v1641_v33, %v1637_v30 }
0x1ab9   :  { %v1648_v40 = vmul.f32 %v1646_v29, %v1642_v6 }
0x1afe   :  { %v1651_v8 = vpop.permute.xlu2 %1650 }
0x1aff   :  { %v1653_v46 = vmul.f32 %v1651_v8, %v1642_v6 }
0x1b01   :  { %v1654_v35 = vmul.f32 %v1653_v46, %v3626_v11 }
0x1b03   :  { %1656 = vrot.lane.b32.xlu0 %v1654_v35, %s3108_s12 }
0x1b06   :  { %v1107_v37 = vpop.permute.xlu2 %1106 }
0x1b07   :  { %1109 = vst.msk [vmem:[#allocation2 + $0x8] sm:$0xc] %vm812_vm10, %v1107_v37 }
0x1b0b   :  { %1181 = vrot.lane.b32.xlu0 %v3540_v41, %s3108_s12 }
0x1b75   :  { %v1657_v42 = vpop.permute.xlu0 %1656 }
0x1b76   :  { %v3668_v43 = vadd.f32 %v1657_v42, %v1648_v40 }
0x1b78   :  { %2740 = vtanh.f32 %v3668_v43  ;;  %v1718_v23 = vrot.slane %v3668_v43, 6 }
0x1b7d   :  { %v1182_v44 = vpop.permute.xlu0 %1181 }
0x1b7e   :  { %v2741_v39 = vpop.eup %2740  ;;  %1184 = vst.msk [vmem:[#allocation2 + $0x8] sm:$0x30] %vm888_vm3, %v1182_v44 }
0x1b7f   :  { %1662 = vrot.lane.b32.xlu1 %v2741_v39, %s3099_s16 }
0x1b87   :  { %1256 = vrot.lane.b32.xlu1 %v3605_v21, %s3108_s12 }
0x1bf1   :  { %v1663_v11 = vpop.permute.xlu1 %1662 }
0x1bf2   :  { %v3675_v1 = vmul.f32 %v1663_v11, %v1642_v6 }
0x1bf4   :  { %v1671_v41 = vrot.slane %v3675_v1, 6 }
0x1bf6   :  { %1672 = vrot.lane.b32.xlu2 %v1671_v41, %s3108_s12 }
0x1bf9   :  { %v1257_v50 = vpop.permute.xlu1 %1256 }
0x1bfa   :  { %1259 = vst.msk [vmem:[#allocation2 + $0x8] sm:$0xc0] %vm964_vm12, %v1257_v50 }
0x1c01   :  { %v1332_v52 = vld [vmem:[#allocation2 + $0x8] sm:$0xff] }
0x1c02   :  { %2530 = vmatmul.msk.f32.gmra.mxu3 %vm261_vm2, %v1332_v52 }
0x1c50   :  { %v1673_v54 = vpop.permute.xlu2 %1672 }
0x1c51   :  { %2539 = vmatmul.msk.f32.vlgmr.msrb.gmra.mxu2 %vm261_vm2, %v1673_v54 }
0x1c85   :  { %v1369_v55 = vpop.f32.mrf.mxu3 }
0x1c86   :  { %v3683_v21 = vadd.f32 %v3616_v32, %v1369_v55 }
0x1cd4   :  { %v1693_v56 = vpop.f32.mrf.mxu2 }
0x1cd5   :  { %v1696_v53 = vadd.f32 %v1693_v56, %v3683_v21 }
0x1cd7   :  { %2742 = vtanh.f32 %v1696_v53  ;;  %v2540_v4 = vmul.f32 -1.442695, %v1696_v53 }
0x1cd9   :  { %2744 = vpow2.f32 %v2540_v4 }
0x1cda   :  { %2746 = vpow2.f32 %v2524_v60 }
0x1cdd   :  { %v2743_v57 = vpop.eup %2742 }
0x1cde   :  { %1722 = vrot.lane.b32.xlu0 %v2743_v57, %s3099_s16 }
0x1cdf   :  { %v2745_v61 = vpop.eup %2744 }
0x1ce0   :  { %v2747_v62 = vpop.eup %2746  ;;  %v1700_v63 = vadd.f32 1.0, %v2745_v61 }
0x1ce1   :  { %v1300_v0 = vadd.f32 1.0, %v2747_v62 }
0x1ce2   :  { %2748 = vrcp.f32 %v1700_v63  ;;  %v1712_v36 = vand.u32 2147483648, %v1700_v63  ;;  %vm1706_vm1 = vweird.f32 %v1700_v63  ;;  %v1710_v5 = vand.u32 2147483647, %v1700_v63 }
0x1ce3   :  { %2750 = vrcp.f32 %v1300_v0  ;;  %v1327_v15 = vand.u32 2147483648, %v1300_v0  ;;  %vm1321_vm6 = vweird.f32 %v1300_v0  ;;  %v1325_v22 = vand.u32 2147483647, %v1300_v0 }
0x1ce4   :  { %v1713_v17 = vor.u32 1.1754944e-38, %v1712_v36  ;;  %vm1711_vm9 = vcmp.eq.f32.partialorder %v1710_v5, 8.507059e+37 }
0x1ce5   :  { %v1328_v51 = vor.u32 1.1754944e-38, %v1327_v15  ;;  %vm1326_vm11 = vcmp.eq.f32.partialorder %v1325_v22, 8.507059e+37 }
0x1ce8   :  { %v2749_v32 = vpop.eup %2748 }
0x1ce9   :  { %v2751_v2 = vpop.eup %2750  ;;  %v1702_v3 = vmul.f32 %v2749_v32, %v1700_v63  ;;  %vm1707_vm13 = vweird.f32 %v2749_v32 }
0x1cea   :  { %v1317_v7 = vmul.f32 %v2751_v2, %v1300_v0  ;;  %vm1322_vm14 = vweird.f32 %v2751_v2  ;;  %vm1708_vm5 = vmor %vm1706_vm1, %vm1707_vm13 }
0x1ceb   :  { %v1703_v16 = vsub.f32 1.0, %v1702_v3  ;;  %vm1323_vm8 = vmor %vm1321_vm6, %vm1322_vm14 }
0x1cec   :  { %v1318_v10 = vsub.f32 1.0, %v1317_v7 }
0x1ced   :  { %v1704_v34 = vmul.f32 %v2749_v32, %v1703_v16 }
0x1cee   :  { %v1319_v38 = vmul.f32 %v2751_v2, %v1318_v10 }
0x1cef   :  { %v1705_v13 = vadd.f32 %v2749_v32, %v1704_v34 }
0x1cf0   :  { %v1320_v47 = vadd.f32 %v2751_v2, %v1319_v38 }
0x1cf1   :  { %v1709_v18 = vsel %vm1708_vm5, %v2749_v32, %v1705_v13 }
0x1cf2   :  { %v1324_v26 = vsel %vm1323_vm8, %v2751_v2, %v1320_v47  ;;  %v1714_v19 = vsel %vm1711_vm9, %v1713_v17, %v1709_v18 }
0x1cf3   :  { %v3688_v28 = vsel %vm1326_vm11, %v1328_v51, %v1324_v26  ;;  %v1720_v20 = vmul.f32 %v1718_v23, %v1714_v19 }
0x1d50   :  { %v1723_v48 = vpop.permute.xlu0 %1722 }
0x1d51   :  { %v1725_v9 = vmul.f32 %v1723_v48, %v1714_v19 }
0x1d53   :  { %v1726_v12 = vmul.f32 %v1725_v9, %v3688_v28 }
0x1d55   :  { %1728 = vrot.lane.b32.xlu1 %v1726_v12, %s3108_s12 }
0x1dc7   :  { %v1729_v25 = vpop.permute.xlu1 %1728 }
0x1dc8   :  { %v1731_v31 = vadd.f32 %v1729_v25, %v1720_v20 }
0x1dca   :  { %2752 = vtanh.f32 %v1731_v31  ;;  %v1790_v53 = vrot.slane %v1731_v31, 6 }
0x1dd0   :  { %v2753_v58 = vpop.eup %2752 }
0x1dd1   :  { %1734 = vrot.lane.b32.xlu2 %v2753_v58, %s3099_s16 }
0x1e2b   :  { %v1735_v27 = vpop.permute.xlu2 %1734 }
0x1e2c   :  { %v1737_v14 = vmul.f32 %v1735_v27, %v1714_v19 }
0x1e2e   :  { %1739 = vrot.lane.b32.xlu0 %v1737_v14, %s3108_s12 }
0x1ea0   :  { %v1740_v30 = vpop.permute.xlu0 %1739 }
0x1ea1   :  { %1742 = vst.msk [vmem:[#allocation2 + $0x8] sm:$0x3] %vm739_vm0, %v1740_v30  ;;  %2541 = vmatmul.msk.f32.vlgmr.msra.gmra.mxu3 %vm261_vm2, %v1740_v30 }
0x1f24   :  { %v1762_v33 = vpop.f32.mrf.mxu3 }
0x1f25   :  { %v1766_v8 = vrot.slane %v1762_v33, 6 }
0x1f27   :  { %v1768_v6 = vadd.f32 %v1766_v8, %v3683_v21 }
0x1f29   :  { %2754 = vtanh.f32 %v1768_v6  ;;  %v2542_v35 = vmul.f32 -1.442695, %v1768_v6 }
0x1f2b   :  { %2756 = vpow2.f32 %v2542_v35 }
0x1f2f   :  { %v2755_v46 = vpop.eup %2754 }
0x1f30   :  { %1794 = vrot.lane.b32.xlu1 %v2755_v46, %s3099_s16 }
0x1f31   :  { %v2757_v37 = vpop.eup %2756 }
0x1f32   :  { %v1772_v29 = vadd.f32 1.0, %v2757_v37 }
0x1f34   :  { %2758 = vrcp.f32 %v1772_v29  ;;  %v1784_v11 = vand.u32 2147483648, %v1772_v29  ;;  %vm1778_vm15 = vweird.f32 %v1772_v29  ;;  %v1782_v41 = vand.u32 2147483647, %v1772_v29 }
0x1f36   :  { %v1785_v52 = vor.u32 1.1754944e-38, %v1784_v11  ;;  %vm1783_vm13 = vcmp.eq.f32.partialorder %v1782_v41, 8.507059e+37 }
0x1f3a   :  { %v2759_v40 = vpop.eup %2758 }
0x1f3b   :  { %v1774_v42 = vmul.f32 %v2759_v40, %v1772_v29  ;;  %vm1779_vm0 = vweird.f32 %v2759_v40 }
0x1f3c   :  { %vm1780_vm7 = vmor %vm1778_vm15, %vm1779_vm0 }
0x1f3d   :  { %v1775_v43 = vsub.f32 1.0, %v1774_v42 }
0x1f3f   :  { %v1776_v44 = vmul.f32 %v2759_v40, %v1775_v43 }
0x1f41   :  { %v1777_v39 = vadd.f32 %v2759_v40, %v1776_v44 }
0x1f43   :  { %v1781_v50 = vsel %vm1780_vm7, %v2759_v40, %v1777_v39 }
0x1f44   :  { %v1786_v45 = vsel %vm1783_vm13, %v1785_v52, %v1781_v50 }
0x1f45   :  { %v1792_v57 = vmul.f32 %v1790_v53, %v1786_v45 }
0x1fa2   :  { %v1795_v54 = vpop.permute.xlu1 %1794 }
0x1fa3   :  { %v1797_v55 = vmul.f32 %v1795_v54, %v1786_v45 }
0x1fa5   :  { %v1798_v56 = vmul.f32 %v1797_v55, %v3688_v28 }
0x1fa7   :  { %1800 = vrot.lane.b32.xlu2 %v1798_v56, %s3108_s12 }
0x2001   :  { %v1801_v59 = vpop.permute.xlu2 %1800 }
0x2002   :  { %v1803_v4 = vadd.f32 %v1801_v59, %v1792_v57 }
0x2004   :  { %2760 = vtanh.f32 %v1803_v4  ;;  %v1865_v9 = vrot.slane %v1803_v4, 6 }
0x200a   :  { %v2761_v60 = vpop.eup %2760 }
0x200b   :  { %1806 = vrot.lane.b32.xlu0 %v2761_v60, %s3099_s16 }
0x207d   :  { %v1807_v61 = vpop.permute.xlu0 %1806 }
0x207e   :  { %v1809_v62 = vmul.f32 %v1807_v61, %v1786_v45 }
0x2080   :  { %v1815_v63 = vrot.slane %v1809_v62, 2 }
0x2082   :  { %1816 = vrot.lane.b32.xlu1 %v1815_v63, %s3108_s12  ;;  %v1971_v63 = vld [vmem:[%s3813_s11 + $0x18] sm:$0xff] }
0x2083   :  { %1994 = vmatpush.msra.mxu2 %v1971_v63  ;;  %v2203_v63 = vld [vmem:[#allocation17 + $0x18] sm:$0xff] }
0x20f4   :  { %v1817_v0 = vpop.permute.xlu1 %1816 }
0x20f5   :  { %2543 = vmatmul.msk.f32.vlgmr.msrb.gmra.mxu1 %vm261_vm2, %v1817_v0  ;;  %v1970_v0 = vld [vmem:[%s3813_s11 + $0x10] sm:$0xff] }
0x20f6   :  { %1995 = vmatpush.msra.mxu2 %v1970_v0  ;;  %v2207_v0 = vld [vmem:[#allocation17 + $0x38] sm:$0xff] }
0x2172   :  { %v1837_v32 = vpop.f32.mrf.mxu1 }
0x2173   :  { %v1841_v2 = vrot.slane %v1837_v32, 4  ;;  %v1968_v32 = vld [vmem:[%s3813_s11] sm:$0xff] }
0x2175   :  { %v1843_v3 = vadd.f32 %v1841_v2, %v3683_v21 }
0x2177   :  { %2762 = vtanh.f32 %v1843_v3  ;;  %v2544_v16 = vmul.f32 -1.442695, %v1843_v3 }
0x2179   :  { %2764 = vpow2.f32 %v2544_v16  ;;  %v2600_v16 = vld [vmem:[#allocation14] ss:$0 sm:$0xff] }
0x217d   :  { %v2763_v7 = vpop.eup %2762 }
0x217e   :  { %1869 = vrot.lane.b32.xlu2 %v2763_v7, %s3099_s16 }
0x217f   :  { %v2765_v10 = vpop.eup %2764 }
0x2180   :  { %v1847_v34 = vadd.f32 1.0, %v2765_v10 }
0x2182   :  { %2766 = vrcp.f32 %v1847_v34  ;;  %v1859_v15 = vand.u32 2147483648, %v1847_v34  ;;  %vm1853_vm1 = vweird.f32 %v1847_v34  ;;  %v1857_v22 = vand.u32 2147483647, %v1847_v34 }
0x2184   :  { %v1860_v17 = vor.u32 1.1754944e-38, %v1859_v15  ;;  %vm1858_vm6 = vcmp.eq.f32.partialorder %v1857_v22, 8.507059e+37 }
0x2188   :  { %v2767_v38 = vpop.eup %2766 }
0x2189   :  { %v1849_v13 = vmul.f32 %v2767_v38, %v1847_v34  ;;  %vm1854_vm14 = vweird.f32 %v2767_v38 }
0x218a   :  { %vm1855_vm5 = vmor %vm1853_vm1, %vm1854_vm14 }
0x218b   :  { %v1850_v36 = vsub.f32 1.0, %v1849_v13 }
0x218d   :  { %v1851_v47 = vmul.f32 %v2767_v38, %v1850_v36 }
0x218f   :  { %v1852_v5 = vadd.f32 %v2767_v38, %v1851_v47 }
0x2191   :  { %v1856_v18 = vsel %vm1855_vm5, %v2767_v38, %v1852_v5 }
0x2192   :  { %v1861_v51 = vsel %vm1858_vm6, %v1860_v17, %v1856_v18 }
0x2193   :  { %v1867_v12 = vmul.f32 %v1865_v9, %v1861_v51 }
0x21d8   :  { %v1870_v26 = vpop.permute.xlu2 %1869 }
0x21d9   :  { %v1872_v48 = vmul.f32 %v1870_v26, %v1861_v51 }
0x21db   :  { %v1873_v19 = vmul.f32 %v1872_v48, %v3688_v28 }
0x21dd   :  { %1875 = vrot.lane.b32.xlu0 %v1873_v19, %s3108_s12 }
0x224f   :  { %v1876_v23 = vpop.permute.xlu0 %1875 }
0x2250   :  { %v1878_v20 = vadd.f32 %v1876_v23, %v1867_v12 }
0x2252   :  { %2768 = vtanh.f32 %v1878_v20  ;;  %v1940_v56 = vrot.slane %v1878_v20, 6 }
0x2258   :  { %v2769_v25 = vpop.eup %2768 }
0x2259   :  { %1881 = vrot.lane.b32.xlu1 %v2769_v25, %s3099_s16 }
0x22cb   :  { %v1882_v31 = vpop.permute.xlu1 %1881 }
0x22cc   :  { %v1884_v58 = vmul.f32 %v1882_v31, %v1861_v51 }
0x22ce   :  { %v1890_v27 = vrot.slane %v1884_v58, 4 }
0x22d0   :  { %1891 = vrot.lane.b32.xlu2 %v1890_v27, %s3108_s12 }
0x232a   :  { %v1892_v14 = vpop.permute.xlu2 %1891 }
0x232b   :  { %2545 = vmatmul.msk.f32.vlgmr.msrb.gmra.mxu0 %vm261_vm2, %v1892_v14 }
0x23a8   :  { %v1912_v30 = vpop.f32.mrf.mxu0 }
0x23a9   :  { %v1916_v33 = vrot.slane %v1912_v30, 2 }
0x23ab   :  { %v1918_v8 = vadd.f32 %v1916_v33, %v3683_v21 }
0x23ad   :  { %2770 = vtanh.f32 %v1918_v8  ;;  %v2546_v46 = vmul.f32 -1.442695, %v1918_v8  ;;  %v2165_v8 = vld [vmem:[#allocation15 + $0x18] sm:$0xff] }
0x23af   :  { %2772 = vpow2.f32 %v2546_v46  ;;  %v2163_v46 = vld [vmem:[#allocation15 + $0x8] sm:$0xff] }
0x23b3   :  { %v2771_v6 = vpop.eup %2770 }
0x23b4   :  { %1944 = vrot.lane.b32.xlu0 %v2771_v6, %s3099_s16  ;;  %v2164_v6 = vld [vmem:[#allocation15 + $0x10] sm:$0xff] }
0x23b5   :  { %v2773_v35 = vpop.eup %2772 }
0x23b6   :  { %v1922_v37 = vadd.f32 1.0, %v2773_v35 }
0x23b8   :  { %2774 = vrcp.f32 %v1922_v37  ;;  %v1934_v21 = vand.u32 2147483648, %v1922_v37  ;;  %vm1928_vm9 = vweird.f32 %v1922_v37  ;;  %v1932_v39 = vand.u32 2147483647, %v1922_v37 }
0x23ba   :  { %v1935_v41 = vor.u32 1.1754944e-38, %v1934_v21  ;;  %vm1933_vm0 = vcmp.eq.f32.partialorder %v1932_v39, 8.507059e+37 }
0x23bc   :  { %1517 = vrot.lane.b32.xlu0 %v3644_v49, %s3108_s12 }
0x23be   :  { %v2775_v29 = vpop.eup %2774 }
0x23bf   :  { %v1924_v40 = vmul.f32 %v2775_v29, %v1922_v37  ;;  %vm1929_vm8 = vweird.f32 %v2775_v29 }
0x23c0   :  { %vm1930_vm11 = vmor %vm1928_vm9, %vm1929_vm8 }
0x23c1   :  { %v1925_v42 = vsub.f32 1.0, %v1924_v40 }
0x23c3   :  { %v1926_v43 = vmul.f32 %v2775_v29, %v1925_v42 }
0x23c4   :  { %1811 = vrot.lane.b32.xlu0 %v1809_v62, %s3108_s12 }
0x23c5   :  { %v1927_v44 = vadd.f32 %v2775_v29, %v1926_v43 }
0x23c7   :  { %v1931_v11 = vsel %vm1930_vm11, %v2775_v29, %v1927_v44 }
0x23c8   :  { %v1936_v50 = vsel %vm1933_vm0, %v1935_v41, %v1931_v11 }
0x23c9   :  { %v1942_v53 = vmul.f32 %v1940_v56, %v1936_v50 }
0x2426   :  { %v1945_v49 = vpop.permute.xlu0 %1944 }
0x2427   :  { %v1947_v52 = vmul.f32 %v1945_v49, %v1936_v50 }
0x2429   :  { %v1948_v54 = vmul.f32 %v1947_v52, %v3688_v28 }
0x242b   :  { %1950 = vrot.lane.b32.xlu1 %v1948_v54, %s3108_s12 }
0x242e   :  { %v1518_v45 = vpop.permute.xlu0 %1517 }
0x242f   :  { %1520 = vst.msk [vmem:[#allocation2] sm:$0xc] %vm812_vm10, %v1518_v45 }
0x2433   :  { %1592 = vrot.lane.b32.xlu1 %v3654_v24, %s3108_s12 }
0x2436   :  { %v1812_v55 = vpop.permute.xlu0 %1811 }
0x2437   :  { %1814 = vst.msk [vmem:[#allocation2 + $0x8] sm:$0xc] %vm812_vm10, %v1812_v55  ;;  %vm2061_vm10 = vcmask 64512  }
0x243b   :  { %1886 = vrot.lane.b32.xlu1 %v1884_v58, %s3108_s12 }
0x249d   :  { %v1951_v57 = vpop.permute.xlu1 %1950 }
0x249e   :  { %v1953_v59 = vadd.f32 %v1951_v57, %v1942_v53 }
0x24a0   :  { %2776 = vtanh.f32 %v1953_v59 }
0x24a5   :  { %v1593_v4 = vpop.permute.xlu1 %1592 }
0x24a6   :  { %v2777_v28 = vpop.eup %2776  ;;  %1595 = vst.msk [vmem:[#allocation2] sm:$0x30] %vm888_vm3, %v1593_v4 }
0x24a7   :  { %1956 = vrot.lane.b32.xlu2 %v2777_v28, %s3099_s16 }
0x24ad   :  { %v1887_v60 = vpop.permute.xlu1 %1886 }
0x24ae   :  { %1889 = vst.msk [vmem:[#allocation2 + $0x8] sm:$0x30] %vm888_vm3, %v1887_v60 }
0x24af   :  { %1667 = vrot.lane.b32.xlu2 %v3675_v1, %s3108_s12  ;;  %v1969_v1 = vld [vmem:[%s3813_s11 + $0x8] sm:$0xff] }
0x24b0   :  { %1996 = vmatpush.msra.mxu2 %v1969_v1  ;;  %v2206_v1 = vld [vmem:[#allocation17 + $0x30] sm:$0xff] }
0x24b2   :  { %1997 = vmatpush.msra.mxu2 %v1968_v32  ;;  %v2211_v32 = vld [vmem:[#allocation17 + $0x58] sm:$0xff] }
0x24b4   :  { %2274 = vmatpush.msrb.mxu2 %v2203_v63  ;;  %v2444_v63 = vld [vmem:[%s3817_s15 + $0x18] sm:$0xff] }
0x2501   :  { %v1957_v24 = vpop.permute.xlu2 %1956 }
0x2502   :  { %v1959_v61 = vmul.f32 %v1957_v24, %v1936_v50  ;;  %v2162_v24 = vld [vmem:[#allocation15] sm:$0xff] }
0x2504   :  { %1961 = vrot.lane.b32.xlu2 %v1959_v61, %s3108_s12 }
0x2509   :  { %v1668_v62 = vpop.permute.xlu2 %1667 }
0x250a   :  { %1670 = vst.msk [vmem:[#allocation2] sm:$0xc0] %vm964_vm12, %v1668_v62 }
0x255e   :  { %v1962_v2 = vpop.permute.xlu2 %1961 }
0x255f   :  { %1964 = vst.msk [vmem:[#allocation2 + $0x8] sm:$0xc0] %vm964_vm12, %v1962_v2  ;;  %v2227_v2 = vld [vmem:[#allocation17 + $0xd8] sm:$0xff] }
0x2566   :  { %v3743_v3 = vld [vmem:[#allocation2] ss:$2 sm:$0xff]  ;;  %v3747_v7 = vld [vmem:[#allocation2 + $0x1] ss:$2 sm:$0xff] }
0x2567   :  { %2547 = vmatmul.msk.f32.vlgmr.msra.gmra.mxu2 %vm261_vm2, %v3743_v3 }
0x256f   :  { %2548 = vmatmul.msk.f32.gmra.mxu2 %vm261_vm2, %v3747_v7 }
0x25ea   :  { %v1999_v10 = vpop.f32.mrf.mxu2 }
0x25eb   :  { %v2000_v34 = vadd.f32 %v2600_v16, %v1999_v10  ;;  %v2205_v10 = vld [vmem:[#allocation17 + $0x28] sm:$0xff] }
0x25ed   :  { %2006 = vrot.lane.b32.xlu0 %v2000_v34, %s3109_s3 }
0x25f2   :  { %v2002_v38 = vpop.f32.mrf.mxu2 }
0x25f3   :  { %v2003_v13 = vadd.f32 %v2600_v16, %v2002_v38  ;;  %v2202_v16 = vld [vmem:[#allocation17 + $0x10] sm:$0xff] }
0x25f4   :  { %2275 = vmatpush.msrb.mxu2 %v2202_v16  ;;  %v2226_v38 = vld [vmem:[#allocation17 + $0xd0] sm:$0xff] }
0x25f5   :  { %2033 = vrot.lane.b32.xlu1 %v2003_v13, %s3109_s3  ;;  %v2591_v51 = vpack.i.bf16 %v2003_v13, %v2000_v34 }
0x265f   :  { %v2007_v36 = vpop.permute.xlu0 %2006 }
0x2660   :  { %2549 = vmatpush.xpose.msk.msrb.mxu3 %vm261_vm2, %v2007_v36  ;;  %v2201_v36 = vld [vmem:[#allocation17 + $0x8] sm:$0xff] }
0x2661   :  { %2276 = vmatpush.msrb.mxu2 %v2201_v36 }
0x2663   :  { %2550 = vmatmul.msk.f32.vlgmr.msrb.gmra.mxu3 %vm261_vm2, %v2000_v34  ;;  %v2210_v34 = vld [vmem:[#allocation17 + $0x50] sm:$0xff] }
0x2667   :  { %v2034_v47 = vpop.permute.xlu1 %2033 }
0x2668   :  { %2551 = vmatpush.xpose.msk.msra.mxu1 %vm261_vm2, %v2034_v47  ;;  %v2209_v47 = vld [vmem:[#allocation17 + $0x48] sm:$0xff] }
0x266b   :  { %2552 = vmatmul.msk.f32.vlgmr.msra.gmra.mxu1 %vm261_vm2, %v2003_v13  ;;  %v2204_v13 = vld [vmem:[#allocation17 + $0x20] sm:$0xff] }
0x266c   :  { %2185 = vmatpush.msrb.mxu1 %v2165_v8 }
0x266e   :  { %2186 = vmatpush.msrb.mxu1 %v2164_v6 }
0x2670   :  { %2187 = vmatpush.msrb.mxu1 %v2163_v46 }
0x2672   :  { %2188 = vmatpush.msrb.mxu1 %v2162_v24 }
0x2674   :  { %2403 = vmatpush.msra.mxu1 %v2227_v2 }
0x2676   :  { %2404 = vmatpush.msra.mxu1 %v2226_v38 }
0x26e6   :  { %v2029_v5 = vpop.f32.mrf.mxu3 }
0x26e7   :  { %v2059_v15 = vmul.f32 0.17677669, %v2029_v5  ;;  %v2225_v5 = vld [vmem:[#allocation17 + $0xc8] sm:$0xff] }
0x26e8   :  { %v2056_v22 = vpop.f32.mrf.mxu1  ;;  %2405 = vmatpush.msra.mxu1 %v2225_v5 }
0x26e9   :  { %v2060_v18 = vmul.f32 0.17677669, %v2056_v22  ;;  %v2062_v17 = vsel %vm2061_vm10, %v2059_v15, -inf  ;;  %v2208_v22 = vld [vmem:[#allocation17 + $0x40] sm:$0xff] }
0x26ea   :  { %2063 = vmax.xlane.f32.xlu2 %v2062_v17  ;;  %v2224_v17 = vld [vmem:[#allocation17 + $0xc0] sm:$0xff] }
0x26eb   :  { %v2065_v26 = vsel %vm2061_vm10, %v2060_v18, -inf  ;;  %2406 = vmatpush.msra.mxu1 %v2224_v17 }
0x26ec   :  { %2066 = vmax.xlane.f32.xlu0 %v2065_v26  ;;  %v2214_v26 = vld [vmem:[#allocation17 + $0x70] sm:$0xff] }
0x2700   :  { %2592 = vrot.lane.b32.xlu0 %v2591_v51, %s3099_s16  ;;  %v2219_v51 = vld [vmem:[#allocation17 + $0x98] sm:$0xff] }
0x275d   :  { %v2064_v48 = vpop.xlane.xlu2 %2063 }
0x275e   :  { %v2068_v19 = vsub.f32 %v2059_v15, %v2064_v48  ;;  %v2200_v15 = vld [vmem:[#allocation17] sm:$0xff]  ;;  %v2223_v48 = vld [vmem:[#allocation17 + $0xb8] sm:$0xff] }
0x275f   :  { %v2067_v9 = vpop.xlane.xlu0 %2066  ;;  %2277 = vmatpush.msrb.mxu2 %v2200_v15 }
0x2760   :  { %v2070_v12 = vmul.f32 1.442695, %v2068_v19  ;;  %v2069_v23 = vsub.f32 %v2060_v18, %v2067_v9  ;;  %v2215_v18 = vld [vmem:[#allocation17 + $0x78] sm:$0xff]  ;;  %v2213_v19 = vld [vmem:[#allocation17 + $0x68] sm:$0xff]  ;;  %v2218_v9 = vld [vmem:[#allocation17 + $0x90] sm:$0xff] }
0x2761   :  { %2351 = vmatpush.msra.mxu2 %v2219_v51 }
0x2762   :  { %2778 = vpow2.f32 %v2070_v12  ;;  %v2072_v20 = vmul.f32 1.442695, %v2069_v23  ;;  %v2222_v12 = vld [vmem:[#allocation17 + $0xb0] sm:$0xff]  ;;  %v2212_v23 = vld [vmem:[#allocation17 + $0x60] sm:$0xff] }
0x2763   :  { %2352 = vmatpush.msra.mxu2 %v2218_v9 }
0x2764   :  { %2780 = vpow2.f32 %v2072_v20  ;;  %v2217_v20 = vld [vmem:[#allocation17 + $0x88] sm:$0xff] }
0x2765   :  { %2353 = vmatpush.msra.mxu2 %v2217_v20 }
0x2768   :  { %v2779_v25 = vpop.eup %2778 }
0x2769   :  { %v2074_v31 = vsel %vm2061_vm10, %v2779_v25, 0.0 }
0x276a   :  { %v2781_v58 = vpop.eup %2780  ;;  %2075 = vadd.xlane.f32.xlu1 %v2074_v31  ;;  %v2216_v31 = vld [vmem:[#allocation17 + $0x80] sm:$0xff] }
0x276b   :  { %v2077_v27 = vsel %vm2061_vm10, %v2781_v58, 0.0  ;;  %2354 = vmatpush.msra.mxu2 %v2216_v31 }
0x276c   :  { %2078 = vadd.xlane.f32.xlu2 %v2077_v27  ;;  %v3764_v27 = vld [vmem:[#allocation20] sm:$0x7] }
0x2772   :  { %v2593_v14 = vpop.permute.xlu0 %2592 }
0x2773   :  { %v2595_v30 = vunpack.i.h.bf16 %v2593_v14  ;;  %v2594_v33 = vunpack.i.l.bf16 %v2593_v14  ;;  %v2166_v14 = vperm.slane %v3764_v27, 1 }
0x2775   :  { %2131 = vmatpush.msra.mxu0 %v2594_v33  ;;  %2157 = vmatpush.msra.mxu3 %v2595_v30 }
0x2777   :  { %2250 = vmatpush.msrb.mxu0 %v2207_v0  ;;  %2299 = vmatpush.msrb.mxu3 %v2211_v32  ;;  %v2443_v0 = vld [vmem:[%s3817_s15 + $0x10] sm:$0xff]  ;;  %v2441_v32 = vld [vmem:[%s3817_s15] sm:$0xff] }
0x2779   :  { %2251 = vmatpush.msrb.mxu0 %v2206_v1  ;;  %2300 = vmatpush.msrb.mxu3 %v2210_v34  ;;  %v2442_v1 = vld [vmem:[%s3817_s15 + $0x8] sm:$0xff]  ;;  %s3110_s15 = smov [#allocation21]  }
0x277a   :  { %s2479_s27 = sshll.u32 %s3110_s15, 4  ;;  %s2480_s27 = int_to_ptr.vmem [resolvable:$true] %s2479_s27 }
0x277b   :  { %2252 = vmatpush.msrb.mxu0 %v2205_v10  ;;  %2301 = vmatpush.msrb.mxu3 %v2209_v47 }
0x277d   :  { %2253 = vmatpush.msrb.mxu0 %v2204_v13  ;;  %2302 = vmatpush.msrb.mxu3 %v2208_v22 }
0x27dd   :  { %v2076_v35 = vpop.xlane.xlu1 %2075 }
0x27de   :  { %2782 = vrcp.f32 %v2076_v35  ;;  %v2091_v21 = vand.u32 2147483648, %v2076_v35  ;;  %v2089_v11 = vand.u32 2147483647, %v2076_v35  ;;  %vm2085_vm12 = vweird.f32 %v2076_v35 }
0x27df   :  { %v2079_v37 = vpop.xlane.xlu2 %2078 }
0x27e0   :  { %2784 = vrcp.f32 %v2079_v37  ;;  %v2105_v49 = vand.u32 2147483648, %v2079_v37  ;;  %v2103_v54 = vand.u32 2147483647, %v2079_v37  ;;  %v2092_v45 = vor.u32 1.1754944e-38, %v2091_v21 }
0x27e1   :  { %vm2090_vm13 = vcmp.eq.f32.partialorder %v2089_v11, 8.507059e+37  ;;  %vm2099_vm14 = vweird.f32 %v2079_v37 }
0x27e2   :  { %v2106_v57 = vor.u32 1.1754944e-38, %v2105_v49  ;;  %vm2104_vm5 = vcmp.eq.f32.partialorder %v2103_v54, 8.507059e+37  ;;  %v2230_v49 = vld [vmem:[#allocation17 + $0xf0] sm:$0xff] }
0x27e4   :  { %v2783_v29 = vpop.eup %2782 }
0x27e5   :  { %v2081_v40 = vmul.f32 %v2783_v29, %v2076_v35  ;;  %vm2086_vm3 = vweird.f32 %v2783_v29 }
0x27e6   :  { %v2785_v42 = vpop.eup %2784  ;;  %vm2087_vm7 = vmor %vm2085_vm12, %vm2086_vm3 }
0x27e7   :  { %v2082_v43 = vsub.f32 1.0, %v2081_v40  ;;  %v2095_v44 = vmul.f32 %v2785_v42, %v2079_v37  ;;  %vm2100_vm15 = vweird.f32 %v2785_v42 }
0x27e8   :  { %vm2101_vm1 = vmor %vm2099_vm14, %vm2100_vm15 }
0x27e9   :  { %v2083_v39 = vmul.f32 %v2783_v29, %v2082_v43  ;;  %v2096_v41 = vsub.f32 1.0, %v2095_v44  ;;  %v2231_v44 = vld [vmem:[#allocation17 + $0xf8] sm:$0xff] }
0x27eb   :  { %v2084_v50 = vadd.f32 %v2783_v29, %v2083_v39  ;;  %v2097_v52 = vmul.f32 %v2785_v42, %v2096_v41 }
0x27ed   :  { %v2088_v55 = vsel %vm2087_vm7, %v2783_v29, %v2084_v50  ;;  %v2098_v56 = vadd.f32 %v2785_v42, %v2097_v52 }
0x27ee   :  { %v2093_v53 = vsel %vm2090_vm13, %v2092_v45, %v2088_v55  ;;  %v2228_v45 = vld [vmem:[#allocation17 + $0xe0] sm:$0xff] }
0x27ef   :  { %v2108_v59 = vmul.f32 %v2779_v25, %v2093_v53  ;;  %v2102_v4 = vsel %vm2101_vm1, %v2785_v42, %v2098_v56  ;;  %v2221_v25 = vld [vmem:[#allocation17 + $0xa8] sm:$0xff] }
0x27f0   :  { %v2107_v28 = vsel %vm2104_vm5, %v2106_v57, %v2102_v4 }
0x27f1   :  { %v2109_v60 = vmul.f32 %v2781_v58, %v2107_v28  ;;  %2553 = vmatmul.msk.f32.vlgmr.msra.gmra.mxu0 %vm2061_vm10, %v2108_v59  ;;  %v2220_v58 = vld [vmem:[#allocation17 + $0xa0] sm:$0xff] }
0x27f2   :  { %2325 = vmatpush.msra.mxu0 %v2215_v18 }
0x27f3   :  { %2554 = vmatmul.msk.f32.vlgmr.msra.gmra.mxu3 %vm2061_vm10, %v2109_v60 }
0x27f4   :  { %2326 = vmatpush.msra.mxu0 %v2214_v26  ;;  %2377 = vmatpush.msra.mxu3 %v2223_v48  ;;  %v2438_v26 = vperm.slane %v3764_v27, 2 }
0x27f6   :  { %2327 = vmatpush.msra.mxu0 %v2213_v19  ;;  %2378 = vmatpush.msra.mxu3 %v2222_v12  ;;  %v2601_v12 = vld [vmem:[#allocation18] ss:$0 sm:$0xff] }
0x27f8   :  { %2328 = vmatpush.msra.mxu0 %v2212_v23  ;;  %2379 = vmatpush.msra.mxu3 %v2221_v25 }
0x27fa   :  { %2380 = vmatpush.msra.mxu3 %v2220_v58 }
0x286e   :  { %v2133_v61 = vpop.f32.mrf.mxu0 }
0x286f   :  { %2555 = vmatmul.msk.f32.vlgmr.msrb.gmra.mxu1 %vm261_vm2, %v2133_v61 }
0x2876   :  { %v2159_v62 = vpop.f32.mrf.mxu3 }
0x2877   :  { %2556 = vmatmul.msk.f32.gmra.mxu1 %vm261_vm2, %v2159_v62 }
0x28ec   :  { %v2190_v30 = vpop.f32.mrf.mxu1 }
0x28ed   :  { %v2191_v33 = vadd.f32 %v2190_v30, %v2166_v14 }
0x28ef   :  { %v2196_v8 = vadd.f32 %v2191_v33, %v3743_v3 }
0x28f1   :  { %v2198_v46 = vmax.f32 %v2196_v8, 0.0 }
0x28f3   :  { %v2234_v40 = vrot.slane %v2198_v46, 1  ;;  %v2282_v42 = vrot.slane %v2198_v46, 2  ;;  %v2386_v43 = vrot.slane %v2198_v46, 6  ;;  %v2308_v55 = vrot.slane %v2198_v46, 3 }
0x28f4   :  { %v2193_v6 = vpop.f32.mrf.mxu1  ;;  %v2334_v59 = vrot.slane %v2198_v46, 4  ;;  %v2360_v4 = vrot.slane %v2198_v46, 5  ;;  %v2412_v61 = vrot.slane %v2198_v46, 7 }
0x28f5   :  { %v2194_v35 = vadd.f32 %v2193_v6, %v2166_v14 }
0x28f7   :  { %v2197_v37 = vadd.f32 %v2194_v35, %v3747_v7  ;;  %v2229_v7 = vld [vmem:[#allocation17 + $0xe8] sm:$0xff] }
0x28f9   :  { %v2199_v29 = vmax.f32 %v2197_v37, 0.0 }
0x28fb   :  { %v2235_v21 = vsel %vm529_vm4, %v2199_v29, %v2234_v40  ;;  %v2258_v39 = vrot.slane %v2199_v29, 7  ;;  %v2283_v11 = vrot.slane %v2199_v29, 1  ;;  %v2387_v41 = vrot.slane %v2199_v29, 5 }
0x28fc   :  { %2557 = vmatmul.msk.f32.vlgmr.msrb.gmra.mxu0 %vm261_vm2, %v2235_v21  ;;  %v2309_v54 = vrot.slane %v2199_v29, 2  ;;  %v2335_v56 = vrot.slane %v2199_v29, 3  ;;  %v2361_v53 = vrot.slane %v2199_v29, 4  ;;  %v2413_v24 = vrot.slane %v2199_v29, 6 }
0x28fd   :  { %v2259_v3 = vsel %vm529_vm4, %v2258_v39, %v2198_v46  ;;  %v2284_v50 = vsel %vm529_vm4, %v2283_v11, %v2282_v42  ;;  %v2388_v52 = vsel %vm529_vm4, %v2387_v41, %v2386_v43  ;;  %2429 = vmatpush.msrb.mxu0 %v2231_v44 }
0x28fe   :  { %2558 = vmatmul.msk.f32.vlgmr.msrb.gmra.mxu2 %vm261_vm2, %v2259_v3  ;;  %2559 = vmatmul.msk.f32.vlgmr.msrb.gmra.mxu3 %vm261_vm2, %v2284_v50  ;;  %v2310_v57 = vsel %vm529_vm4, %v2309_v54, %v2308_v55  ;;  %v2336_v28 = vsel %vm529_vm4, %v2335_v56, %v2334_v59  ;;  %v2362_v60 = vsel %vm529_vm4, %v2361_v53, %v2360_v4 }
0x28ff   :  { %2563 = vmatmul.msk.f32.vlgmr.msra.gmra.mxu1 %vm261_vm2, %v2388_v52  ;;  %2430 = vmatpush.msrb.mxu0 %v2230_v49  ;;  %v2414_v62 = vsel %vm529_vm4, %v2413_v24, %v2412_v61  ;;  %vm2472_vm4 = vcmask 25600  }
0x2900   :  { %2464 = vmatpush.msrb.mxu2 %v2444_v63 }
0x2901   :  { %2431 = vmatpush.msrb.mxu0 %v2229_v7 }
0x2902   :  { %2465 = vmatpush.msrb.mxu2 %v2443_v0 }
0x2903   :  { %2432 = vmatpush.msrb.mxu0 %v2228_v45 }
0x2904   :  { %2560 = vmatmul.msk.f32.vlgmr.msra.gmra.mxu0 %vm261_vm2, %v2310_v57  ;;  %2466 = vmatpush.msrb.mxu2 %v2442_v1 }
0x2906   :  { %2561 = vmatmul.msk.f32.vlgmr.msra.gmra.mxu2 %vm261_vm2, %v2336_v28  ;;  %2562 = vmatmul.msk.f32.vlgmr.msra.gmra.mxu3 %vm261_vm2, %v2362_v60 }
0x2907   :  { %2467 = vmatpush.msrb.mxu2 %v2441_v32 }
0x290c   :  { %2564 = vmatmul.msk.f32.vlgmr.msrb.gmra.mxu0 %vm261_vm2, %v2414_v62 }
0x2979   :  { %v2255_v2 = vpop.f32.mrf.mxu0 }
0x297c   :  { %v2408_v18 = vpop.f32.mrf.mxu1 }
0x2981   :  { %v2279_v16 = vpop.f32.mrf.mxu2  ;;  %v2304_v10 = vpop.f32.mrf.mxu3 }
0x2982   :  { %v2280_v34 = vadd.f32 %v2279_v16, %v2255_v2  ;;  %v2330_v13 = vpop.f32.mrf.mxu0 }
0x2984   :  { %v2307_v38 = vadd.f32 %v2304_v10, %v2280_v34 }
0x2986   :  { %v2333_v36 = vadd.f32 %v2330_v13, %v2307_v38 }
0x2989   :  { %v2356_v47 = vpop.f32.mrf.mxu2  ;;  %v2382_v15 = vpop.f32.mrf.mxu3 }
0x298a   :  { %v2359_v5 = vadd.f32 %v2356_v47, %v2333_v36  ;;  %v2434_v51 = vpop.f32.mrf.mxu0 }
0x298c   :  { %v2385_v22 = vadd.f32 %v2382_v15, %v2359_v5 }
0x298e   :  { %v2411_v17 = vadd.f32 %v2408_v18, %v2385_v22 }
0x2990   :  { %v2437_v48 = vadd.f32 %v2434_v51, %v2411_v17 }
0x2992   :  { %v2439_v19 = vadd.f32 %v2438_v26, %v2437_v48 }
0x2994   :  { %v2440_v9 = vmax.f32 %v2439_v19, 0.0 }
0x2996   :  { %2565 = vmatmul.msk.f32.vlgmr.msrb.gmra.mxu2 %vm261_vm2, %v2440_v9 }
0x2a19   :  { %v2469_v23 = vpop.f32.mrf.mxu2 }
0x2a1a   :  { %v2470_v20 = vadd.f32 %v2601_v12, %v2469_v23 }
0x2a1c   :  { %2473 = vst.msk [vmem:[#allocation21] sm:$0x3] %vm2472_vm4, %v2470_v20 }
0x2a1d   :  { %2484 = dma.vmem_to_hbm [thread:$0]  %s2480_s27, 32, %s2482_s14, [#allocation5]  }
0x2a1e   :  { %3087 = dma.done.wait [#allocation5], 32  }
0x2a1f   :  { %3088 = vsyncadd [#allocation5], 4294967264 }
0x2a20   :  { %2489 = vsyncpa [#allocation4], 1 }
0x2a21   :  { %2490 = vsyncpa [#allocation7], 1 }
0x2a22   :  { %2491 = vsyncpa [#allocation10], 1 }
0x2a23   :  { %2492 = vsyncpa [#allocation13], 1 }
0x2a24   :  { %2493 = vsyncpa [#allocation16], 1 }
0x2a25   :  { %2494 = vsyncpa [#allocation19], 1 }
0x2a26   :  { %2495 = vsyncpa [#allocation5], 1 }

</bundles_post_ra>
